<compile_context>
chip_gen: v5e
topology: v5e:2x2
jax: 0.10.0
libtpu: 0.0.40
codegen_flags: <defaults>
</compile_context>

<pallas_src>
import math
from functools import partial

import jax
import jax.numpy as jnp
from jax import lax
from jax.experimental import pallas as pl
from jax.experimental.pallas import tpu as pltpu

EPS = 1e-12
MXU_DTYPE = jnp.bfloat16   # MXU operand dtype
ACT_DTYPE = jnp.bfloat16   # hidden-state dtype between fused kernels
VMEM_LIMIT = 32 * 1024 * 1024   # explicit scoped-VMEM budget (v7x-safe)


# ----------------------------- in-kernel helpers -----------------------------

def _layernorm(x, gamma, beta):
    """Single-pass LayerNorm: one reduction pair + rsqrt on the EUP."""
    inv_n = 1.0 / x.shape[-1]
    u = jnp.sum(x, axis=-1, keepdims=True) * inv_n
    m2 = jnp.sum(x * x, axis=-1, keepdims=True) * inv_n
    var = m2 - u * u
    return (x - u) * lax.rsqrt(var + EPS) * gamma + beta


def _gelu(x):
    # Matches torch's erf-based gelu in the reference.
    return x * 0.5 * (1.0 + lax.erf(x / math.sqrt(2.0)))


def _choose_batch_tile(B, S, target_rows=128):
    """Fold batch rows into the tile (raise MXU M occupancy) but keep >= 2
    batch grid steps when possible so v7x megacore has a parallel axis."""
    bt = max(1, min(B, -(-target_rows // S)))
    while B % bt:
        bt -= 1
    if B > 1 and B // bt < 2:
        bt = max(1, B // 2)
        while B % bt:
            bt -= 1
    return bt


# ------------------------- fused encoder (all layers) -------------------------

def _encoder_kernel(x0_ref, m_ref, eg_ref, eb_ref,
                    wq_ref, bq_ref, wo_ref, bo_ref, g1_ref, b1_ref,
                    wi_ref, bi_ref, wo2_ref, bo2_ref, g2_ref, b2_ref,
                    out_ref, h_scr, *, num_heads, head_dim, bt, seq):
    """grid = (batch_blocks, num_layers); h stays resident in VMEM across l."""
    nh, dh = num_heads, head_dim
    H = nh * dh
    scale = 1.0 / math.sqrt(dh)
    l = pl.program_id(1)

    # Layer 0: embedding LayerNorm (sum of embeddings pre-added in the wrapper).
    @pl.when(l == 0)
    def _():
        h_scr[...] = _layernorm(x0_ref[...].astype(jnp.float32),
                                eg_ref[...], eb_ref[...])
        # TODO(synk): embedding dropout (p=0.4) treated as identity (eval).

    x = h_scr[...]                                           # [M, H] f32 residual
    mask = m_ref[...]                                        # [bt, 1, S] additive

    # --- self-attention (reference bug preserved: Q == K == V == query(x)) ----
    # Single lane-dense [M,H]@[H,H] projection (heads folded into the matmul).
    q = (jnp.dot(x.astype(MXU_DTYPE), wq_ref[0],
                 preferred_element_type=jnp.float32) + bq_ref[0])     # [M, H]
    qb = q.astype(MXU_DTYPE)

    ctx_rows = []
    for b in range(bt):                                      # bt is tiny & static
        # Head split relayout (lane slices + leading stack; XLU has slack here).
        qh = jnp.stack(
            [qb[b * seq:(b + 1) * seq, h * dh:(h + 1) * dh] for h in range(nh)],
            axis=0)                                          # [nh, S, dh]
        s = jnp.einsum("hqd,hkd->hqk", qh, qh,
                       preferred_element_type=jnp.float32) * scale
        s = s + mask[b][None]                                # [1,1,S] broadcast
        s = s - jnp.max(s, axis=-1, keepdims=True)
        p = jnp.exp(s)
        p = p * pl.reciprocal(jnp.sum(p, axis=-1, keepdims=True), approx=True)
        # TODO(synk): attention-prob dropout (p=0.4) treated as identity (eval).
        ctx = jnp.einsum("hqk,hkd->hqd", p.astype(MXU_DTYPE), qh,
                         preferred_element_type=jnp.float32)  # [nh, S, dh]
        # Head-concat back to lane-dense [S, H].
        ctx_rows.append(jnp.concatenate([ctx[h] for h in range(nh)], axis=-1))
        # TODO(synk): at real S (>=512) tile keys + online softmax instead of
        # keeping the full [nh,S,S] scores resident (v7x 64 MiB VMEM).
    ctx_flat = ctx_rows[0] if bt == 1 else jnp.concatenate(ctx_rows, axis=0)

    # Single lane-dense output projection (sum over heads folds into K=H).
    attn = (jnp.dot(ctx_flat.astype(MXU_DTYPE), wo_ref[0],
                    preferred_element_type=jnp.float32) + bo_ref[0])
    h1 = _layernorm(attn + x, g1_ref[0], b1_ref[0])

    # --- feed-forward ----------------------------------------------------------
    inter = _gelu(jnp.dot(h1.astype(MXU_DTYPE), wi_ref[0],
                          preferred_element_type=jnp.float32) + bi_ref[0])
    out = (jnp.dot(inter.astype(MXU_DTYPE), wo2_ref[0],
                   preferred_element_type=jnp.float32) + bo2_ref[0])
    h2 = _layernorm(out + h1, g2_ref[0], b2_ref[0])
    h_scr[...] = h2

    @pl.when(l == pl.num_programs(1) - 1)
    def _():
        out_ref[...] = h2.astype(out_ref.dtype)


def encoder_forward(emb_flat, ext_mask, p, *, num_heads, seq, bt):
    MB, H = emb_flat.shape
    B = MB // seq
    L = p["Wq"].shape[0]
    I = p["Wi"].shape[2]
    rows = bt * seq
    nb = B // bt

    hspec = pl.BlockSpec((rows, H), lambda b, l: (b, 0))

    def lw(*shape):   # per-layer stacked weight, indexed by l (double-buffered
        n = len(shape)  # by the pipeline so layer l+1 prefetches under layer l)
        return pl.BlockSpec((1,) + shape, lambda b, l, n=n: (l,) + (0,) * n)

    def cw(*shape):   # grid-constant weight (fetched once)
        n = len(shape)
        return pl.BlockSpec(shape, lambda b, l, n=n: (0,) * n)

    return pl.pallas_call(
        partial(_encoder_kernel, num_heads=num_heads, head_dim=H // num_heads,
                bt=bt, seq=seq),
        out_shape=jax.ShapeDtypeStruct((MB, H), ACT_DTYPE),
        grid=(nb, L),
        in_specs=[
            hspec,
            pl.BlockSpec((bt, 1, seq), lambda b, l: (b, 0, 0)),
            cw(1, H), cw(1, H),
            lw(H, H), lw(1, H), lw(H, H), lw(1, H), lw(1, H), lw(1, H),
            lw(H, I), lw(1, I), lw(I, H), lw(1, H), lw(1, H), lw(1, H),
        ],
        out_specs=hspec,
        scratch_shapes=[pltpu.VMEM((rows, H), jnp.float32)],
        compiler_params=pltpu.CompilerParams(
            dimension_semantics=("parallel", "arbitrary"),
            vmem_limit_bytes=VMEM_LIMIT),
    )(emb_flat, ext_mask,
      p["emb_ln_g"], p["emb_ln_b"],
      p["Wq"], p["bq"], p["Wo"], p["bo"], p["ln1_g"], p["ln1_b"],
      p["Wi"], p["bi"], p["Wo2"], p["bo2"], p["ln2_g"], p["ln2_b"])


# ------------------------------- MLM head ------------------------------------

def _mlm_kernel(h_ref, wt_ref, bt_ref, g_ref, b_ref, wd_ref, db_ref,
                o_ref, t_scr):
    # Transform (dense + gelu + LN) computed once per batch block (v == 0) and
    # reused across all vocab tiles.
    @pl.when(pl.program_id(1) == 0)
    def _():
        t = (jnp.dot(h_ref[...].astype(MXU_DTYPE), wt_ref[...],
                     preferred_element_type=jnp.float32) + bt_ref[...])
        t_scr[...] = _layernorm(_gelu(t), g_ref[...], b_ref[...]).astype(MXU_DTYPE)

    o_ref[...] = (jnp.dot(t_scr[...], wd_ref[...],
                          preferred_element_type=jnp.float32)
                  + db_ref[...]).astype(o_ref.dtype)


def mlm_head(h_flat, p, *, seq, bt):
    MB, H = h_flat.shape
    B = MB // seq
    V = p["word_emb_T"].shape[1]
    rows = bt * seq
    nb = B // bt
    # Vocab tiling keeps the decoder weight + logits block VMEM-bounded at real
    # vocab sizes; toy V=512 is a single tile.
    TV = 2048 if V % 2048 == 0 else V

    return pl.pallas_call(
        _mlm_kernel,
        out_shape=jax.ShapeDtypeStruct((MB, V), jnp.float32),
        grid=(nb, V // TV),
        in_specs=[
            pl.BlockSpec((rows, H), lambda b, v: (b, 0)),
            pl.BlockSpec((H, H), lambda b, v: (0, 0)),
            pl.BlockSpec((1, H), lambda b, v: (0, 0)),
            pl.BlockSpec((1, H), lambda b, v: (0, 0)),
            pl.BlockSpec((1, H), lambda b, v: (0, 0)),
            pl.BlockSpec((H, TV), lambda b, v: (0, v)),
            pl.BlockSpec((1, TV), lambda b, v: (0, v)),
        ],
        out_specs=pl.BlockSpec((rows, TV), lambda b, v: (b, v)),
        scratch_shapes=[pltpu.VMEM((rows, H), MXU_DTYPE)],
        compiler_params=pltpu.CompilerParams(
            dimension_semantics=("parallel", "arbitrary"),
            vmem_limit_bytes=VMEM_LIMIT),
    )(h_flat, p["Wt"], p["bt"], p["t_ln_g"], p["t_ln_b"],
      p["word_emb_T"], p["decoder_bias"])


# ----------------------------- model parameters -------------------------------

class Config:
    vocab_size = 512
    hidden_size = 128
    num_hidden_layers = 2
    num_attention_heads = 4
    intermediate_size = 512
    type_vocab_size = 4
    initializer_range = 0.02


def init_params(cfg, key):
    ks = iter(jax.random.split(key, 128))
    H, I = cfg.hidden_size, cfg.intermediate_size
    V, T, L = cfg.vocab_size, cfg.type_vocab_size, cfg.num_hidden_layers

    def lin(shape):
        return jax.random.normal(next(ks), shape, jnp.float32) * cfg.initializer_range

    def emb(shape):
        w = jax.random.normal(next(ks), shape, jnp.float32)
        return w / (jnp.linalg.norm(w, axis=1, keepdims=True) + 1e-8)

    def stack(make):
        return jnp.stack([make() for _ in range(L)], axis=0)

    word_emb = emb((V, H))
    params = {
        "word_emb": word_emb,                                   # f32 gather table
        "word_emb_T": jnp.asarray(word_emb.T, MXU_DTYPE),       # tied decoder (pre-T)
        "tok_emb": emb((T, H)),
        "emb_ln_g": jnp.ones((1, H), jnp.float32),
        "emb_ln_b": jnp.zeros((1, H), jnp.float32),
        # Encoder: per-layer weights stacked on a leading L axis (fused kernel).
        # key/value projections exist in the reference but their outputs are
        # discarded (overwritten by the query projection) -> not computed.
        "Wq": stack(lambda: lin((H, H)).astype(MXU_DTYPE)),
        "bq": jnp.zeros((L, 1, H), jnp.float32),
        "Wo": stack(lambda: lin((H, H)).astype(MXU_DTYPE)),
        "bo": jnp.zeros((L, 1, H), jnp.float32),
        "ln1_g": jnp.ones((L, 1, H), jnp.float32),
        "ln1_b": jnp.zeros((L, 1, H), jnp.float32),
        "Wi": stack(lambda: lin((H, I)).astype(MXU_DTYPE)),
        "bi": jnp.zeros((L, 1, I), jnp.float32),
        "Wo2": stack(lambda: lin((I, H)).astype(MXU_DTYPE)),
        "bo2": jnp.zeros((L, 1, H), jnp.float32),
        "ln2_g": jnp.ones((L, 1, H), jnp.float32),
        "ln2_b": jnp.zeros((L, 1, H), jnp.float32),
        # MLM transform + tied decoder bias.
        "Wt": lin((H, H)).astype(MXU_DTYPE), "bt": jnp.zeros((1, H), jnp.float32),
        "t_ln_g": jnp.ones((1, H), jnp.float32),
        "t_ln_b": jnp.zeros((1, H), jnp.float32),
        "decoder_bias": jnp.zeros((1, V), jnp.float32),
        # Pooler + NSP head: tiny, evaluated in plain XLA (per review).
        "Wpool": lin((H, H)), "bpool": jnp.zeros((H,), jnp.float32),
        "Wnsp": lin((H, 2)), "bnsp": jnp.zeros((2,), jnp.float32),
    }
    return params


# ------------------------------ forward pass ----------------------------------

@partial(jax.jit, static_argnames=("num_heads",))
def bert_for_pretraining(params, input_ids, positional_enc,
                         token_type_ids=None, attention_mask=None, *, num_heads):
    B, S = input_ids.shape
    H = params["emb_ln_g"].shape[-1]

    if attention_mask is None:
        attention_mask = input_ids > 0
    if token_type_ids is None:
        token_type_ids = jnp.zeros_like(input_ids)

    ext_mask = ((1.0 - attention_mask.astype(jnp.float32)) * -10000.0).reshape(B, 1, S)

    # Embedding gathers + sum stay in XLA (one fused gather+add); the embedding
    # LayerNorm happens inside the fused encoder kernel at layer 0, so the
    # encoder reads a single f32 stream from HBM.
    word = jnp.take(params["word_emb"], input_ids, axis=0)          # [B,S,H]
    tok = jnp.take(params["tok_emb"], token_type_ids, axis=0)       # [B,S,H]
    emb_flat = (word + tok + positional_enc).reshape(B * S, H)      # [B*S,H] f32

    bt = _choose_batch_tile(B, S)

    # All encoder layers in one pallas_call; h resident in VMEM across layers.
    h_flat = encoder_forward(emb_flat, ext_mask, params,
                             num_heads=num_heads, seq=S, bt=bt)     # [B*S,H] bf16

    # MLM head: transform (dense+gelu+LN) + tied decoder, vocab-tiled.
    mlm_preds = mlm_head(h_flat, params, seq=S, bt=bt).reshape(B, S, -1)

    # Pooler (first token -> dense -> tanh) + NSP head: plain XLA (tiny).
    first_tok = h_flat.reshape(B, S, H)[:, 0, :].astype(jnp.float32)
    pooled = jnp.tanh(first_tok @ params["Wpool"] + params["bpool"])
    next_sen_preds = pooled @ params["Wnsp"] + params["bnsp"]        # [B,2] f32

    return mlm_preds, next_sen_preds


# ----------------------------------- main --------------------------------------

if __name__ == "__main__":
    cfg = Config()
    B, S, H = 2, 16, cfg.hidden_size

    key = jax.random.PRNGKey(0)
    k_param, k_ids, k_tok, k_pos = jax.random.split(key, 4)

    params = init_params(cfg, k_param)

    input_ids = jax.random.randint(k_ids, (B, S), 0, cfg.vocab_size, jnp.int32)
    token_type_ids = jax.random.randint(k_tok, (B, S), 0, cfg.type_vocab_size,
                                        jnp.int32)
    positional_enc = 0.1 * jax.random.normal(k_pos, (B, S, H), jnp.float32)

    mlm_preds, nsp_preds = bert_for_pretraining(
        params, input_ids, positional_enc, token_type_ids, None,
        num_heads=cfg.num_attention_heads)
    jax.block_until_ready((mlm_preds, nsp_preds))

    assert mlm_preds.shape == (B, S, cfg.vocab_size)
    assert nsp_preds.shape == (B, 2)
    assert bool(jnp.isfinite(mlm_preds).all()) and bool(jnp.isfinite(nsp_preds).all())
    print("KERNEL_OK")
</pallas_src>

<mosaic_0001>
module attributes {stable_mosaic.version = 11 : i64} {
  func.func @_mlm_kernel(%arg0: i32, %arg1: i32, %arg2: memref<16x128xbf16, #tpu.memory_space<vmem>>, %arg3: memref<128x128xbf16, #tpu.memory_space<vmem>>, %arg4: memref<1x128xf32, #tpu.memory_space<vmem>>, %arg5: memref<1x128xf32, #tpu.memory_space<vmem>>, %arg6: memref<1x128xf32, #tpu.memory_space<vmem>>, %arg7: memref<128x512xbf16, #tpu.memory_space<vmem>>, %arg8: memref<1x512xf32, #tpu.memory_space<vmem>>, %arg9: memref<16x512xf32, #tpu.memory_space<vmem>>, %arg10: memref<16x128xbf16, #tpu.memory_space<vmem>>) attributes {dimension_semantics = [#tpu.dimension_semantics<parallel>, #tpu.dimension_semantics<arbitrary>], iteration_bounds = array<i64: 2, 1>, scalar_prefetch = 0 : i64, scratch_operands = 1 : i64, tpu.core_type = #tpu.core_type<tc>, window_params = [{transform_indices = @transform_0, window_bounds = array<i64: 16, 128>}, {pipeline_mode = #tpu.pipeline_mode<synchronous>, transform_indices = @transform_1, window_bounds = array<i64: 128, 128>}, {pipeline_mode = #tpu.pipeline_mode<synchronous>, transform_indices = @transform_2, window_bounds = array<i64: 1, 128>}, {pipeline_mode = #tpu.pipeline_mode<synchronous>, transform_indices = @transform_3, window_bounds = array<i64: 1, 128>}, {pipeline_mode = #tpu.pipeline_mode<synchronous>, transform_indices = @transform_4, window_bounds = array<i64: 1, 128>}, {transform_indices = @transform_5, window_bounds = array<i64: 128, 512>}, {transform_indices = @transform_6, window_bounds = array<i64: 1, 512>}, {transform_indices = @transform_7, window_bounds = array<i64: 16, 512>}]} {
    %c0_i32 = arith.constant 0 : i32
    %0 = arith.cmpi eq, %arg1, %c0_i32 : i32
    %1 = arith.extui %0 : i1 to i32
    %c0_i32_0 = arith.constant 0 : i32
    %2 = arith.cmpi ne, %1, %c0_i32_0 : i32
    scf.if %2 {
      %c0_8 = arith.constant 0 : index
      %c0_9 = arith.constant 0 : index
      %10 = vector.load %arg2[%c0_8, %c0_9] : memref<16x128xbf16, #tpu.memory_space<vmem>>, vector<16x128xbf16>
      %c0_10 = arith.constant 0 : index
      %c0_11 = arith.constant 0 : index
      %11 = vector.load %arg3[%c0_10, %c0_11] : memref<128x128xbf16, #tpu.memory_space<vmem>>, vector<128x128xbf16>
      %cst_12 = arith.constant dense<0.000000e+00> : vector<16x128xf32>
      %12 = tpu.matmul %10, %11, %cst_12 {dimension_numbers = #tpu.dot_dimension_numbers<[1], [0], [0], [1], [0, 0, 1, 1], [], []>} : vector<16x128xbf16>, vector<128x128xbf16>, vector<16x128xf32> -> vector<16x128xf32>
      %c0_13 = arith.constant 0 : index
      %c0_14 = arith.constant 0 : index
      %13 = vector.load %arg4[%c0_13, %c0_14] : memref<1x128xf32, #tpu.memory_space<vmem>>, vector<1x128xf32>
      %14 = vector.broadcast %13 : vector<1x128xf32> to vector<16x128xf32>
      %15 = arith.addf %12, %14 : vector<16x128xf32>
      %cst_15 = arith.constant 5.000000e-01 : f32
      %16 = vector.broadcast %cst_15 : f32 to vector<16x128xf32>
      %17 = arith.mulf %15, %16 : vector<16x128xf32>
      %cst_16 = arith.constant 1.41421354 : f32
      %18 = vector.broadcast %cst_16 : f32 to vector<16x128xf32>
      %19 = arith.divf %15, %18 : vector<16x128xf32>
      %20 = math.erf %19 : vector<16x128xf32>
      %cst_17 = arith.constant 1.000000e+00 : f32
      %21 = vector.broadcast %cst_17 : f32 to vector<16x128xf32>
      %22 = arith.addf %21, %20 : vector<16x128xf32>
      %23 = arith.mulf %17, %22 : vector<16x128xf32>
      %c0_18 = arith.constant 0 : index
      %c0_19 = arith.constant 0 : index
      %24 = vector.load %arg5[%c0_18, %c0_19] : memref<1x128xf32, #tpu.memory_space<vmem>>, vector<1x128xf32>
      %c0_20 = arith.constant 0 : index
      %c0_21 = arith.constant 0 : index
      %25 = vector.load %arg6[%c0_20, %c0_21] : memref<1x128xf32, #tpu.memory_space<vmem>>, vector<1x128xf32>
      %cst_22 = arith.constant dense<0.000000e+00> : vector<16xf32>
      %26 = vector.multi_reduction <add>, %23, %cst_22 [1] : vector<16x128xf32> to vector<16xf32>
      %27 = vector.shape_cast %26 : vector<16xf32> to vector<16x1xf32>
      %cst_23 = arith.constant 7.812500e-03 : f32
      %28 = vector.broadcast %cst_23 : f32 to vector<16x1xf32>
      %29 = arith.mulf %27, %28 : vector<16x1xf32>
      %30 = arith.mulf %23, %23 : vector<16x128xf32>
      %cst_24 = arith.constant dense<0.000000e+00> : vector<16xf32>
      %31 = vector.multi_reduction <add>, %30, %cst_24 [1] : vector<16x128xf32> to vector<16xf32>
      %32 = vector.shape_cast %31 : vector<16xf32> to vector<16x1xf32>
      %cst_25 = arith.constant 7.812500e-03 : f32
      %33 = vector.broadcast %cst_25 : f32 to vector<16x1xf32>
      %34 = arith.mulf %32, %33 : vector<16x1xf32>
      %35 = arith.mulf %29, %29 : vector<16x1xf32>
      %36 = arith.subf %34, %35 : vector<16x1xf32>
      %37 = vector.broadcast %29 : vector<16x1xf32> to vector<16x128xf32>
      %38 = arith.subf %23, %37 : vector<16x128xf32>
      %cst_26 = arith.constant 9.99999996E-13 : f32
      %39 = vector.broadcast %cst_26 : f32 to vector<16x1xf32>
      %40 = arith.addf %36, %39 : vector<16x1xf32>
      %41 = math.rsqrt %40 : vector<16x1xf32>
      %42 = vector.broadcast %41 : vector<16x1xf32> to vector<16x128xf32>
      %43 = arith.mulf %38, %42 : vector<16x128xf32>
      %44 = vector.broadcast %24 : vector<1x128xf32> to vector<16x128xf32>
      %45 = arith.mulf %43, %44 : vector<16x128xf32>
      %46 = vector.broadcast %25 : vector<1x128xf32> to vector<16x128xf32>
      %47 = arith.addf %45, %46 : vector<16x128xf32>
      %48 = arith.truncf %47 : vector<16x128xf32> to vector<16x128xbf16>
      %c0_27 = arith.constant 0 : index
      %c0_28 = arith.constant 0 : index
      %49 = vector.load %arg10[%c0_27, %c0_28] : memref<16x128xbf16, #tpu.memory_space<vmem>>, vector<16x128xbf16>
      tpu.vector_store %arg10[%c0_27, %c0_28], %48 {strides = array<i32>} : memref<16x128xbf16, #tpu.memory_space<vmem>>, vector<16x128xbf16>,
    } else {
    }
    %c0 = arith.constant 0 : index
    %c0_1 = arith.constant 0 : index
    %3 = vector.load %arg10[%c0, %c0_1] : memref<16x128xbf16, #tpu.memory_space<vmem>>, vector<16x128xbf16>
    %c0_2 = arith.constant 0 : index
    %c0_3 = arith.constant 0 : index
    %4 = vector.load %arg7[%c0_2, %c0_3] : memref<128x512xbf16, #tpu.memory_space<vmem>>, vector<128x512xbf16>
    %cst = arith.constant dense<0.000000e+00> : vector<16x512xf32>
    %5 = tpu.matmul %3, %4, %cst {dimension_numbers = #tpu.dot_dimension_numbers<[1], [0], [0], [1], [0, 0, 1, 1], [], []>} : vector<16x128xbf16>, vector<128x512xbf16>, vector<16x512xf32> -> vector<16x512xf32>
    %c0_4 = arith.constant 0 : index
    %c0_5 = arith.constant 0 : index
    %6 = vector.load %arg8[%c0_4, %c0_5] : memref<1x512xf32, #tpu.memory_space<vmem>>, vector<1x512xf32>
    %7 = vector.broadcast %6 : vector<1x512xf32> to vector<16x512xf32>
    %8 = arith.addf %5, %7 : vector<16x512xf32>
    %c0_6 = arith.constant 0 : index
    %c0_7 = arith.constant 0 : index
    %9 = vector.load %arg9[%c0_6, %c0_7] : memref<16x512xf32, #tpu.memory_space<vmem>>, vector<16x512xf32>
    tpu.vector_store %arg9[%c0_6, %c0_7], %8 {strides = array<i32>} : memref<16x512xf32, #tpu.memory_space<vmem>>, vector<16x512xf32>,
    return
  }
  func.func @transform_0(%arg0: i32, %arg1: i32) -> (i32, i32) {
    %c0_i32 = arith.constant 0 : i32
    %c0_i32_0 = arith.constant 0 : i32
    return %arg0, %c0_i32 : i32, i32
  }
  func.func @transform_1(%arg0: i32, %arg1: i32) -> (i32, i32) {
    %c0_i32 = arith.constant 0 : i32
    %c0_i32_0 = arith.constant 0 : i32
    %c0_i32_1 = arith.constant 0 : i32
    return %c0_i32, %c0_i32_0 : i32, i32
  }
  func.func @transform_2(%arg0: i32, %arg1: i32) -> (i32, i32) {
    %c0_i32 = arith.constant 0 : i32
    %c0_i32_0 = arith.constant 0 : i32
    %c0_i32_1 = arith.constant 0 : i32
    return %c0_i32, %c0_i32_0 : i32, i32
  }
  func.func @transform_3(%arg0: i32, %arg1: i32) -> (i32, i32) {
    %c0_i32 = arith.constant 0 : i32
    %c0_i32_0 = arith.constant 0 : i32
    %c0_i32_1 = arith.constant 0 : i32
    return %c0_i32, %c0_i32_0 : i32, i32
  }
  func.func @transform_4(%arg0: i32, %arg1: i32) -> (i32, i32) {
    %c0_i32 = arith.constant 0 : i32
    %c0_i32_0 = arith.constant 0 : i32
    %c0_i32_1 = arith.constant 0 : i32
    return %c0_i32, %c0_i32_0 : i32, i32
  }
  func.func @transform_5(%arg0: i32, %arg1: i32) -> (i32, i32) {
    %c0_i32 = arith.constant 0 : i32
    %c0_i32_0 = arith.constant 0 : i32
    return %c0_i32, %arg1 : i32, i32
  }
  func.func @transform_6(%arg0: i32, %arg1: i32) -> (i32, i32) {
    %c0_i32 = arith.constant 0 : i32
    %c0_i32_0 = arith.constant 0 : i32
    return %c0_i32, %arg1 : i32, i32
  }
  func.func @transform_7(%arg0: i32, %arg1: i32) -> (i32, i32) {
    %c0_i32 = arith.constant 0 : i32
    return %arg0, %arg1 : i32, i32
  }
}

module attributes {stable_mosaic.version = 11 : i64} {
  func.func @_encoder_kernel(%arg0: i32, %arg1: i32, %arg2: memref<16x128xf32, #tpu.memory_space<vmem>>, %arg3: memref<1x1x16xf32, #tpu.memory_space<vmem>>, %arg4: memref<1x128xf32, #tpu.memory_space<vmem>>, %arg5: memref<1x128xf32, #tpu.memory_space<vmem>>, %arg6: memref<1x128x128xbf16, #tpu.memory_space<vmem>>, %arg7: memref<1x1x128xf32, #tpu.memory_space<vmem>>, %arg8: memref<1x128x128xbf16, #tpu.memory_space<vmem>>, %arg9: memref<1x1x128xf32, #tpu.memory_space<vmem>>, %arg10: memref<1x1x128xf32, #tpu.memory_space<vmem>>, %arg11: memref<1x1x128xf32, #tpu.memory_space<vmem>>, %arg12: memref<1x128x512xbf16, #tpu.memory_space<vmem>>, %arg13: memref<1x1x512xf32, #tpu.memory_space<vmem>>, %arg14: memref<1x512x128xbf16, #tpu.memory_space<vmem>>, %arg15: memref<1x1x128xf32, #tpu.memory_space<vmem>>, %arg16: memref<1x1x128xf32, #tpu.memory_space<vmem>>, %arg17: memref<1x1x128xf32, #tpu.memory_space<vmem>>, %arg18: memref<16x128xbf16, #tpu.memory_space<vmem>>, %arg19: memref<16x128xf32, #tpu.memory_space<vmem>>) attributes {dimension_semantics = [#tpu.dimension_semantics<parallel>, #tpu.dimension_semantics<arbitrary>], iteration_bounds = array<i64: 2, 2>, scalar_prefetch = 0 : i64, scratch_operands = 1 : i64, tpu.core_type = #tpu.core_type<tc>, window_params = [{transform_indices = @transform_0, window_bounds = array<i64: 16, 128>}, {transform_indices = @transform_1, window_bounds = array<i64: 1, 1, 16>}, {pipeline_mode = #tpu.pipeline_mode<synchronous>, transform_indices = @transform_2, window_bounds = array<i64: 1, 128>}, {pipeline_mode = #tpu.pipeline_mode<synchronous>, transform_indices = @transform_3, window_bounds = array<i64: 1, 128>}, {transform_indices = @transform_4, window_bounds = array<i64: 1, 128, 128>}, {transform_indices = @transform_5, window_bounds = array<i64: 1, 1, 128>}, {transform_indices = @transform_6, window_bounds = array<i64: 1, 128, 128>}, {transform_indices = @transform_7, window_bounds = array<i64: 1, 1, 128>}, {transform_indices = @transform_8, window_bounds = array<i64: 1, 1, 128>}, {transform_indices = @transform_9, window_bounds = array<i64: 1, 1, 128>}, {transform_indices = @transform_10, window_bounds = array<i64: 1, 128, 512>}, {transform_indices = @transform_11, window_bounds = array<i64: 1, 1, 512>}, {transform_indices = @transform_12, window_bounds = array<i64: 1, 512, 128>}, {transform_indices = @transform_13, window_bounds = array<i64: 1, 1, 128>}, {transform_indices = @transform_14, window_bounds = array<i64: 1, 1, 128>}, {transform_indices = @transform_15, window_bounds = array<i64: 1, 1, 128>}, {transform_indices = @transform_16, window_bounds = array<i64: 16, 128>}]} {
    %c0_i32 = arith.constant 0 : i32
    %0 = arith.cmpi eq, %arg1, %c0_i32 : i32
    %1 = arith.extui %0 : i1 to i32
    %c0_i32_0 = arith.constant 0 : i32
    %2 = arith.cmpi ne, %1, %c0_i32_0 : i32
    scf.if %2 {
      %c0_65 = arith.constant 0 : index
      %c0_66 = arith.constant 0 : index
      %141 = vector.load %arg2[%c0_65, %c0_66] : memref<16x128xf32, #tpu.memory_space<vmem>>, vector<16x128xf32>
      %c0_67 = arith.constant 0 : index
      %c0_68 = arith.constant 0 : index
      %142 = vector.load %arg4[%c0_67, %c0_68] : memref<1x128xf32, #tpu.memory_space<vmem>>, vector<1x128xf32>
      %c0_69 = arith.constant 0 : index
      %c0_70 = arith.constant 0 : index
      %143 = vector.load %arg5[%c0_69, %c0_70] : memref<1x128xf32, #tpu.memory_space<vmem>>, vector<1x128xf32>
      %cst_71 = arith.constant dense<0.000000e+00> : vector<16xf32>
      %144 = vector.multi_reduction <add>, %141, %cst_71 [1] : vector<16x128xf32> to vector<16xf32>
      %145 = vector.shape_cast %144 : vector<16xf32> to vector<16x1xf32>
      %cst_72 = arith.constant 7.812500e-03 : f32
      %146 = vector.broadcast %cst_72 : f32 to vector<16x1xf32>
      %147 = arith.mulf %145, %146 : vector<16x1xf32>
      %148 = arith.mulf %141, %141 : vector<16x128xf32>
      %cst_73 = arith.constant dense<0.000000e+00> : vector<16xf32>
      %149 = vector.multi_reduction <add>, %148, %cst_73 [1] : vector<16x128xf32> to vector<16xf32>
      %150 = vector.shape_cast %149 : vector<16xf32> to vector<16x1xf32>
      %cst_74 = arith.constant 7.812500e-03 : f32
      %151 = vector.broadcast %cst_74 : f32 to vector<16x1xf32>
      %152 = arith.mulf %150, %151 : vector<16x1xf32>
      %153 = arith.mulf %147, %147 : vector<16x1xf32>
      %154 = arith.subf %152, %153 : vector<16x1xf32>
      %155 = vector.broadcast %147 : vector<16x1xf32> to vector<16x128xf32>
      %156 = arith.subf %141, %155 : vector<16x128xf32>
      %cst_75 = arith.constant 9.99999996E-13 : f32
      %157 = vector.broadcast %cst_75 : f32 to vector<16x1xf32>
      %158 = arith.addf %154, %157 : vector<16x1xf32>
      %159 = math.rsqrt %158 : vector<16x1xf32>
      %160 = vector.broadcast %159 : vector<16x1xf32> to vector<16x128xf32>
      %161 = arith.mulf %156, %160 : vector<16x128xf32>
      %162 = vector.broadcast %142 : vector<1x128xf32> to vector<16x128xf32>
      %163 = arith.mulf %161, %162 : vector<16x128xf32>
      %164 = vector.broadcast %143 : vector<1x128xf32> to vector<16x128xf32>
      %165 = arith.addf %163, %164 : vector<16x128xf32>
      %c0_76 = arith.constant 0 : index
      %c0_77 = arith.constant 0 : index
      %166 = vector.load %arg19[%c0_76, %c0_77] : memref<16x128xf32, #tpu.memory_space<vmem>>, vector<16x128xf32>
      tpu.vector_store %arg19[%c0_76, %c0_77], %165 {strides = array<i32>} : memref<16x128xf32, #tpu.memory_space<vmem>>, vector<16x128xf32>,
    } else {
    }
    %c0 = arith.constant 0 : index
    %c0_1 = arith.constant 0 : index
    %3 = vector.load %arg19[%c0, %c0_1] : memref<16x128xf32, #tpu.memory_space<vmem>>, vector<16x128xf32>
    %c0_2 = arith.constant 0 : index
    %c0_3 = arith.constant 0 : index
    %c0_4 = arith.constant 0 : index
    %4 = vector.load %arg3[%c0_2, %c0_3, %c0_4] : memref<1x1x16xf32, #tpu.memory_space<vmem>>, vector<1x1x16xf32>
    %5 = arith.truncf %3 : vector<16x128xf32> to vector<16x128xbf16>
    %c0_5 = arith.constant 0 : index
    %c0_6 = arith.constant 0 : index
    %c0_7 = arith.constant 0 : index
    %6 = vector.load %arg6[%c0_5, %c0_6, %c0_7] : memref<1x128x128xbf16, #tpu.memory_space<vmem>>, vector<1x128x128xbf16>
    %7 = vector.shape_cast %6 : vector<1x128x128xbf16> to vector<128x128xbf16>
    %cst = arith.constant dense<0.000000e+00> : vector<16x128xf32>
    %8 = tpu.matmul %5, %7, %cst {dimension_numbers = #tpu.dot_dimension_numbers<[1], [0], [0], [1], [0, 0, 1, 1], [], []>} : vector<16x128xbf16>, vector<128x128xbf16>, vector<16x128xf32> -> vector<16x128xf32>
    %c0_8 = arith.constant 0 : index
    %c0_9 = arith.constant 0 : index
    %c0_10 = arith.constant 0 : index
    %9 = vector.load %arg7[%c0_8, %c0_9, %c0_10] : memref<1x1x128xf32, #tpu.memory_space<vmem>>, vector<1x1x128xf32>
    %10 = vector.shape_cast %9 : vector<1x1x128xf32> to vector<1x128xf32>
    %11 = vector.broadcast %10 : vector<1x128xf32> to vector<16x128xf32>
    %12 = arith.addf %8, %11 : vector<16x128xf32>
    %13 = arith.truncf %12 : vector<16x128xf32> to vector<16x128xbf16>
    %14 = vector.extract_strided_slice %13 {offsets = [0, 0], sizes = [16, 32], strides = [1, 1]} : vector<16x128xbf16> to vector<16x32xbf16>
    %15 = vector.extract_strided_slice %13 {offsets = [0, 32], sizes = [16, 32], strides = [1, 1]} : vector<16x128xbf16> to vector<16x32xbf16>
    %16 = vector.extract_strided_slice %13 {offsets = [0, 64], sizes = [16, 32], strides = [1, 1]} : vector<16x128xbf16> to vector<16x32xbf16>
    %17 = vector.extract_strided_slice %13 {offsets = [0, 96], sizes = [16, 32], strides = [1, 1]} : vector<16x128xbf16> to vector<16x32xbf16>
    %18 = vector.shape_cast %14 : vector<16x32xbf16> to vector<1x16x32xbf16>
    %19 = vector.shape_cast %15 : vector<16x32xbf16> to vector<1x16x32xbf16>
    %20 = vector.shape_cast %16 : vector<16x32xbf16> to vector<1x16x32xbf16>
    %21 = vector.shape_cast %17 : vector<16x32xbf16> to vector<1x16x32xbf16>
    %22 = tpu.concatenate %18, %19, %20, %21 in 0 : vector<1x16x32xbf16>, vector<1x16x32xbf16>, vector<1x16x32xbf16>, vector<1x16x32xbf16> -> vector<4x16x32xbf16>
    "tpu.trace_start"() <{level = 10 : i32, message = "hqd,hkd->hqk"}> : () -> ()
    %cst_11 = arith.constant dense<0.000000e+00> : vector<4x16x16xf32>
    %23 = tpu.matmul %22, %22, %cst_11 {dimension_numbers = #tpu.dot_dimension_numbers<[2], [2], [1], [1], [0, 0, 0, 1, 1, 1], [0], [0]>} : vector<4x16x32xbf16>, vector<4x16x32xbf16>, vector<4x16x16xf32> -> vector<4x16x16xf32>
    "tpu.trace_stop"() : () -> ()
    %cst_12 = arith.constant 0.176776692 : f32
    %24 = vector.broadcast %cst_12 : f32 to vector<4x16x16xf32>
    %25 = arith.mulf %23, %24 : vector<4x16x16xf32>
    %26 = vector.shape_cast %4 : vector<1x1x16xf32> to vector<1x16xf32>
    %27 = vector.shape_cast %26 : vector<1x16xf32> to vector<1x1x16xf32>
    %28 = vector.broadcast %27 : vector<1x1x16xf32> to vector<4x16x16xf32>
    %29 = arith.addf %25, %28 : vector<4x16x16xf32>
    %cst_13 = arith.constant dense<0xFF800000> : vector<4x16xf32>
    %30 = vector.multi_reduction <maximumf>, %29, %cst_13 [2] : vector<4x16x16xf32> to vector<4x16xf32>
    %31 = vector.shape_cast %30 : vector<4x16xf32> to vector<4x16x1xf32>
    %32 = vector.broadcast %31 : vector<4x16x1xf32> to vector<4x16x16xf32>
    %33 = arith.subf %29, %32 : vector<4x16x16xf32>
    %34 = math.exp %33 : vector<4x16x16xf32>
    %cst_14 = arith.constant dense<0.000000e+00> : vector<4x16xf32>
    %35 = vector.multi_reduction <add>, %34, %cst_14 [2] : vector<4x16x16xf32> to vector<4x16xf32>
    %36 = vector.shape_cast %35 : vector<4x16xf32> to vector<4x16x1xf32>
    %37 = tpu.reciprocal %36 {approx = true} : vector<4x16x1xf32> -> vector<4x16x1xf32>
    %38 = vector.broadcast %37 : vector<4x16x1xf32> to vector<4x16x16xf32>
    %39 = arith.mulf %34, %38 : vector<4x16x16xf32>
    %40 = arith.truncf %39 : vector<4x16x16xf32> to vector<4x16x16xbf16>
    "tpu.trace_start"() <{level = 10 : i32, message = "hqk,hkd->hqd"}> : () -> ()
    %cst_15 = arith.constant dense<0.000000e+00> : vector<4x16x32xf32>
    %41 = tpu.matmul %40, %22, %cst_15 {dimension_numbers = #tpu.dot_dimension_numbers<[2], [1], [1], [2], [0, 0, 0, 1, 1, 2], [0], [0]>} : vector<4x16x16xbf16>, vector<4x16x32xbf16>, vector<4x16x32xf32> -> vector<4x16x32xf32>
    "tpu.trace_stop"() : () -> ()
    %42 = vector.extract_strided_slice %41 {offsets = [0, 0, 0], sizes = [1, 16, 32], strides = [1, 1, 1]} : vector<4x16x32xf32> to vector<1x16x32xf32>
    %43 = vector.shape_cast %42 : vector<1x16x32xf32> to vector<16x32xf32>
    %44 = vector.extract_strided_slice %41 {offsets = [1, 0, 0], sizes = [1, 16, 32], strides = [1, 1, 1]} : vector<4x16x32xf32> to vector<1x16x32xf32>
    %45 = vector.shape_cast %44 : vector<1x16x32xf32> to vector<16x32xf32>
    %46 = vector.extract_strided_slice %41 {offsets = [2, 0, 0], sizes = [1, 16, 32], strides = [1, 1, 1]} : vector<4x16x32xf32> to vector<1x16x32xf32>
    %47 = vector.shape_cast %46 : vector<1x16x32xf32> to vector<16x32xf32>
    %48 = vector.extract_strided_slice %41 {offsets = [3, 0, 0], sizes = [1, 16, 32], strides = [1, 1, 1]} : vector<4x16x32xf32> to vector<1x16x32xf32>
    %49 = vector.shape_cast %48 : vector<1x16x32xf32> to vector<16x32xf32>
    %50 = tpu.concatenate %43, %45, %47, %49 in 1 : vector<16x32xf32>, vector<16x32xf32>, vector<16x32xf32>, vector<16x32xf32> -> vector<16x128xf32>
    %51 = arith.truncf %50 : vector<16x128xf32> to vector<16x128xbf16>
    %c0_16 = arith.constant 0 : index
    %c0_17 = arith.constant 0 : index
    %c0_18 = arith.constant 0 : index
    %52 = vector.load %arg8[%c0_16, %c0_17, %c0_18] : memref<1x128x128xbf16, #tpu.memory_space<vmem>>, vector<1x128x128xbf16>
    %53 = vector.shape_cast %52 : vector<1x128x128xbf16> to vector<128x128xbf16>
    %cst_19 = arith.constant dense<0.000000e+00> : vector<16x128xf32>
    %54 = tpu.matmul %51, %53, %cst_19 {dimension_numbers = #tpu.dot_dimension_numbers<[1], [0], [0], [1], [0, 0, 1, 1], [], []>} : vector<16x128xbf16>, vector<128x128xbf16>, vector<16x128xf32> -> vector<16x128xf32>
    %c0_20 = arith.constant 0 : index
    %c0_21 = arith.constant 0 : index
    %c0_22 = arith.constant 0 : index
    %55 = vector.load %arg9[%c0_20, %c0_21, %c0_22] : memref<1x1x128xf32, #tpu.memory_space<vmem>>, vector<1x1x128xf32>
    %56 = vector.shape_cast %55 : vector<1x1x128xf32> to vector<1x128xf32>
    %57 = vector.broadcast %56 : vector<1x128xf32> to vector<16x128xf32>
    %58 = arith.addf %54, %57 : vector<16x128xf32>
    %59 = arith.addf %58, %3 : vector<16x128xf32>
    %c0_23 = arith.constant 0 : index
    %c0_24 = arith.constant 0 : index
    %c0_25 = arith.constant 0 : index
    %60 = vector.load %arg10[%c0_23, %c0_24, %c0_25] : memref<1x1x128xf32, #tpu.memory_space<vmem>>, vector<1x1x128xf32>
    %61 = vector.shape_cast %60 : vector<1x1x128xf32> to vector<1x128xf32>
    %c0_26 = arith.constant 0 : index
    %c0_27 = arith.constant 0 : index
    %c0_28 = arith.constant 0 : index
    %62 = vector.load %arg11[%c0_26, %c0_27, %c0_28] : memref<1x1x128xf32, #tpu.memory_space<vmem>>, vector<1x1x128xf32>
    %63 = vector.shape_cast %62 : vector<1x1x128xf32> to vector<1x128xf32>
    %cst_29 = arith.constant dense<0.000000e+00> : vector<16xf32>
    %64 = vector.multi_reduction <add>, %59, %cst_29 [1] : vector<16x128xf32> to vector<16xf32>
    %65 = vector.shape_cast %64 : vector<16xf32> to vector<16x1xf32>
    %cst_30 = arith.constant 7.812500e-03 : f32
    %66 = vector.broadcast %cst_30 : f32 to vector<16x1xf32>
    %67 = arith.mulf %65, %66 : vector<16x1xf32>
    %68 = arith.mulf %59, %59 : vector<16x128xf32>
    %cst_31 = arith.constant dense<0.000000e+00> : vector<16xf32>
    %69 = vector.multi_reduction <add>, %68, %cst_31 [1] : vector<16x128xf32> to vector<16xf32>
    %70 = vector.shape_cast %69 : vector<16xf32> to vector<16x1xf32>
    %cst_32 = arith.constant 7.812500e-03 : f32
    %71 = vector.broadcast %cst_32 : f32 to vector<16x1xf32>
    %72 = arith.mulf %70, %71 : vector<16x1xf32>
    %73 = arith.mulf %67, %67 : vector<16x1xf32>
    %74 = arith.subf %72, %73 : vector<16x1xf32>
    %75 = vector.broadcast %67 : vector<16x1xf32> to vector<16x128xf32>
    %76 = arith.subf %59, %75 : vector<16x128xf32>
    %cst_33 = arith.constant 9.99999996E-13 : f32
    %77 = vector.broadcast %cst_33 : f32 to vector<16x1xf32>
    %78 = arith.addf %74, %77 : vector<16x1xf32>
    %79 = math.rsqrt %78 : vector<16x1xf32>
    %80 = vector.broadcast %79 : vector<16x1xf32> to vector<16x128xf32>
    %81 = arith.mulf %76, %80 : vector<16x128xf32>
    %82 = vector.broadcast %61 : vector<1x128xf32> to vector<16x128xf32>
    %83 = arith.mulf %81, %82 : vector<16x128xf32>
    %84 = vector.broadcast %63 : vector<1x128xf32> to vector<16x128xf32>
    %85 = arith.addf %83, %84 : vector<16x128xf32>
    %86 = arith.truncf %85 : vector<16x128xf32> to vector<16x128xbf16>
    %c0_34 = arith.constant 0 : index
    %c0_35 = arith.constant 0 : index
    %c0_36 = arith.constant 0 : index
    %87 = vector.load %arg12[%c0_34, %c0_35, %c0_36] : memref<1x128x512xbf16, #tpu.memory_space<vmem>>, vector<1x128x512xbf16>
    %88 = vector.shape_cast %87 : vector<1x128x512xbf16> to vector<128x512xbf16>
    %cst_37 = arith.constant dense<0.000000e+00> : vector<16x512xf32>
    %89 = tpu.matmul %86, %88, %cst_37 {dimension_numbers = #tpu.dot_dimension_numbers<[1], [0], [0], [1], [0, 0, 1, 1], [], []>} : vector<16x128xbf16>, vector<128x512xbf16>, vector<16x512xf32> -> vector<16x512xf32>
    %c0_38 = arith.constant 0 : index
    %c0_39 = arith.constant 0 : index
    %c0_40 = arith.constant 0 : index
    %90 = vector.load %arg13[%c0_38, %c0_39, %c0_40] : memref<1x1x512xf32, #tpu.memory_space<vmem>>, vector<1x1x512xf32>
    %91 = vector.shape_cast %90 : vector<1x1x512xf32> to vector<1x512xf32>
    %92 = vector.broadcast %91 : vector<1x512xf32> to vector<16x512xf32>
    %93 = arith.addf %89, %92 : vector<16x512xf32>
    %cst_41 = arith.constant 5.000000e-01 : f32
    %94 = vector.broadcast %cst_41 : f32 to vector<16x512xf32>
    %95 = arith.mulf %93, %94 : vector<16x512xf32>
    %cst_42 = arith.constant 1.41421354 : f32
    %96 = vector.broadcast %cst_42 : f32 to vector<16x512xf32>
    %97 = arith.divf %93, %96 : vector<16x512xf32>
    %98 = math.erf %97 : vector<16x512xf32>
    %cst_43 = arith.constant 1.000000e+00 : f32
    %99 = vector.broadcast %cst_43 : f32 to vector<16x512xf32>
    %100 = arith.addf %99, %98 : vector<16x512xf32>
    %101 = arith.mulf %95, %100 : vector<16x512xf32>
    %102 = arith.truncf %101 : vector<16x512xf32> to vector<16x512xbf16>
    %c0_44 = arith.constant 0 : index
    %c0_45 = arith.constant 0 : index
    %c0_46 = arith.constant 0 : index
    %103 = vector.load %arg14[%c0_44, %c0_45, %c0_46] : memref<1x512x128xbf16, #tpu.memory_space<vmem>>, vector<1x512x128xbf16>
    %104 = vector.shape_cast %103 : vector<1x512x128xbf16> to vector<512x128xbf16>
    %cst_47 = arith.constant dense<0.000000e+00> : vector<16x128xf32>
    %105 = tpu.matmul %102, %104, %cst_47 {dimension_numbers = #tpu.dot_dimension_numbers<[1], [0], [0], [1], [0, 0, 1, 1], [], []>} : vector<16x512xbf16>, vector<512x128xbf16>, vector<16x128xf32> -> vector<16x128xf32>
    %c0_48 = arith.constant 0 : index
    %c0_49 = arith.constant 0 : index
    %c0_50 = arith.constant 0 : index
    %106 = vector.load %arg15[%c0_48, %c0_49, %c0_50] : memref<1x1x128xf32, #tpu.memory_space<vmem>>, vector<1x1x128xf32>
    %107 = vector.shape_cast %106 : vector<1x1x128xf32> to vector<1x128xf32>
    %108 = vector.broadcast %107 : vector<1x128xf32> to vector<16x128xf32>
    %109 = arith.addf %105, %108 : vector<16x128xf32>
    %110 = arith.addf %109, %85 : vector<16x128xf32>
    %c0_51 = arith.constant 0 : index
    %c0_52 = arith.constant 0 : index
    %c0_53 = arith.constant 0 : index
    %111 = vector.load %arg16[%c0_51, %c0_52, %c0_53] : memref<1x1x128xf32, #tpu.memory_space<vmem>>, vector<1x1x128xf32>
    %112 = vector.shape_cast %111 : vector<1x1x128xf32> to vector<1x128xf32>
    %c0_54 = arith.constant 0 : index
    %c0_55 = arith.constant 0 : index
    %c0_56 = arith.constant 0 : index
    %113 = vector.load %arg17[%c0_54, %c0_55, %c0_56] : memref<1x1x128xf32, #tpu.memory_space<vmem>>, vector<1x1x128xf32>
    %114 = vector.shape_cast %113 : vector<1x1x128xf32> to vector<1x128xf32>
    %cst_57 = arith.constant dense<0.000000e+00> : vector<16xf32>
    %115 = vector.multi_reduction <add>, %110, %cst_57 [1] : vector<16x128xf32> to vector<16xf32>
    %116 = vector.shape_cast %115 : vector<16xf32> to vector<16x1xf32>
    %cst_58 = arith.constant 7.812500e-03 : f32
    %117 = vector.broadcast %cst_58 : f32 to vector<16x1xf32>
    %118 = arith.mulf %116, %117 : vector<16x1xf32>
    %119 = arith.mulf %110, %110 : vector<16x128xf32>
    %cst_59 = arith.constant dense<0.000000e+00> : vector<16xf32>
    %120 = vector.multi_reduction <add>, %119, %cst_59 [1] : vector<16x128xf32> to vector<16xf32>
    %121 = vector.shape_cast %120 : vector<16xf32> to vector<16x1xf32>
    %cst_60 = arith.constant 7.812500e-03 : f32
    %122 = vector.broadcast %cst_60 : f32 to vector<16x1xf32>
    %123 = arith.mulf %121, %122 : vector<16x1xf32>
    %124 = arith.mulf %118, %118 : vector<16x1xf32>
    %125 = arith.subf %123, %124 : vector<16x1xf32>
    %126 = vector.broadcast %118 : vector<16x1xf32> to vector<16x128xf32>
    %127 = arith.subf %110, %126 : vector<16x128xf32>
    %cst_61 = arith.constant 9.99999996E-13 : f32
    %128 = vector.broadcast %cst_61 : f32 to vector<16x1xf32>
    %129 = arith.addf %125, %128 : vector<16x1xf32>
    %130 = math.rsqrt %129 : vector<16x1xf32>
    %131 = vector.broadcast %130 : vector<16x1xf32> to vector<16x128xf32>
    %132 = arith.mulf %127, %131 : vector<16x128xf32>
    %133 = vector.broadcast %112 : vector<1x128xf32> to vector<16x128xf32>
    %134 = arith.mulf %132, %133 : vector<16x128xf32>
    %135 = vector.broadcast %114 : vector<1x128xf32> to vector<16x128xf32>
    %136 = arith.addf %134, %135 : vector<16x128xf32>
    %c0_62 = arith.constant 0 : index
    %c0_63 = arith.constant 0 : index
    %137 = vector.load %arg19[%c0_62, %c0_63] : memref<16x128xf32, #tpu.memory_space<vmem>>, vector<16x128xf32>
    tpu.vector_store %arg19[%c0_62, %c0_63], %136 {strides = array<i32>} : memref<16x128xf32, #tpu.memory_space<vmem>>, vector<16x128xf32>,
    %c1_i32 = arith.constant 1 : i32
    %138 = arith.cmpi eq, %arg1, %c1_i32 : i32
    %139 = arith.extui %138 : i1 to i32
    %c0_i32_64 = arith.constant 0 : i32
    %140 = arith.cmpi ne, %139, %c0_i32_64 : i32
    scf.if %140 {
      %141 = arith.truncf %136 : vector<16x128xf32> to vector<16x128xbf16>
      %c0_65 = arith.constant 0 : index
      %c0_66 = arith.constant 0 : index
      %142 = vector.load %arg18[%c0_65, %c0_66] : memref<16x128xbf16, #tpu.memory_space<vmem>>, vector<16x128xbf16>
      tpu.vector_store %arg18[%c0_65, %c0_66], %141 {strides = array<i32>} : memref<16x128xbf16, #tpu.memory_space<vmem>>, vector<16x128xbf16>,
    } else {
    }
    return
  }
  func.func @transform_0(%arg0: i32, %arg1: i32) -> (i32, i32) {
    %c0_i32 = arith.constant 0 : i32
    %c0_i32_0 = arith.constant 0 : i32
    return %arg0, %c0_i32 : i32, i32
  }
  func.func @transform_1(%arg0: i32, %arg1: i32) -> (i32, i32, i32) {
    %c0_i32 = arith.constant 0 : i32
    %c0_i32_0 = arith.constant 0 : i32
    %c0_i32_1 = arith.constant 0 : i32
    return %arg0, %c0_i32, %c0_i32_0 : i32, i32, i32
  }
  func.func @transform_2(%arg0: i32, %arg1: i32) -> (i32, i32) {
    %c0_i32 = arith.constant 0 : i32
    %c0_i32_0 = arith.constant 0 : i32
    %c0_i32_1 = arith.constant 0 : i32
    return %c0_i32, %c0_i32_0 : i32, i32
  }
  func.func @transform_3(%arg0: i32, %arg1: i32) -> (i32, i32) {
    %c0_i32 = arith.constant 0 : i32
    %c0_i32_0 = arith.constant 0 : i32
    %c0_i32_1 = arith.constant 0 : i32
    return %c0_i32, %c0_i32_0 : i32, i32
  }
  func.func @transform_4(%arg0: i32, %arg1: i32) -> (i32, i32, i32) {
    %c0_i32 = arith.constant 0 : i32
    %c0_i32_0 = arith.constant 0 : i32
    %c0_i32_1 = arith.constant 0 : i32
    return %arg1, %c0_i32, %c0_i32_0 : i32, i32, i32
  }
  func.func @transform_5(%arg0: i32, %arg1: i32) -> (i32, i32, i32) {
    %c0_i32 = arith.constant 0 : i32
    %c0_i32_0 = arith.constant 0 : i32
    %c0_i32_1 = arith.constant 0 : i32
    return %arg1, %c0_i32, %c0_i32_0 : i32, i32, i32
  }
  func.func @transform_6(%arg0: i32, %arg1: i32) -> (i32, i32, i32) {
    %c0_i32 = arith.constant 0 : i32
    %c0_i32_0 = arith.constant 0 : i32
    %c0_i32_1 = arith.constant 0 : i32
    return %arg1, %c0_i32, %c0_i32_0 : i32, i32, i32
  }
  func.func @transform_7(%arg0: i32, %arg1: i32) -> (i32, i32, i32) {
    %c0_i32 = arith.constant 0 : i32
    %c0_i32_0 = arith.constant 0 : i32
    %c0_i32_1 = arith.constant 0 : i32
    return %arg1, %c0_i32, %c0_i32_0 : i32, i32, i32
  }
  func.func @transform_8(%arg0: i32, %arg1: i32) -> (i32, i32, i32) {
    %c0_i32 = arith.constant 0 : i32
    %c0_i32_0 = arith.constant 0 : i32
    %c0_i32_1 = arith.constant 0 : i32
    return %arg1, %c0_i32, %c0_i32_0 : i32, i32, i32
  }
  func.func @transform_9(%arg0: i32, %arg1: i32) -> (i32, i32, i32) {
    %c0_i32 = arith.constant 0 : i32
    %c0_i32_0 = arith.constant 0 : i32
    %c0_i32_1 = arith.constant 0 : i32
    return %arg1, %c0_i32, %c0_i32_0 : i32, i32, i32
  }
  func.func @transform_10(%arg0: i32, %arg1: i32) -> (i32, i32, i32) {
    %c0_i32 = arith.constant 0 : i32
    %c0_i32_0 = arith.constant 0 : i32
    %c0_i32_1 = arith.constant 0 : i32
    return %arg1, %c0_i32, %c0_i32_0 : i32, i32, i32
  }
  func.func @transform_11(%arg0: i32, %arg1: i32) -> (i32, i32, i32) {
    %c0_i32 = arith.constant 0 : i32
    %c0_i32_0 = arith.constant 0 : i32
    %c0_i32_1 = arith.constant 0 : i32
    return %arg1, %c0_i32, %c0_i32_0 : i32, i32, i32
  }
  func.func @transform_12(%arg0: i32, %arg1: i32) -> (i32, i32, i32) {
    %c0_i32 = arith.constant 0 : i32
    %c0_i32_0 = arith.constant 0 : i32
    %c0_i32_1 = arith.constant 0 : i32
    return %arg1, %c0_i32, %c0_i32_0 : i32, i32, i32
  }
  func.func @transform_13(%arg0: i32, %arg1: i32) -> (i32, i32, i32) {
    %c0_i32 = arith.constant 0 : i32
    %c0_i32_0 = arith.constant 0 : i32
    %c0_i32_1 = arith.constant 0 : i32
    return %arg1, %c0_i32, %c0_i32_0 : i32, i32, i32
  }
  func.func @transform_14(%arg0: i32, %arg1: i32) -> (i32, i32, i32) {
    %c0_i32 = arith.constant 0 : i32
    %c0_i32_0 = arith.constant 0 : i32
    %c0_i32_1 = arith.constant 0 : i32
    return %arg1, %c0_i32, %c0_i32_0 : i32, i32, i32
  }
  func.func @transform_15(%arg0: i32, %arg1: i32) -> (i32, i32, i32) {
    %c0_i32 = arith.constant 0 : i32
    %c0_i32_0 = arith.constant 0 : i32
    %c0_i32_1 = arith.constant 0 : i32
    return %arg1, %c0_i32, %c0_i32_0 : i32, i32, i32
  }
  func.func @transform_16(%arg0: i32, %arg1: i32) -> (i32, i32) {
    %c0_i32 = arith.constant 0 : i32
    %c0_i32_0 = arith.constant 0 : i32
    return %arg0, %c0_i32 : i32, i32
  }
}

</mosaic_0001>

<bundles_post_ra>
// kernel: bert_for_pretraining.3
= control target key start
LH: loop header
LB: loop body
LE: loop exit
PB: predicated region body
PF: predicated region fallthrough
CT: control target
= control target key end

     0   :  { %12 = vsyncpa [#allocation4], 0  ;;  %s1640_s0 = inlined_call_operand.vmem [shape: bf16[32,128], index: 0, kind: input, shape index: {}]   ;;  %s1641_s1 = inlined_call_operand.vmem [shape: bf16[128,128], index: 1, kind: input, shape index: {}]   ;;  %s1642_s2 = inlined_call_operand.vmem [shape: f32[1,128], index: 2, kind: input, shape index: {}]   ;;  %s1643_s3 = inlined_call_operand.vmem [shape: f32[1,128], index: 3, kind: input, shape index: {}]   ;;  %s1644_s4 = inlined_call_operand.vmem [shape: f32[1,128], index: 4, kind: input, shape index: {}]   ;;  %s1645_s5 = inlined_call_operand.hbm [shape: bf16[128,512], index: 5, kind: input, shape index: {}]   ;;  %s1646_s6 = inlined_call_operand.vmem [shape: f32[1,512], index: 6, kind: input, shape index: {}]   ;;  %s1647_s7 = inlined_call_operand.hbm [shape: f32[32,512], index: 7, kind: output, shape index: {}]  }
   0x1   :  { %13 = vsyncpa [#allocation5], 0 }
   0x2   :  { %15 = vsyncpa [#allocation5 + $0x1], 0  ;;  %s1461_s24 = smov 0   ;;  %s1463_s25 = smov 0  }
   0x3   :  { %s1465_s26 = smov 0   ;;  %s1467_s27 = smov 0  }
   0x4   :  { %s1469_s28 = smov 0   ;;  %s1471_s29 = smov 0  }
   0x5 LB: > { %s981_s30 = sadd.s32 4294967295, %s1413_s29   ;;  %s982_s8 = sadd.s32 4294967294, %s1413_s29   ;;  %s1413_s29 = sphi %s1471_s29, %s21_s29   ;;  %s1409_s28 = sphi %s1469_s28, %s1654_s28   ;;  %s1405_s27 = sphi %s1467_s27, %s1653_s27   ;;  %s1401_s26 = sphi %s1465_s26, %s1652_s26   ;;  %s1397_s25 = sphi %s1463_s25, %s1651_s25   ;;  %s1393_s24 = sphi %s1461_s24, %s1650_s24  }
   0x6   : > { %s33_s9 = sadd.s32 1, %s1409_s28  ;;  %s204_s10 = sadd.s32 1, %s1401_s26 }
   0x7   : > { %p35_p0 = scmp.ge.s32.totalorder %s33_s9, 2  ;;  %p214_p1 = scmp.ne.s32.totalorder %s1401_s26, %s1397_s25 }
   0x8   : > { %p215_p2 = scmp.eq.s32.totalorder %s981_s30, 1  ;;  %p220_p3 = scmp.ne.s32.totalorder %s1397_s25, %s1393_s24 }
   0x9   : > { %s1656_s9 = smov (%p35_p0, %s33_s9), 0  ;;  %p221_p5 = scmp.eq.s32.totalorder %s982_s8, 1 }
   0xa   : > { %p1501_p4 = por %p215_p2, %p214_p1  ;;  %s199_s12 = ssub.s32 %s1409_s28, %s1656_s9 }
   0xb   : > { %p983_p6 = scmp.ge.s32.totalorder %s1413_s29, 1  ;;  %p202_p7 = scmp.eq.s32.totalorder %s199_s12, 0 }
   0xc   : > { %p1508_p8 = por %p221_p5, %p220_p3  ;;  %p228_p9 = scmp.lt.s32.totalorder %s1413_s29, 3 }
   0xd   : > { %s1514_s14 = scalar_select %p202_p7, %s1401_s26, %s204_s10  }
   0xe   : > { %p229_p10 = pnand %p983_p6, %p228_p9  ;;  %p1231_p11 = scmp.eq.s32.totalorder %s981_s30, 0 }
   0xf   : > { %s254_s17 = sshll.u32 %s1645_s5, 4  ;;  %s1415_s18 = smov [#allocation3]   ;;  %s255_s17 = int_to_ptr.hbm [resolvable:$true] %s254_s17 }
  0x10   : > { %p1223_p12 = pneg %p229_p10  ;;  %s256_s19 = sshll.u32 %s1415_s18, 4  ;;  %s257_s19 = int_to_ptr.vmem [resolvable:$true] %s256_s19 }
  0x11   : > { %s1416_s20 = smov 256   ;;  %s1417_s21 = smov 16  }
  0x12   : > { %p1224_p13 = pnand %p1231_p11, %p1223_p12  ;;  %289 = sbr.rel (%p229_p10) target bundleno = 548 (0x224), region = 48 }
  0x14   : > { %1226 = dma.hbm_to_vmem [thread:$0]  (!%p1224_p13), %s255_s17, 4096, %s257_s19, [#allocation4], %s1416_s20, %s1416_s20, %s1417_s21  }
  0x17   : > { %1384 = dma.done.wait (%p1231_p11), [#allocation4], 4096  }
  0x18   : > { %1386 = vsyncadd (%p1231_p11), [#allocation4], 4294963200  ;;  %v1176_v0 = vld [vmem:[%s1641_s1 + $0x38] sm:$0xff]  ;;  %v1175_v1 = vld [vmem:[%s1641_s1 + $0x30] sm:$0xff]  ;;  %s990_s17 = sshll.u32 %s1405_s27, 1  ;;  %s323_s23 = sand.u32 1, %s1397_s25  }
  0x19   : > { %420 = vmatpush.bf16.msra.mxu0 %v1176_v0  ;;  %v1174_v2 = vld [vmem:[%s1641_s1 + $0x28] sm:$0xff]  ;;  %v1173_v3 = vld [vmem:[%s1641_s1 + $0x20] sm:$0xff]  ;;  %v1172_v4 = vld [vmem:[%s1641_s1 + $0x18] sm:$0xff]  ;;  %p327_p0 = scmp.lt.s32.totalorder %s990_s17, 3  ;;  %v1418_v9 = vmov 1.4142135  }
  0x1a   : > { %v1171_v5 = vld [vmem:[%s1641_s1 + $0x10] sm:$0xff]  ;;  %v1170_v6 = vld [vmem:[%s1641_s1 + $0x8] sm:$0xff]  ;;  %v1169_v7 = vld [vmem:[%s1641_s1] sm:$0xff]  ;;  %1291 = vrcp.f32 %v1418_v9  ;;  %s989_s10 = sshll.u32 %s323_s23, 6  ;;  %s1211_s15 = sshll.u32 %s1405_s27, 6 }
  0x1b   : > { %s1658_s17 = smov (!%p327_p0, %s990_s17), 3  ;;  %v1288_v15 = vld [vmem:[%s1642_s2] ss:$0 sm:$0xff]  ;;  %s325_s12 = scalar_lea.vmem [#allocation6], %s989_s10 }
  0x1c   : > { %s991_s30 = sshll.u32 %s1658_s17, 2  ;;  %s878_s18 = scalar_lea.hbm %s1647_s7, %s1211_s15 }
  0x1d   : > { %421 = vmatpush.bf16.msra.mxu0 %v1175_v1  ;;  %s330_s16 = scalar_lea.vmem %s1640_s0, %s991_s30  ;;  %s879_s19 = sshll.u32 %s325_s12, 4  ;;  %s880_s19 = int_to_ptr.vmem [resolvable:$true] %s879_s19 }
  0x1e   : > { %v1168_v8 = vld [vmem:[%s330_s16] sm:$0xff]  ;;  %s881_s20 = sshll.u32 %s878_s18, 4  ;;  %s864_s27 = scalar_lea.sflag [#allocation5], %s323_s23  ;;  %s882_s20 = int_to_ptr.hbm [resolvable:$true] %s881_s20 }
  0x1f   : > { %s1345_s21 = sshra.s32 %s882_s20, 4  ;;  %s1351_s10 = scalar_lea.hbm %s1647_s7, 128  ;;  %s1346_s21 = int_to_ptr.hbm [resolvable:$true] %s1345_s21 }
  0x20   : > { %v1292_v10 = vpop.eup %1291  ;;  %s1347_s22 = scalar_lea.hbm %s1346_s21, 64  ;;  %p1352_p5 = scmp.lt.s32.totalorder %s1346_s21, %s1647_s7 }
  0x21   : > { %422 = vmatpush.bf16.msra.mxu0 %v1174_v2  ;;  %v437_v11 = vmul.f32 1.4142135, %v1292_v10  ;;  %vm441_vm0 = vweird.f32 %v1292_v10  ;;  %p1348_p1 = scmp.ne.s32.totalorder %s1346_s21, %s1347_s22  ;;  %p1353_p6 = scmp.lt.s32.totalorder %s1351_s10, %s1347_s22 }
  0x23   : > { %v438_v12 = vsub.f32 1.0, %v437_v11  ;;  %p1349_p2 = pnand %p1348_p1, %p1501_p4  ;;  %p1354_p7 = por %p1353_p6, %p1352_p5 }
  0x25   : > { %423 = vmatpush.bf16.msra.mxu0 %v1173_v3  ;;  %v439_v13 = vmul.f32 %v1292_v10, %v438_v12  ;;  %p1350_p3 = pneg %p1349_p2 }
  0x27   : > { %v440_v14 = vadd.f32 %v1292_v10, %v439_v13  ;;  %p1355_p9 = pnand %p1354_p7, %p1350_p3 }
  0x29   : > { %424 = vmatpush.bf16.msra.mxu0 %v1172_v4  ;;  %v442_v17 = vsel %vm441_vm0, %v1292_v10, %v440_v14 }
  0x2d   : > { %425 = vmatpush.bf16.msra.mxu0 %v1171_v5 }
  0x31   : > { %426 = vmatpush.bf16.msra.mxu0 %v1170_v6 }
  0x35   : > { %427 = vmatpush.bf16.msra.mxu0 %v1169_v7 }
  0x38   : > { %428 = vmatmul.bf16.vlgmr.msra.gmra.mxu0 %v1168_v8 }
  0xb5   : > { %v429_v16 = vpop.f32.mrf.mxu0 }
  0xb6   : > { %v1550_v18 = vadd.f32 %v1288_v15, %v429_v16 }
  0xb8   : > { %v443_v19 = vmul.f32 %v442_v17, %v1550_v18 }
  0xba   : > { %v445_v20 = vmul.f32 %v443_v19, %v443_v19 }
  0xbc   : > { %v446_v21 = vmin.f32 %v445_v20, 16.0 }
  0xbd   : > { %v431_v22 = vpop.f32.mrf.mxu0 }
  0xbe   : > { %v447_v23 = vmul.f32 2.1237322e-06, %v446_v21  ;;  %v458_v24 = vmul.f32 3.8918573e-05, %v446_v21  ;;  %v1553_v25 = vadd.f32 %v1288_v15, %v431_v22 }
  0xc0   : > { %v448_v26 = vadd.f32 0.00028619796, %v447_v23  ;;  %v459_v27 = vadd.f32 0.001143296, %v458_v24  ;;  %v1556_v28 = vmul.f32 %v442_v17, %v1553_v25  ;;  %v434_v24 = vmul.f32 0.5, %v1550_v18 }
  0xc2   : > { %v449_v29 = vmul.f32 %v448_v26, %v446_v21  ;;  %v460_v30 = vmul.f32 %v459_v27, %v446_v21  ;;  %v485_v31 = vmul.f32 %v1556_v28, %v1556_v28 }
  0xc4   : > { %v461_v32 = vadd.f32 0.014752088, %v460_v30  ;;  %v486_v33 = vmin.f32 %v485_v31, 16.0  ;;  %v450_v34 = vadd.f32 0.0036580483, %v449_v29 }
  0xc6   : > { %v462_v35 = vmul.f32 %v461_v32, %v446_v21  ;;  %v487_v36 = vmul.f32 2.1237322e-06, %v486_v33  ;;  %v498_v37 = vmul.f32 3.8918573e-05, %v486_v33  ;;  %v451_v40 = vmul.f32 %v450_v34, %v446_v21 }
  0xc8   : > { %v463_v38 = vadd.f32 0.112945676, %v462_v35  ;;  %v488_v39 = vadd.f32 0.00028619796, %v487_v36  ;;  %v499_v41 = vadd.f32 0.001143296, %v498_v37 }
  0xc9   : > { %v452_v46 = vadd.f32 0.05243302, %v451_v40  ;;  %v435_v35 = vmul.f32 0.5, %v1553_v25  ;;  %v1206_v40 = vld [vmem:[#allocation3 + $0xe4] sm:$0xf] }
  0xca   : > { %v464_v42 = vmul.f32 %v463_v38, %v446_v21  ;;  %v489_v43 = vmul.f32 %v488_v39, %v486_v33  ;;  %v500_v44 = vmul.f32 %v499_v41, %v486_v33  ;;  %v1148_v38 = vld [vmem:[#allocation3 + $0xe0] sm:$0xf]  ;;  %v1208_v39 = vld [vmem:[#allocation3 + $0xec] sm:$0xf0]  ;;  %v1158_v25 = vld [vmem:[#allocation3 + $0xf8] sm:$0xf0] }
  0xcb   : > { %v453_v52 = vmul.f32 %v452_v46, %v446_v21  ;;  %v1149_v41 = vor.u32 %v1208_v39, %v1148_v38  ;;  %v1191_v39 = vld [vmem:[#allocation3 + $0x6c] sm:$0xf] }
  0xcc   : > { %v465_v45 = vadd.f32 0.4994258, %v464_v42  ;;  %v501_v47 = vadd.f32 0.014752088, %v500_v44  ;;  %v490_v49 = vadd.f32 0.0036580483, %v489_v43 }
  0xcd   : > { %v454_v56 = vadd.f32 0.18741608, %v453_v52  ;;  %v1150_v42 = vld [vmem:[#allocation3 + $0xf0] sm:$0xf0]  ;;  %v1156_v43 = vld [vmem:[#allocation3 + $0xe8] sm:$0xf]  ;;  %799 = vmatpush.bf16.msra.mxu1 %v1149_v41 }
  0xce   : > { %v466_v48 = vmul.f32 %v465_v45, %v446_v21  ;;  %v502_v50 = vmul.f32 %v501_v47, %v486_v33  ;;  %v491_v54 = vmul.f32 %v490_v49, %v486_v33  ;;  %v1209_v44 = vld [vmem:[#allocation3 + $0xf4] sm:$0xf0]  ;;  %v1153_v45 = vor.u32 %v1206_v40, %v1150_v42  ;;  %v1207_v47 = vld [vmem:[#allocation3 + $0xec] sm:$0xf]  ;;  %v1132_v49 = vld [vmem:[#allocation3 + $0xc0] sm:$0xf] }
  0xcf   : > { %v455_v61 = vmul.f32 %v454_v56, %v446_v21  ;;  %v1157_v46 = vor.u32 %v1209_v44, %v1156_v43  ;;  %v1094_v40 = vld [vmem:[#allocation3 + $0x78] sm:$0xf0]  ;;  %v1068_v43 = vld [vmem:[#allocation3 + $0x40] sm:$0xf]  ;;  %v1188_v44 = vld [vmem:[#allocation3 + $0x4c] sm:$0xf0] }
  0xd0   : > { %v467_v51 = vadd.f32 1.0, %v466_v48  ;;  %v503_v53 = vadd.f32 0.112945676, %v502_v50  ;;  %v492_v58 = vadd.f32 0.05243302, %v491_v54  ;;  %v1161_v48 = vor.u32 %v1207_v47, %v1158_v25  ;;  %813 = vmatpush.bf16.msra.mxu2 %v1153_v45 }
  0xd1   : > { %v456_v3 = vadd.f32 1.1283791, %v455_v61  ;;  %827 = vmatpush.bf16.msra.mxu3 %v1157_v46  ;;  %v1204_v50 = vld [vmem:[#allocation3 + $0xcc] sm:$0xf0]  ;;  %v1140_v54 = vld [vmem:[#allocation3 + $0xc8] sm:$0xf]  ;;  %v1097_v42 = vor.u32 %v1191_v39, %v1094_v40  ;;  %v1069_v47 = vor.u32 %v1188_v44, %v1068_v43 }
  0xd2   : > { %1293 = vrcp.f32 %v467_v51  ;;  %v504_v55 = vmul.f32 %v503_v53, %v486_v33  ;;  %v493_v0 = vmul.f32 %v492_v58, %v486_v33  ;;  %v479_v2 = vand.u32 2147483648, %v467_v51  ;;  %841 = vmatpush.bf16.msrb.mxu0 %v1161_v48  ;;  %v1134_v53 = vld [vmem:[#allocation3 + $0xd0] sm:$0xf0]  ;;  %v1203_v58 = vld [vmem:[#allocation3 + $0xcc] sm:$0xf] }
  0xd3   : > { %v477_v5 = vand.u32 2147483647, %v467_v51  ;;  %vm473_vm2 = vweird.f32 %v467_v51  ;;  %v457_v10 = vmul.f32 %v456_v3, %v443_v19  ;;  %v1133_v52 = vor.u32 %v1204_v50, %v1132_v49  ;;  %v1116_v61 = vld [vmem:[#allocation3 + $0xa0] sm:$0xf]  ;;  %v1201_v3 = vld [vmem:[#allocation3 + $0xb4] sm:$0xf0] }
  0xd4   : > { %v505_v57 = vadd.f32 0.4994258, %v504_v55  ;;  %v494_v6 = vadd.f32 0.18741608, %v493_v0  ;;  %v480_v8 = vor.u32 1.1754944e-38, %v479_v2 }
  0xd5   : > { %vm478_vm4 = vcmp.eq.f32.partialorder %v477_v5, 8.507059e+37  ;;  %v1205_v55 = vld [vmem:[#allocation3 + $0xd4] sm:$0xf0]  ;;  %800 = vmatpush.bf16.msra.mxu1 %v1133_v52  ;;  %v1124_v2 = vld [vmem:[#allocation3 + $0xa8] sm:$0xf] }
  0xd6   : > { %v506_v59 = vmul.f32 %v505_v57, %v486_v33  ;;  %v495_v13 = vmul.f32 %v494_v6, %v486_v33  ;;  %v1141_v57 = vor.u32 %v1205_v55, %v1140_v54  ;;  %v1125_v5 = vor.u32 %v1201_v3, %v1124_v2  ;;  %v1199_v6 = vld [vmem:[#allocation3 + $0xac] sm:$0xf]  ;;  %v1186_v45 = vld [vmem:[#allocation3 + $0x44] sm:$0xf]  ;;  %v1070_v25 = vld [vmem:[#allocation3 + $0x50] sm:$0xf0] }
  0xd7   : > { %v1076_v48 = vld [vmem:[#allocation3 + $0x48] sm:$0xf]  ;;  %v1189_v49 = vld [vmem:[#allocation3 + $0x54] sm:$0xf0]  ;;  %v1078_v54 = vld [vmem:[#allocation3 + $0x58] sm:$0xf0] }
  0xd8   : > { %v1294_v60 = vpop.eup %1293  ;;  %v507_v63 = vadd.f32 1.0, %v506_v59  ;;  %v496_v21 = vadd.f32 1.1283791, %v495_v13  ;;  %v1142_v59 = vld [vmem:[#allocation3 + $0xd8] sm:$0xf0]  ;;  %828 = vmatpush.bf16.msra.mxu3 %v1141_v57  ;;  %v1077_v52 = vor.u32 %v1189_v49, %v1076_v48 }
  0xd9   : > { %v469_v62 = vmul.f32 %v1294_v60, %v467_v51  ;;  %vm474_vm1 = vweird.f32 %v1294_v60  ;;  %v1202_v51 = vld [vmem:[#allocation3 + $0xc4] sm:$0xf]  ;;  %v1185_v3 = vld [vmem:[#allocation3 + $0x34] sm:$0xf0] }
  0xda   : > { %1295 = vrcp.f32 %v507_v63  ;;  %vm475_vm3 = vmor %vm473_vm2, %vm474_vm1  ;;  %v519_v17 = vand.u32 2147483648, %v507_v63  ;;  %v517_v23 = vand.u32 2147483647, %v507_v63  ;;  %vm513_vm6 = vweird.f32 %v507_v63 }
  0xdb   : > { %v470_v1 = vsub.f32 1.0, %v469_v62  ;;  %v497_v30 = vmul.f32 %v496_v21, %v1556_v28  ;;  %v1137_v56 = vor.u32 %v1202_v51, %v1134_v53  ;;  %v1200_v62 = vld [vmem:[#allocation3 + $0xac] sm:$0xf0]  ;;  %v1197_v21 = vld [vmem:[#allocation3 + $0x94] sm:$0xf0]  ;;  %v1073_v51 = vor.u32 %v1186_v45, %v1070_v25 }
  0xdc   : > { %v520_v19 = vor.u32 1.1754944e-38, %v519_v17  ;;  %vm518_vm8 = vcmp.eq.f32.partialorder %v517_v23, 8.507059e+37  ;;  %v1117_v0 = vor.u32 %v1200_v62, %v1116_v61  ;;  %829 = vmatpush.bf16.msra.mxu3 %v1125_v5  ;;  %v1110_v23 = vld [vmem:[#allocation3 + $0x98] sm:$0xf0]  ;;  %v1187_v53 = vld [vmem:[#allocation3 + $0x4c] sm:$0xf] }
  0xdd   : > { %v471_v4 = vmul.f32 %v1294_v60, %v470_v1  ;;  %814 = vmatpush.bf16.msra.mxu2 %v1137_v56  ;;  %v1118_v1 = vld [vmem:[#allocation3 + $0xb0] sm:$0xf0]  ;;  %v1081_v56 = vor.u32 %v1187_v53, %v1078_v54  ;;  %v1182_v62 = vld [vmem:[#allocation3 + $0x24] sm:$0xf]  ;;  %v1062_v5 = vld [vmem:[#allocation3 + $0x38] sm:$0xf0] }
  0xde   : > { %801 = vmatpush.bf16.msra.mxu1 %v1117_v0  ;;  %v1060_v0 = vld [vmem:[#allocation3 + $0x28] sm:$0xf] }
  0xdf   : > { %v472_v7 = vadd.f32 %v1294_v60, %v471_v4 }
  0xe0   : > { %v1296_v9 = vpop.eup %1295 }
  0xe1   : > { %v476_v11 = vsel %vm475_vm3, %v1294_v60, %v472_v7  ;;  %v509_v14 = vmul.f32 %v1296_v9, %v507_v63  ;;  %vm514_vm5 = vweird.f32 %v1296_v9  ;;  %v1145_v60 = vor.u32 %v1203_v58, %v1142_v59  ;;  %v1198_v63 = vld [vmem:[#allocation3 + $0xa4] sm:$0xf]  ;;  %v1126_v7 = vld [vmem:[#allocation3 + $0xb8] sm:$0xf0]  ;;  %v1052_v59 = vld [vmem:[#allocation3 + $0x20] sm:$0xf] }
  0xe2   : > { %v481_v12 = vsel %vm478_vm4, %v480_v8, %v476_v11  ;;  %vm515_vm7 = vmor %vm513_vm6, %vm514_vm5  ;;  %v1121_v4 = vor.u32 %v1198_v63, %v1118_v1  ;;  %v1129_v8 = vor.u32 %v1199_v6, %v1126_v7  ;;  %v1196_v11 = vld [vmem:[#allocation3 + $0x8c] sm:$0xf0]  ;;  %v1054_v63 = vld [vmem:[#allocation3 + $0x30] sm:$0xf0]  ;;  %v1061_v7 = vor.u32 %v1185_v3, %v1060_v0 }
  0xe3   : > { %v482_v15 = vmul.f32 %v481_v12, %v457_v10  ;;  %v510_v16 = vsub.f32 1.0, %v509_v14  ;;  %842 = vmatpush.bf16.msrb.mxu0 %v1145_v60  ;;  %v1100_v10 = vld [vmem:[#allocation3 + $0x80] sm:$0xf]  ;;  %v1194_v12 = vld [vmem:[#allocation3 + $0x84] sm:$0xf]  ;;  %v1057_v2 = vor.u32 %v1182_v62, %v1054_v63 }
  0xe4   : > { %815 = vmatpush.bf16.msra.mxu2 %v1121_v4  ;;  %v1101_v14 = vor.u32 %v1196_v11, %v1100_v10  ;;  %v1184_v60 = vld [vmem:[#allocation3 + $0x2c] sm:$0xf0]  ;;  %v1183_v4 = vld [vmem:[#allocation3 + $0x2c] sm:$0xf]  ;;  %v1178_v11 = vld [vmem:[#allocation3 + $0x4] sm:$0xf] }
  0xe5   : > { %v1028_v20 = vclamps-f32 %v482_v15, 1.0  ;;  %v511_v22 = vmul.f32 %v1296_v9, %v510_v16  ;;  %v1102_v15 = vld [vmem:[#allocation3 + $0x90] sm:$0xf0]  ;;  %v1108_v16 = vld [vmem:[#allocation3 + $0x88] sm:$0xf]  ;;  %v1053_v61 = vor.u32 %v1184_v60, %v1052_v59 }
  0xe6   : > { %802 = vmatpush.bf16.msra.mxu1 %v1101_v14  ;;  %v1180_v10 = vld [vmem:[#allocation3 + $0xc] sm:$0xf0] }
  0xe7   : > { %v525_v26 = vadd.f32 1.0, %v1028_v20  ;;  %v512_v27 = vadd.f32 %v1296_v9, %v511_v22  ;;  %843 = vmatpush.bf16.msrb.mxu0 %v1129_v8  ;;  %v1105_v20 = vor.u32 %v1194_v12, %v1102_v15  ;;  %v1195_v22 = vld [vmem:[#allocation3 + $0x8c] sm:$0xf]  ;;  %v1065_v8 = vor.u32 %v1183_v4, %v1062_v5 }
  0xe9   : > { %v1561_v29 = vmul.f32 %v525_v26, %v434_v24  ;;  %v516_v31 = vsel %vm515_vm7, %v1296_v9, %v512_v27  ;;  %v1109_v27 = vor.u32 %v1197_v21, %v1108_v16  ;;  %816 = vmatpush.bf16.msra.mxu2 %v1105_v20  ;;  %v1038_v16 = vld [vmem:[#allocation3 + $0x10] sm:$0xf0]  ;;  %v1181_v21 = vld [vmem:[#allocation3 + $0x14] sm:$0xf0] }
  0xea   : > { %v521_v32 = vsel %vm518_vm8, %v520_v19, %v516_v31  ;;  %v1113_v19 = vor.u32 %v1195_v22, %v1110_v23  ;;  %v1192_v31 = vld [vmem:[#allocation3 + $0x6c] sm:$0xf0]  ;;  %v1041_v20 = vor.u32 %v1178_v11, %v1038_v16  ;;  %v1179_v22 = vld [vmem:[#allocation3 + $0xc] sm:$0xf] }
  0xeb   : > { %531 = vadd.xlane.f32.xlu0 %v1561_v29  ;;  %v537_v33 = vmul.f32 %v1561_v29, %v1561_v29  ;;  %v522_v34 = vmul.f32 %v521_v32, %v497_v30  ;;  %v1084_v30 = vld [vmem:[#allocation3 + $0x60] sm:$0xf]  ;;  %v1190_v32 = vld [vmem:[#allocation3 + $0x64] sm:$0xf]  ;;  %830 = vmatpush.bf16.msra.mxu3 %v1109_v27 }
  0xec   : > { %844 = vmatpush.bf16.msrb.mxu0 %v1113_v19 }
  0xed   : > { %539 = vadd.xlane.f32.xlu1 %v537_v33  ;;  %v1029_v18 = vclamps-f32 %v522_v34, 1.0  ;;  %v1085_v34 = vor.u32 %v1192_v31, %v1084_v30 }
  0xef   : > { %v526_v36 = vadd.f32 1.0, %v1029_v18  ;;  %v1086_v18 = vld [vmem:[#allocation3 + $0x70] sm:$0xf0]  ;;  %803 = vmatpush.bf16.msra.mxu1 %v1085_v34 }
  0xf0   : > { %845 = vmatpush.bf16.msrb.mxu0 %v1097_v42 }
  0xf1   : > { %v1568_v37 = vmul.f32 %v526_v36, %v435_v35  ;;  %v1092_v35 = vld [vmem:[#allocation3 + $0x68] sm:$0xf]  ;;  %v1193_v36 = vld [vmem:[#allocation3 + $0x74] sm:$0xf0] }
  0xf2   : > { %v1093_v38 = vor.u32 %v1193_v36, %v1092_v35 }
  0xf3   : > { %533 = vadd.xlane.f32.xlu0 %v1568_v37  ;;  %v538_v28 = vmul.f32 %v1568_v37, %v1568_v37  ;;  %804 = vmatpush.bf16.msra.mxu1 %v1069_v47 }
  0xf4   : > { %831 = vmatpush.bf16.msra.mxu3 %v1093_v38  ;;  %846 = vmatpush.bf16.msrb.mxu0 %v1081_v56  ;;  %v1289_v38 = vld [vmem:[%s1643_s3] ss:$0 sm:$0xff] }
  0xf5   : > { %541 = vadd.xlane.f32.xlu1 %v538_v28  ;;  %v1089_v28 = vor.u32 %v1190_v32, %v1086_v18 }
  0xf7   : > { %817 = vmatpush.bf16.msra.mxu2 %v1089_v28  ;;  %805 = vmatpush.bf16.msra.mxu1 %v1053_v61 }
  0xf8   : > { %832 = vmatpush.bf16.msra.mxu3 %v1077_v52  ;;  %847 = vmatpush.bf16.msrb.mxu0 %v1065_v8 }
  0xfb   : > { %818 = vmatpush.bf16.msra.mxu2 %v1073_v51 }
  0xfc   : > { %833 = vmatpush.bf16.msra.mxu3 %v1061_v7 }
  0xff   : > { %819 = vmatpush.bf16.msra.mxu2 %v1057_v2 }
 0x103   : > { %820 = vmatpush.bf16.msra.mxu2 %v1041_v20 }
 0x15e   : > { %v532_v9 = vpop.xlane.xlu0 %531 }
 0x15f   : > { %v1573_v13 = vmul.f32 0.0078125, %v532_v9  ;;  %v1036_v9 = vld [vmem:[#allocation3] sm:$0xf] }
 0x160   : > { %v540_v17 = vpop.xlane.xlu1 %539  ;;  %v1037_v15 = vor.u32 %v1180_v10, %v1036_v9 }
 0x161   : > { %v545_v24 = vmul.f32 %v1573_v13, %v1573_v13  ;;  %v543_v26 = vmul.f32 0.0078125, %v540_v17  ;;  %v1044_v17 = vld [vmem:[#allocation3 + $0x8] sm:$0xf]  ;;  %v549_v36 = vsub.f32 %v1561_v29, %v1573_v13  ;;  %v1290_v29 = vld [vmem:[%s1644_s4] ss:$0 sm:$0xff] }
 0x162   : > { %806 = vmatpush.bf16.msra.mxu1 %v1037_v15 }
 0x163   : > { %v547_v33 = vsub.f32 %v543_v26, %v545_v24  ;;  %v1045_v24 = vor.u32 %v1181_v21, %v1044_v17  ;;  %v1046_v26 = vld [vmem:[#allocation3 + $0x18] sm:$0xf0] }
 0x164   : > { %v1049_v27 = vor.u32 %v1179_v22, %v1046_v26 }
 0x165   : > { %v1577_v41 = vadd.f32 1e-12, %v547_v33  ;;  %834 = vmatpush.bf16.msra.mxu3 %v1045_v24 }
 0x166   : > { %v534_v46 = vpop.xlane.xlu0 %533  ;;  %848 = vmatpush.bf16.msrb.mxu0 %v1049_v27 }
 0x167   : > { %1297 = vrsqrt.f32 %v1577_v41  ;;  %v1580_v50 = vmul.f32 0.0078125, %v534_v46  ;;  %vm559_vm10 = vweird.f32 %v1577_v41 }
 0x168   : > { %v542_v55 = vpop.xlane.xlu1 %541 }
 0x169   : > { %v546_v57 = vmul.f32 %v1580_v50, %v1580_v50  ;;  %v544_v58 = vmul.f32 0.0078125, %v542_v55  ;;  %v550_v42 = vsub.f32 %v1568_v37, %v1580_v50  ;;  %v623_v37 = vld [vmem:[%s1646_s6] sm:$0xf] }
 0x16a   : > { %v625_v48 = vperm.slane %v623_v37, 0  ;;  %v628_v49 = vperm.slane %v623_v37, 3  ;;  %v626_v54 = vperm.slane %v623_v37, 1  ;;  %v627_v55 = vperm.slane %v623_v37, 2 }
 0x16b   : > { %v548_v1 = vsub.f32 %v544_v58, %v546_v57 }
 0x16d   : > { %v1298_v6 = vpop.eup %1297  ;;  %v552_v14 = vadd.f32 1e-12, %v548_v1 }
 0x16e   : > { %v554_v12 = vmul.f32 %v1298_v6, %v1577_v41  ;;  %vm560_vm9 = vweird.f32 %v1298_v6 }
 0x16f   : > { %1299 = vrsqrt.f32 %v552_v14  ;;  %vm561_vm11 = vmor %vm559_vm10, %vm560_vm9  ;;  %vm569_vm13 = vweird.f32 %v552_v14 }
 0x170   : > { %v555_v23 = vmul.f32 %v1298_v6, %v554_v12 }
 0x172   : > { %v556_v19 = vmul.f32 0.5, %v555_v23 }
 0x174   : > { %v557_v30 = vsub.f32 1.5, %v556_v19 }
 0x175   : > { %v1300_v31 = vpop.eup %1299 }
 0x176   : > { %v558_v32 = vmul.f32 %v1298_v6, %v557_v30  ;;  %v564_v33 = vmul.f32 %v1300_v31, %v552_v14  ;;  %vm570_vm12 = vweird.f32 %v1300_v31 }
 0x177   : > { %vm571_vm14 = vmor %vm569_vm13, %vm570_vm12 }
 0x178   : > { %v565_v34 = vmul.f32 %v1300_v31, %v564_v33  ;;  %v562_v18 = vsel %vm561_vm11, %v1298_v6, %v558_v32 }
 0x179   : > { %v573_v39 = vmul.f32 %v562_v18, %v549_v36 }
 0x17a   : > { %v566_v35 = vmul.f32 0.5, %v565_v34 }
 0x17b   : > { %v578_v13 = vmul.f32 %v1289_v38, %v573_v39 }
 0x17c   : > { %v567_v28 = vsub.f32 1.5, %v566_v35 }
 0x17d   : > { %v583_v45 = vadd.f32 %v1290_v29, %v578_v13 }
 0x17e   : > { %v568_v40 = vmul.f32 %v1300_v31, %v567_v28 }
 0x180   : > { %v572_v41 = vsel %vm571_vm14, %v1300_v31, %v568_v40 }
 0x181   : > { %v574_v43 = vmul.f32 %v572_v41, %v550_v42 }
 0x183   : > { %v579_v44 = vmul.f32 %v1289_v38, %v574_v43 }
 0x185   : > { %v584_v46 = vadd.f32 %v1290_v29, %v579_v44 }
 0x187   : > { %v1215_v47 = vpack.c.bf16 %v584_v46, %v583_v45 }
 0x189   : > { %1216 = vst [vmem:[#allocation2] sm:$0xff] %v1215_v47  }
 0x190   : > { %v1177_v25 = vld [vmem:[#allocation2] sm:$0xff] }
 0x191   : > { %807 = vmatmul.bf16.vlgmr.msra.gmra.mxu1 %v1177_v25  ;;  %821 = vmatmul.bf16.vlgmr.msra.gmra.mxu2 %v1177_v25 }
 0x192   : > { %835 = vmatmul.bf16.vlgmr.msra.gmra.mxu3 %v1177_v25  ;;  %849 = vmatmul.bf16.vlgmr.msrb.gmra.mxu0 %v1177_v25 }
 0x20e   : > { %v808_v50 = vpop.f32.mrf.mxu1 }
 0x20f   : > { %v809_v51 = vadd.f32 %v808_v50, %v625_v48  ;;  %v850_v52 = vpop.f32.mrf.mxu0 }
 0x210   : > { %v851_v53 = vadd.f32 %v850_v52, %v628_v49 }
 0x211   : > { %855 = vst [vmem:[%s325_s12] sm:$0xff] %v809_v51 }
 0x212   : > { %858 = vst [vmem:[%s325_s12 + $0x18] sm:$0xff] %v851_v53 }
 0x214   : > { %v822_v56 = vpop.f32.mrf.mxu2 }
 0x215   : > { %v823_v57 = vadd.f32 %v822_v56, %v626_v54  ;;  %v836_v58 = vpop.f32.mrf.mxu3 }
 0x216   : > { %v837_v59 = vadd.f32 %v836_v58, %v627_v55  ;;  %v810_v60 = vpop.f32.mrf.mxu1 }
 0x217   : > { %856 = vst [vmem:[%s325_s12 + $0x8] sm:$0xff] %v823_v57  ;;  %v811_v61 = vadd.f32 %v810_v60, %v625_v48  ;;  %v852_v62 = vpop.f32.mrf.mxu0 }
 0x218   : > { %857 = vst [vmem:[%s325_s12 + $0x10] sm:$0xff] %v837_v59  ;;  %v853_v63 = vadd.f32 %v852_v62, %v628_v49 }
 0x219   : > { %859 = vst [vmem:[%s325_s12 + $0x20] sm:$0xff] %v811_v61 }
 0x21a   : > { %862 = vst [vmem:[%s325_s12 + $0x38] sm:$0xff] %v853_v63 }
 0x21c   : > { %v824_v0 = vpop.f32.mrf.mxu2 }
 0x21d   : > { %v825_v1 = vadd.f32 %v824_v0, %v626_v54  ;;  %v838_v2 = vpop.f32.mrf.mxu3 }
 0x21e   : > { %v839_v3 = vadd.f32 %v838_v2, %v627_v55 }
 0x21f   : > { %860 = vst [vmem:[%s325_s12 + $0x28] sm:$0xff] %v825_v1 }
 0x220   : > { %861 = vst [vmem:[%s325_s12 + $0x30] sm:$0xff] %v839_v3 }
 0x221   : > { %1358 = shalt.err (!%p1355_p9)
}
 0x222   : > { %s1419_s23 = smov 512   ;;  %s1420_s12 = smov 32  }
 0x223   : > { %1221 = dma.vmem_to_hbm [thread:$0]  (%p1501_p4), %s880_s19, 1024, %s882_s20, %s864_s27, %s1419_s23, %s1419_s23, %s1420_s12  }
 0x224 PF: > { %p1233_p10 = scmp.ge.s32.totalorder %s1413_s29, 2  ;;  %s896_s17 = sand.u32 1, %s1393_s24  }
 0x225   : > { %s897_s18 = scalar_lea.sflag [#allocation5], %s896_s17 }
 0x226   : > { %p1228_p11 = pnand %p1233_p10, %p1508_p8 }
 0x228   : > { %p1229_p12 = pneg %p1228_p11 }
 0x22a   : > { %1388 = dma.done.wait (%p1229_p12), %s897_s18, 1024  }
 0x22b   : > { %1390 = vsyncadd (%p1229_p12), %s897_s18, 4294966272  ;;  %s21_s29 = sadd.s32 1, %s1413_s29   ;;  %s1650_s24 = smov %s1397_s25 }
 0x22c   : > { %p18_p13 = scmp.ge.s32.totalorder %s21_s29, 4   ;;  %s1651_s25 = smov %s1401_s26 }
 0x22d   : > { %s1652_s26 = smov %s1514_s14  ;;  %s1653_s27 = smov %s1409_s28 }
 0x22e   : > { %s1654_s28 = smov %s1656_s9  ;;  %20 = sbr.rel (!%p18_p13) target bundleno = 5 (0x5), region = 96 }
 0x233   :  { %903 = vsyncpa [#allocation4], 1 }
 0x234   :  { %905 = vsyncpa [#allocation4 + $0x1], 1 }
 0x235   :  { %906 = vsyncpa [#allocation5], 1 }
 0x236   :  { %908 = vsyncpa [#allocation5 + $0x1], 1 }

// kernel: bert_for_pretraining.2
= control target key start
LH: loop header
LB: loop body
LE: loop exit
PB: predicated region body
PF: predicated region fallthrough
CT: control target
= control target key end

     0   :  { %s4355_s0 = inlined_call_operand.vmem [shape: f32[32,128], index: 0, kind: input, shape index: {}]   ;;  %s4356_s1 = inlined_call_operand.vmem [shape: f32[2,1,16], index: 1, kind: input, shape index: {}]   ;;  %s4357_s2 = inlined_call_operand.vmem [shape: f32[1,128], index: 2, kind: input, shape index: {}]   ;;  %s4358_s3 = inlined_call_operand.vmem [shape: f32[1,128], index: 3, kind: input, shape index: {}]   ;;  %s4359_s4 = inlined_call_operand.hbm [shape: bf16[2,128,128], index: 4, kind: input, shape index: {}]   ;;  %s4360_s5 = inlined_call_operand.vmem [shape: f32[2,1,128], index: 5, kind: input, shape index: {}]   ;;  %s4361_s6 = inlined_call_operand.hbm [shape: bf16[2,128,128], index: 6, kind: input, shape index: {}]   ;;  %s4362_s7 = inlined_call_operand.vmem [shape: f32[2,1,128], index: 7, kind: input, shape index: {}]   ;;  %s4363_s8 = inlined_call_operand.vmem [shape: f32[2,1,128], index: 8, kind: input, shape index: {}]   ;;  %s4364_s9 = inlined_call_operand.vmem [shape: f32[2,1,128], index: 9, kind: input, shape index: {}]   ;;  %s4365_s10 = inlined_call_operand.vmem [shape: bf16[2,128,512], index: 10, kind: input, shape index: {}]   ;;  %s4366_s11 = inlined_call_operand.vmem [shape: f32[2,1,512], index: 11, kind: input, shape index: {}]   ;;  %s4367_s12 = inlined_call_operand.hbm [shape: bf16[2,512,128], index: 12, kind: input, shape index: {}]   ;;  %s4368_s13 = inlined_call_operand.vmem [shape: f32[2,1,128], index: 13, kind: input, shape index: {}]   ;;  %s4369_s14 = inlined_call_operand.vmem [shape: f32[2,1,128], index: 14, kind: input, shape index: {}]   ;;  %s4370_s15 = inlined_call_operand.vmem [shape: f32[2,1,128], index: 15, kind: input, shape index: {}]   ;;  %s4371_s16 = inlined_call_operand.vmem [shape: bf16[32,128], index: 16, kind: output, shape index: {}]  }
   0x1   :  { %4378 = sst [smem:[#allocation17_spill]] %s4355_s0 }
   0x2   :  { %4379 = sst [smem:[#allocation18_spill]] %s4356_s1 }
   0x3   :  { %4380 = sst [smem:[#allocation19_spill]] %s4357_s2 }
   0x4   :  { %4381 = sst [smem:[#allocation20_spill]] %s4358_s3 }
   0x5   :  { %4382 = sst [smem:[#allocation21_spill]] %s4359_s4 }
   0x6   :  { %4383 = sst [smem:[#allocation22_spill]] %s4360_s5 }
   0x7   :  { %4384 = sst [smem:[#allocation23_spill]] %s4361_s6 }
   0x8   :  { %4385 = sst [smem:[#allocation24_spill]] %s4362_s7 }
   0x9   :  { %4386 = sst [smem:[#allocation25_spill]] %s4363_s8 }
   0xa   :  { %4387 = sst [smem:[#allocation26_spill]] %s4364_s9 }
   0xb   :  { %4388 = sst [smem:[#allocation27_spill]] %s4365_s10 }
   0xc   :  { %4389 = sst [smem:[#allocation28_spill]] %s4366_s11 }
   0xd   :  { %4390 = sst [smem:[#allocation29_spill]] %s4367_s12 }
   0xe   :  { %4391 = sst [smem:[#allocation30_spill]] %s4368_s13 }
   0xf   :  { %4392 = sst [smem:[#allocation31_spill]] %s4369_s14 }
  0x10   :  { %4393 = sst [smem:[#allocation32_spill]] %s4370_s15 }
  0x11   :  { %4394 = sst [smem:[#allocation33_spill]] %s4371_s16 }
  0x12   :  { %21 = vsyncpa [#allocation4], 0 }
  0x13   :  { %23 = vsyncpa [#allocation4 + $0x1], 0 }
  0x14   :  { %24 = vsyncpa [#allocation6], 0 }
  0x15   :  { %26 = vsyncpa [#allocation6 + $0x1], 0  ;;  %s3554_s21 = smov 0   ;;  %s3556_s22 = smov 0  }
  0x16   :  { %s3558_s23 = smov 0   ;;  %s3560_s24 = smov 0  }
  0x17   :  { %s3562_s25 = smov 0   ;;  %s3564_s26 = smov 0  }
  0x18   :  { %s3566_s27 = smov 0   ;;  %s3568_s28 = smov 0  }
  0x19 LB: > { %4395 = sst [smem:[#allocation10_spill]] %s3437_s22  ;;  %s4374_s29 = sadd.s32 4294967295, %s3461_s28   ;;  %s3461_s28 = sphi %s3568_s28, %s32_s28   ;;  %s3457_s27 = sphi %s3566_s27, %s4456_s27   ;;  %s3453_s26 = sphi %s3564_s26, %s4455_s26   ;;  %s3449_s25 = sphi %s3562_s25, %s4454_s25   ;;  %s3445_s24 = sphi %s3560_s24, %s4453_s24   ;;  %s3441_s23 = sphi %s3558_s23, %s4452_s23   ;;  %s3437_s22 = sphi %s3556_s22, %s4451_s22   ;;  %s3433_s21 = sphi %s3554_s21, %s4450_s21  }
  0x1a   : > { %4396 = sst [smem:[#allocation11_spill]] %s3441_s23  ;;  %s41_s30 = sadd.s32 1, %s3453_s26 }
  0x1b   : > { %4397 = sst [smem:[#allocation12_spill]] %s3453_s26  ;;  %p42_p0 = scmp.ge.s32.totalorder %s41_s30, 2 }
  0x1c   : > { %4398 = sst [smem:[#allocation13_spill]] %s3457_s27  ;;  %s44_s0 = sadd.s32 1, %s3457_s27 }
  0x1d   : > { %s145_s17 = sadd.s32 1, %s3441_s23  ;;  %p152_p1 = scmp.ne.s32.totalorder %s3441_s23, %s3437_s22 }
  0x1e   : > { %s4458_s30 = smov (%p42_p0, %s41_s30), 0  ;;  %s4460_s0 = smov (!%p42_p0, %s44_s0), %s3457_s27 }
  0x1f   : > { %4399 = sst [smem:[#allocation14_spill]] %s4458_s30  ;;  %s142_s18 = ssub.s32 %s3453_s26, %s4458_s30 }
  0x20   : > { %p153_p2 = scmp.eq.s32.totalorder %s3461_s28, 0  ;;  %p46_p3 = scmp.ge.s32.totalorder %s4460_s0, 2 }
  0x21   : > { %p143_p4 = scmp.eq.s32.totalorder %s142_s18, 0  ;;  %p158_p6 = scmp.ne.s32.totalorder %s3437_s22, %s3433_s21 }
  0x22   : > { %p154_p5 = por %p153_p2, %p152_p1  ;;  %s4462_s0 = smov (%p46_p3, %s4460_s0), 0 }
  0x23   : > { %4400 = sst [smem:[#allocation15_spill]] %s4462_s0  ;;  %p159_p7 = scmp.eq.s32.totalorder %s4374_s29, 0 }
  0x24   : > { %s3608_s19 = scalar_select %p143_p4, %s3441_s23, %s145_s17  }
  0x25   : > { %p3143_p8 = scmp.lt.s32.totalorder %s3461_s28, 4  ;;  %s3614_s20 = sand.u32 1, %s3441_s23  }
  0x26   : > { %4401 = sst [smem:[#allocation16_spill]] %s3608_s19  ;;  %p3616_p9 = por %p159_p7, %p158_p6 }
  0x27   : > { %s2678_s30 = sshll.u32 %s3614_s20, 6  ;;  %s3038_s18 = sshll.u32 %s3453_s26, 6 }
  0x28   : > { %p3622_p10 = pnand %p3143_p8, %p154_p5  ;;  %s543_s17 = sand.u32 1, %s3461_s28  }
  0x29   : > { %s4404_s6 = sld [smem:[#allocation23_spill]]  ;;  %s547_s23 = scalar_lea.vmem [#allocation5], %s2678_s30 }
  0x2a   : > { %s555_s3 = sshll.u32 %s547_s23, 4  ;;  %p2687_p11 = scmp.ge.s32.totalorder %s3461_s28, 1  ;;  %s556_s3 = int_to_ptr.vmem [resolvable:$true] %s555_s3 }
  0x2b   : > { %s544_s15 = scalar_lea.sflag [#allocation6], %s543_s17  ;;  %s3463_s14 = smov 64  }
  0x2c   : > { %s3464_s13 = smov 4   ;;  %p636_p12 = scmp.lt.s32.totalorder %s3461_s28, 5 }
  0x2d   : > { %s4406_s4 = sld [smem:[#allocation21_spill]]  ;;  %s519_s19 = scalar_lea.vmem [#allocation3], %s2678_s30 }
  0x2e   : > { %p3634_p13 = pnand %p2687_p11, %p636_p12  ;;  %s2684_s17 = sshll.u32 %s3614_s20, 8 }
  0x2f   : > { %s552_s29 = scalar_lea.hbm %s4404_s6, %s3038_s18  ;;  %s527_s6 = sshll.u32 %s519_s19, 4  ;;  %s528_s6 = int_to_ptr.vmem [resolvable:$true] %s527_s6 }
  0x30   : > { %s553_s2 = sshll.u32 %s552_s29, 4  ;;  %s516_s9 = scalar_lea.sflag [#allocation4], %s3614_s20  ;;  %s554_s2 = int_to_ptr.hbm [resolvable:$true] %s553_s2 }
  0x31   : > { %3139 = dma.hbm_to_vmem [thread:$0]  (!%p3622_p10), %s554_s2, 1024, %s556_s3, %s544_s15, %s3463_s14, %s3463_s14, %s3464_s13  }
  0x32   : > { %s3040_s2 = sshll.u32 %s3453_s26, 8  ;;  %s4407_s12 = sld [smem:[#allocation29_spill]] }
  0x33   : > { %s524_s29 = scalar_lea.hbm %s4406_s4, %s3038_s18  ;;  %s602_s5 = scalar_lea.vmem [#allocation7], %s2684_s17 }
  0x34   : > { %s525_s10 = sshll.u32 %s524_s29, 4  ;;  %s610_s16 = sshll.u32 %s602_s5, 4  ;;  %s526_s10 = int_to_ptr.hbm [resolvable:$true] %s525_s10  ;;  %s611_s16 = int_to_ptr.vmem [resolvable:$true] %s610_s16 }
  0x35   : > { %3136 = dma.hbm_to_vmem [thread:$0]  (!%p3622_p10), %s526_s10, 1024, %s528_s6, %s516_s9, %s3463_s14, %s3463_s14, %s3464_s13  }
  0x36   : > { %640 = sbr.rel (%p3634_p13) target bundleno = 2030 (0x7ee), region = 84  ;;  %s3654_s30 = sand.u32 (!%p3634_p13), 1, %s3437_s22  }
  0x37   : > { %s2688_s6 = sshll.u32 (!%p3634_p13), %s3654_s30, 6  ;;  %s643_s9 = scalar_lea.sflag (!%p3634_p13), [#allocation4], %s3654_s30 }
  0x38   : > { %s607_s7 = scalar_lea.hbm %s4407_s12, %s3040_s2  ;;  %s3658_s8 = scalar_lea.vmem (!%p3634_p13), [#allocation3], %s2688_s6 }
  0x39   : > { %s608_s1 = sshll.u32 %s607_s7, 4  ;;  %s609_s1 = int_to_ptr.hbm [resolvable:$true] %s608_s1 }
  0x3a   : > { %3142 = dma.hbm_to_vmem [thread:$0]  (!%p3622_p10), %s609_s1, 4096, %s611_s16, %s544_s15, %s3463_s14, %s3463_s14, %s3464_s13  }
  0x3b   : > { %3424 = dma.done.wait (%p3616_p9), %s643_s9, 1024  }
  0x3c   : > { %3426 = vsyncadd (%p3616_p9), %s643_s9, 4294966272  ;;  %s4408_s1 = sadd.s32 4294967295, %s3461_s28   ;;  %s3666_s10 = scalar_lea.vmem [#allocation5], %s2688_s6 }
  0x3d   : > { %s652_s5 = sand.u32 1, %s4408_s1  }
  0x3e   : > { %s653_s7 = scalar_lea.sflag [#allocation6], %s652_s5 }
  0x3f   : > { %3428 = dma.done.wait (%p3616_p9), %s653_s7, 5120  }
  0x40   : > { %3430 = vsyncadd (%p3616_p9), %s653_s7, 4294962176  ;;  %s2690_s11 = sshll.u32 %s3654_s30, 8  ;;  %s2691_s13 = sshll.u32 %s3449_s25, 1 }
  0x41   : > { %p765_p0 = scmp.lt.s32.totalorder %s2691_s13, 3  ;;  %p770_p1 = scmp.lt.s32.totalorder %s3449_s25, 1 }
  0x42   : > { %p773_p2 = scmp.lt.s32.totalorder %s3445_s24, 1  ;;  %s4409_s20 = sld [smem:[#allocation17_spill]] }
  0x43   : > { %s4464_s13 = smov (!%p765_p0, %s2691_s13), 3  ;;  %s4466_s25 = smov (!%p770_p1, %s3449_s25), 1 }
  0x44   : > { %s2692_s14 = sshll.u32 %s4464_s13, 3  ;;  %s2697_s15 = sshll.u32 %s4464_s13, 2 }
  0x45   : > { %s3687_s19 = scalar_select %p773_p2, %s3445_s24, 1 }
  0x46   : > { %s4411_s3 = sld [smem:[#allocation33_spill]]  ;;  %p2698_p3 = scmp.ne.s32.totalorder %s3445_s24, 0 }
  0x47   : > { %s3041_s4 = sshll.u32 %s3687_s19, 8  ;;  %s2695_s12 = sshll.u32 %s3687_s19, 2 }
  0x48   : > { %s768_s18 = scalar_lea.vmem %s4409_s20, %s2692_s14  ;;  %s4416_s26 = sld [smem:[#allocation27_spill]] }
  0x49   : > { %s4417_s1 = sld [smem:[#allocation28_spill]] }
  0x4a   : > { %s4418_s27 = sld [smem:[#allocation30_spill]] }
  0x4b   : > { %s4419_s23 = sld [smem:[#allocation31_spill]] }
  0x4c   : > { %s3692_s30 = scalar_lea.vmem %s4411_s3, %s2697_s15  ;;  %s4420_s16 = sld [smem:[#allocation32_spill]] }
  0x4d   : > { %s3734_s15 = scalar_lea.vmem [#allocation7], %s2690_s11  ;;  %s4422_s29 = sld [smem:[#allocation20_spill]] (!%p2698_p3) }
  0x4e   : > { %s3715_s22 = scalar_lea.vmem %s4416_s26, %s3041_s4  ;;  %813 = sbr.rel (%p2698_p3) target bundleno = 241 (0xf1), region = 100 }
  0x4f   : > { %s3720_s7 = scalar_lea.vmem %s4417_s1, %s2695_s12  ;;  %s4421_s26 = sld [smem:[#allocation19_spill]] (!%p2698_p3) }
  0x50   : > { %s796_s20 = scalar_lea.vmem %s4418_s27, %s3687_s19 }
  0x51   : > { %s799_s17 = scalar_lea.vmem %s4419_s23, %s3687_s19 }
  0x52   : > { %s802_s5 = scalar_lea.vmem %s4420_s16, %s3687_s19 }
  0x53   : > { %v814_v0 = vld [vmem:[%s768_s18] sm:$0xff]  ;;  %v815_v2 = vld [vmem:[%s768_s18 + $0x8] sm:$0xff] }
  0x54   : > { %818 = vadd.xlane.f32.xlu0 %v814_v0  ;;  %v824_v1 = vmul.f32 %v814_v0, %v814_v0  ;;  %v825_v3 = vmul.f32 %v815_v2, %v815_v2  ;;  %v3215_v30 = vld [vmem:[%s4422_s29] ss:$0 sm:$0xff] }
  0x55   : > { %v3214_v27 = vld [vmem:[%s4421_s26] ss:$0 sm:$0xff] }
  0x56   : > { %826 = vadd.xlane.f32.xlu1 %v824_v1 }
  0x5c   : > { %820 = vadd.xlane.f32.xlu0 %v815_v2 }
  0x5e   : > { %828 = vadd.xlane.f32.xlu1 %v825_v3 }
  0xc7   : > { %v819_v4 = vpop.xlane.xlu0 %818 }
  0xc8   : > { %v822_v5 = vmul.f32 0.0078125, %v819_v4 }
  0xc9   : > { %v827_v6 = vpop.xlane.xlu1 %826 }
  0xca   : > { %v832_v7 = vmul.f32 %v822_v5, %v822_v5  ;;  %v830_v8 = vmul.f32 0.0078125, %v827_v6  ;;  %v836_v26 = vsub.f32 %v814_v0, %v822_v5 }
  0xcc   : > { %v834_v9 = vsub.f32 %v830_v8, %v832_v7 }
  0xce   : > { %v838_v10 = vadd.f32 1e-12, %v834_v9 }
  0xcf   : > { %v821_v11 = vpop.xlane.xlu0 %820 }
  0xd0   : > { %3216 = vrsqrt.f32 %v838_v10  ;;  %v823_v12 = vmul.f32 0.0078125, %v821_v11  ;;  %vm846_vm1 = vweird.f32 %v838_v10 }
  0xd1   : > { %v829_v13 = vpop.xlane.xlu1 %828 }
  0xd2   : > { %v833_v14 = vmul.f32 %v823_v12, %v823_v12  ;;  %v831_v15 = vmul.f32 0.0078125, %v829_v13  ;;  %v837_v37 = vsub.f32 %v815_v2, %v823_v12 }
  0xd4   : > { %v835_v16 = vsub.f32 %v831_v15, %v833_v14 }
  0xd6   : > { %v3217_v17 = vpop.eup %3216  ;;  %v839_v18 = vadd.f32 1e-12, %v835_v16 }
  0xd7   : > { %v841_v19 = vmul.f32 %v3217_v17, %v838_v10  ;;  %vm847_vm0 = vweird.f32 %v3217_v17 }
  0xd8   : > { %3218 = vrsqrt.f32 %v839_v18  ;;  %vm848_vm2 = vmor %vm846_vm1, %vm847_vm0  ;;  %vm856_vm4 = vweird.f32 %v839_v18 }
  0xd9   : > { %v842_v20 = vmul.f32 %v3217_v17, %v841_v19 }
  0xdb   : > { %v843_v21 = vmul.f32 0.5, %v842_v20 }
  0xdd   : > { %v844_v22 = vsub.f32 1.5, %v843_v21 }
  0xde   : > { %v3219_v23 = vpop.eup %3218 }
  0xdf   : > { %v845_v24 = vmul.f32 %v3217_v17, %v844_v22  ;;  %v851_v25 = vmul.f32 %v3219_v23, %v839_v18  ;;  %vm857_vm3 = vweird.f32 %v3219_v23 }
  0xe0   : > { %vm858_vm5 = vmor %vm856_vm4, %vm857_vm3 }
  0xe1   : > { %v849_v28 = vsel %vm848_vm2, %v3217_v17, %v845_v24  ;;  %v852_v29 = vmul.f32 %v3219_v23, %v851_v25 }
  0xe2   : > { %v860_v31 = vmul.f32 %v849_v28, %v836_v26 }
  0xe3   : > { %v853_v32 = vmul.f32 0.5, %v852_v29 }
  0xe4   : > { %v865_v33 = vmul.f32 %v3214_v27, %v860_v31 }
  0xe5   : > { %v854_v34 = vsub.f32 1.5, %v853_v32 }
  0xe6   : > { %v870_v35 = vadd.f32 %v3215_v30, %v865_v33 }
  0xe7   : > { %v855_v36 = vmul.f32 %v3219_v23, %v854_v34 }
  0xe8   : > { %872 = vst [vmem:[#allocation2] sm:$0xff] %v870_v35 }
  0xe9   : > { %v859_v38 = vsel %vm858_vm5, %v3219_v23, %v855_v36 }
  0xea   : > { %v861_v39 = vmul.f32 %v859_v38, %v837_v37 }
  0xec   : > { %v866_v40 = vmul.f32 %v3214_v27, %v861_v39 }
  0xee   : > { %v871_v41 = vadd.f32 %v3215_v30, %v866_v40 }
  0xf0   : > { %873 = vst [vmem:[#allocation2 + $0x8] sm:$0xff] %v871_v41 }
  0xf1 PF: > { %v3049_v42 = vld [vmem:[%s3658_s8 + $0x38] sm:$0xff]  ;;  %v3048_v43 = vld [vmem:[%s3658_s8 + $0x30] sm:$0xff]  ;;  %v3047_v44 = vld [vmem:[%s3658_s8 + $0x28] sm:$0xff]  ;;  %s4423_s3 = sld [smem:[#allocation22_spill]]  ;;  %s3465_s9 = smov 64   ;;  %vm979_vm6 = vcmask 261120  }
  0xf2   : > { %946 = vmatpush.bf16.msra.mxu0 %v3049_v42  ;;  %v3046_v45 = vld [vmem:[%s3658_s8 + $0x20] sm:$0xff]  ;;  %v3045_v46 = vld [vmem:[%s3658_s8 + $0x18] sm:$0xff]  ;;  %v3044_v47 = vld [vmem:[%s3658_s8 + $0x10] sm:$0xff]  ;;  %s3467_s1 = smov 96   ;;  %s4425_s27 = sld [smem:[#allocation18_spill]]  ;;  %vm1076_vm7 = vcmask 130048  }
  0xf3   : > { %v3043_v48 = vld [vmem:[%s3658_s8 + $0x8] sm:$0xff]  ;;  %v3042_v49 = vld [vmem:[%s3658_s8] sm:$0xff]  ;;  %v3751_v50 = vld [vmem:[#allocation2] sm:$0xff]  ;;  %s3466_s8 = smov 32   ;;  %vm1291_vm8 = vcmask 523264   ;;  %vm1294_vm9 = vcmask 785408  }
  0xf4   : > { %s4427_s23 = sld [smem:[#allocation24_spill]]  ;;  %p3035_p4 = scmp.ne.s32.totalorder %s3445_s24, 1 }
  0xf5   : > { %s4429_s12 = sld [smem:[#allocation25_spill]] }
  0xf6   : > { %947 = vmatpush.bf16.msra.mxu0 %v3048_v43  ;;  %s4431_s29 = sld [smem:[#allocation26_spill]] }
  0xf7   : > { %v3753_v51 = vld [vmem:[#allocation2 + $0x8] sm:$0xff]  ;;  %s4424_s6 = scalar_lea.vmem %s4423_s3, %s3687_s19 }
  0xf8   : > { %v877_v52 = vpack.c.bf16 %v3753_v51, %v3751_v50  ;;  %v3235_v53 = vld [vmem:[%s4424_s6] ss:$0 sm:$0xff]  ;;  %s4426_s21 = scalar_lea.vmem %s4425_s27, %s4466_s25 }
  0xf9   : > { %v3236_v18 = vld [vmem:[%s4426_s21] ss:$0 sm:$0xff] }
  0xfa   : > { %948 = vmatpush.bf16.msra.mxu0 %v3047_v44  ;;  %s4428_s2 = scalar_lea.vmem %s4427_s23, %s3687_s19 }
  0xfb   : > { %s4430_s26 = scalar_lea.vmem %s4429_s12, %s3687_s19 }
  0xfc   : > { %s4432_s16 = scalar_lea.vmem %s4431_s29, %s3687_s19 }
  0xfe   : > { %949 = vmatpush.bf16.msra.mxu0 %v3046_v45 }
 0x102   : > { %950 = vmatpush.bf16.msra.mxu0 %v3045_v46 }
 0x106   : > { %951 = vmatpush.bf16.msra.mxu0 %v3044_v47 }
 0x10a   : > { %952 = vmatpush.bf16.msra.mxu0 %v3043_v48 }
 0x10e   : > { %953 = vmatpush.bf16.msra.mxu0 %v3042_v49 }
 0x111   : > { %954 = vmatmul.bf16.vlgmr.msra.gmra.mxu0 %v877_v52 }
 0x18e   : > { %v955_v54 = vpop.f32.mrf.mxu0 }
 0x18f   : > { %v956_v55 = vadd.f32 %v3235_v53, %v955_v54 }
 0x191   : > { %v960_v56 = vpack.c.bf16 %v956_v55, %v956_v55 }
 0x193   : > { %968 = vrot.lane.b32.xlu2 %v960_v56, %s3465_s9  ;;  %972 = vrot.lane.b32.xlu1 %v960_v56, %s3466_s8  ;;  %v976_v60 = vunpack.c.l.b16 %v960_v56 }
 0x194   : > { %964 = vrot.lane.b32.xlu0 %v960_v56, %s3467_s1 }
 0x196   : > { %v957_v57 = vpop.f32.mrf.mxu0 }
 0x197   : > { %v958_v58 = vadd.f32 %v3235_v53, %v957_v57 }
 0x199   : > { %v961_v59 = vpack.c.bf16 %v958_v58, %v958_v58 }
 0x19b   : > { %970 = vrot.lane.b32.xlu2 %v961_v59, %s3465_s9  ;;  %974 = vrot.lane.b32.xlu1 %v961_v59, %s3466_s8  ;;  %v977_v61 = vunpack.c.l.b16 %v961_v59 }
 0x19c   : > { %966 = vrot.lane.b32.xlu0 %v961_v59, %s3467_s1 }
 0x19d   : > { %v978_v62 = vpack.c.b16 %v977_v61, %v976_v60 }
 0x19f   : > { %v981_v63 = vsel %vm979_vm6, %v978_v62, 0 }
 0x1a0   : > { %990 = vmatpush.bf16.xpose.msra.mxu1 %v981_v63 }
 0x1a7   : > { %2731 = vmatmul.msk.bf16.vlgmr.msra.gmra.mxu1 %vm979_vm6, %v978_v62 }
 0x1ed   : > { %v969_v0 = vpop.permute.xlu2 %968 }
 0x1ee   : > { %v1017_v2 = vunpack.c.l.b16 %v969_v0 }
 0x1f5   : > { %v971_v1 = vpop.permute.xlu2 %970 }
 0x1f6   : > { %v1018_v3 = vunpack.c.l.b16 %v971_v1 }
 0x1f8   : > { %v1019_v4 = vpack.c.b16 %v1018_v3, %v1017_v2 }
 0x1fa   : > { %v1021_v5 = vsel %vm979_vm6, %v1019_v4, 0 }
 0x1fb   : > { %1030 = vmatpush.bf16.xpose.msrb.mxu0 %v1021_v5 }
 0x202   : > { %2733 = vmatmul.msk.bf16.vlgmr.msrb.gmra.mxu0 %vm979_vm6, %v1019_v4 }
 0x205   : > { %v973_v6 = vpop.permute.xlu1 %972 }
 0x206   : > { %v965_v7 = vpop.permute.xlu0 %964  ;;  %v1037_v9 = vunpack.c.l.b16 %v973_v6 }
 0x207   : > { %v997_v12 = vunpack.c.l.b16 %v965_v7 }
 0x20d   : > { %v975_v8 = vpop.permute.xlu1 %974 }
 0x20e   : > { %v1038_v10 = vunpack.c.l.b16 %v975_v8  ;;  %v967_v11 = vpop.permute.xlu0 %966 }
 0x20f   : > { %v998_v13 = vunpack.c.l.b16 %v967_v11 }
 0x210   : > { %v1039_v14 = vpack.c.b16 %v1038_v10, %v1037_v9 }
 0x211   : > { %v999_v15 = vpack.c.b16 %v998_v13, %v997_v12 }
 0x212   : > { %v1041_v16 = vsel %vm979_vm6, %v1039_v14, 0 }
 0x213   : > { %1212 = vmatpush.bf16.msra.mxu3 %v999_v15  ;;  %v1001_v17 = vsel %vm979_vm6, %v999_v15, 0  ;;  %1050 = vmatpush.bf16.xpose.msrb.mxu1 %v1041_v16 }
 0x214   : > { %1010 = vmatpush.bf16.xpose.msra.mxu2 %v1001_v17 }
 0x21a   : > { %2734 = vmatmul.msk.bf16.vlgmr.msrb.gmra.mxu1 %vm979_vm6, %v1039_v14 }
 0x21b   : > { %1235 = vmatpush.bf16.msra.mxu1 %v1019_v4  ;;  %2732 = vmatmul.msk.bf16.vlgmr.msra.gmra.mxu2 %vm979_vm6, %v999_v15 }
 0x21c   : > { %1189 = vmatpush.bf16.msrb.mxu2 %v978_v62 }
 0x220   : > { %1258 = vmatpush.bf16.msra.mxu2 %v1039_v14 }
 0x224   : > { %v992_v19 = vpop.f32.mrf.mxu1 }
 0x225   : > { %v1057_v20 = vmul.f32 0.17677669, %v992_v19 }
 0x227   : > { %v1068_v21 = vadd.f32 %v3236_v18, %v1057_v20 }
 0x229   : > { %v1077_v22 = vsel %vm1076_vm7, %v1068_v21, -inf }
 0x22a   : > { %1078 = vmax.xlane.f32.xlu0 %v1077_v22 }
 0x22c   : > { %v994_v23 = vpop.f32.mrf.mxu1 }
 0x22d   : > { %v1058_v24 = vmul.f32 0.17677669, %v994_v23 }
 0x22f   : > { %v1069_v25 = vadd.f32 %v3236_v18, %v1058_v24 }
 0x231   : > { %v1080_v26 = vsel %vm1076_vm7, %v1069_v25, -inf }
 0x232   : > { %1081 = vmax.xlane.f32.xlu1 %v1080_v26 }
 0x27f   : > { %v1032_v27 = vpop.f32.mrf.mxu0 }
 0x280   : > { %v1061_v55 = vmul.f32 0.17677669, %v1032_v27 }
 0x282   : > { %v1072_v59 = vadd.f32 %v3236_v18, %v1061_v55 }
 0x284   : > { %v1089_v60 = vsel %vm1076_vm7, %v1072_v59, -inf }
 0x287   : > { %v1034_v30 = vpop.f32.mrf.mxu0 }
 0x288   : > { %v1062_v32 = vmul.f32 0.17677669, %v1034_v30 }
 0x28a   : > { %v1073_v41 = vadd.f32 %v3236_v18, %v1062_v32 }
 0x28c   : > { %v1092_v45 = vsel %vm1076_vm7, %v1073_v41, -inf }
 0x297   : > { %v1052_v28 = vpop.f32.mrf.mxu1 }
 0x298   : > { %v1063_v29 = vmul.f32 0.17677669, %v1052_v28 }
 0x29a   : > { %v1074_v31 = vadd.f32 %v3236_v18, %v1063_v29 }
 0x29c   : > { %v1095_v33 = vsel %vm1076_vm7, %v1074_v31, -inf }
 0x29d   : > { %v1079_v34 = vpop.xlane.xlu0 %1078  ;;  %1096 = vmax.xlane.f32.xlu0 %v1095_v33 }
 0x29e   : > { %v1012_v35 = vpop.f32.mrf.mxu2  ;;  %v1101_v36 = vsub.f32 %v1068_v21, %v1079_v34 }
 0x29f   : > { %v1059_v37 = vmul.f32 0.17677669, %v1012_v35  ;;  %v1054_v38 = vpop.f32.mrf.mxu1 }
 0x2a0   : > { %v1109_v39 = vmul.f32 1.442695, %v1101_v36  ;;  %v1064_v40 = vmul.f32 0.17677669, %v1054_v38 }
 0x2a1   : > { %v1070_v42 = vadd.f32 %v3236_v18, %v1059_v37 }
 0x2a2   : > { %v1075_v43 = vadd.f32 %v3236_v18, %v1064_v40  ;;  %3243 = vpow2.f32 %v1109_v39 }
 0x2a3   : > { %v1083_v44 = vsel %vm1076_vm7, %v1070_v42, -inf }
 0x2a4   : > { %1084 = vmax.xlane.f32.xlu2 %v1083_v44  ;;  %v1098_v46 = vsel %vm1076_vm7, %v1075_v43, -inf }
 0x2a5   : > { %1093 = vmax.xlane.f32.xlu0 %v1092_v45  ;;  %1099 = vmax.xlane.f32.xlu1 %v1098_v46  ;;  %v1082_v49 = vpop.xlane.xlu1 %1081 }
 0x2a6   : > { %v1014_v47 = vpop.f32.mrf.mxu2  ;;  %v1102_v54 = vsub.f32 %v1069_v25, %v1082_v49 }
 0x2a7   : > { %v1060_v48 = vmul.f32 0.17677669, %v1014_v47 }
 0x2a8   : > { %v3244_v52 = vpop.eup %3243  ;;  %v1111_v58 = vmul.f32 1.442695, %v1102_v54 }
 0x2a9   : > { %v1071_v53 = vadd.f32 %v3236_v18, %v1060_v48  ;;  %v1125_v57 = vsel %vm1076_vm7, %v3244_v52, 0.0 }
 0x2aa   : > { %3245 = vpow2.f32 %v1111_v58 }
 0x2ab   : > { %v1086_v56 = vsel %vm1076_vm7, %v1071_v53, -inf }
 0x2ac   : > { %1087 = vmax.xlane.f32.xlu2 %v1086_v56 }
 0x2ad   : > { %1126 = vadd.xlane.f32.xlu1 %v1125_v57 }
 0x2b0   : > { %v3246_v61 = vpop.eup %3245 }
 0x2b1   : > { %v1128_v62 = vsel %vm1076_vm7, %v3246_v61, 0.0 }
 0x2b4   : > { %1090 = vmax.xlane.f32.xlu2 %v1089_v60 }
 0x2bc   : > { %1129 = vadd.xlane.f32.xlu2 %v1128_v62 }
 0x310   : > { %v1097_v63 = vpop.xlane.xlu0 %1096 }
 0x311   : > { %v1107_v0 = vsub.f32 %v1074_v31, %v1097_v63 }
 0x313   : > { %v1121_v1 = vmul.f32 1.442695, %v1107_v0 }
 0x315   : > { %3247 = vpow2.f32 %v1121_v1 }
 0x317   : > { %v1085_v2 = vpop.xlane.xlu2 %1084 }
 0x318   : > { %v1103_v3 = vsub.f32 %v1070_v42, %v1085_v2  ;;  %v1094_v4 = vpop.xlane.xlu0 %1093  ;;  %v1100_v5 = vpop.xlane.xlu1 %1099 }
 0x319   : > { %v1106_v6 = vsub.f32 %v1073_v41, %v1094_v4  ;;  %v1108_v8 = vsub.f32 %v1075_v43, %v1100_v5 }
 0x31a   : > { %v1113_v7 = vmul.f32 1.442695, %v1103_v3 }
 0x31b   : > { %v3248_v9 = vpop.eup %3247  ;;  %v1119_v10 = vmul.f32 1.442695, %v1106_v6  ;;  %v1123_v12 = vmul.f32 1.442695, %v1108_v8 }
 0x31c   : > { %3249 = vpow2.f32 %v1113_v7  ;;  %v1143_v11 = vsel %vm1076_vm7, %v3248_v9, 0.0 }
 0x31d   : > { %3251 = vpow2.f32 %v1119_v10  ;;  %1144 = vadd.xlane.f32.xlu2 %v1143_v11 }
 0x31e   : > { %3253 = vpow2.f32 %v1123_v12 }
 0x31f   : > { %v1088_v13 = vpop.xlane.xlu2 %1087 }
 0x320   : > { %v1104_v14 = vsub.f32 %v1071_v53, %v1088_v13  ;;  %v1127_v20 = vpop.xlane.xlu1 %1126 }
 0x322   : > { %v3250_v15 = vpop.eup %3249  ;;  %v1115_v16 = vmul.f32 1.442695, %v1104_v14 }
 0x323   : > { %v3252_v17 = vpop.eup %3251  ;;  %v1131_v18 = vsel %vm1076_vm7, %v3250_v15, 0.0 }
 0x324   : > { %3255 = vpow2.f32 %v1115_v16  ;;  %1132 = vadd.xlane.f32.xlu0 %v1131_v18  ;;  %v1140_v19 = vsel %vm1076_vm7, %v3252_v17, 0.0  ;;  %v3254_v22 = vpop.eup %3253 }
 0x325   : > { %1141 = vadd.xlane.f32.xlu2 %v1140_v19  ;;  %3257 = vrcp.f32 %v1127_v20  ;;  %v1146_v27 = vsel %vm1076_vm7, %v3254_v22, 0.0 }
 0x327   : > { %v1091_v21 = vpop.xlane.xlu2 %1090 }
 0x328   : > { %v1105_v23 = vsub.f32 %v1072_v59, %v1091_v21 }
 0x32a   : > { %v3256_v24 = vpop.eup %3255  ;;  %v1117_v25 = vmul.f32 1.442695, %v1105_v23  ;;  %v3056_v23 = vld [vmem:[%s3666_s10 + $0x30] sm:$0xff] }
 0x32b   : > { %v1134_v26 = vsel %vm1076_vm7, %v3256_v24, 0.0  ;;  %v3258_v29 = vpop.eup %3257 }
 0x32c   : > { %3259 = vpow2.f32 %v1117_v25  ;;  %1135 = vadd.xlane.f32.xlu1 %v1134_v26  ;;  %1147 = vadd.xlane.f32.xlu0 %v1146_v27  ;;  %v1157_v31 = vmul.f32 %v3258_v29, %v3244_v52  ;;  %v3054_v25 = vld [vmem:[%s3666_s10 + $0x20] sm:$0xff]  ;;  %v3053_v26 = vld [vmem:[%s3666_s10 + $0x18] sm:$0xff]  ;;  %v3052_v27 = vld [vmem:[%s3666_s10 + $0x10] sm:$0xff] }
 0x32d   : > { %v3050_v29 = vld [vmem:[%s3666_s10] sm:$0xff] }
 0x32e   : > { %v1165_v34 = vpack.c.bf16 %v1157_v31, %v1157_v31 }
 0x32f   : > { %v1130_v28 = vpop.xlane.xlu2 %1129 }
 0x330   : > { %3261 = vrcp.f32 %v1130_v28  ;;  %v1175_v37 = vunpack.c.l.b16 %v1165_v34  ;;  %v3051_v28 = vld [vmem:[%s3666_s10 + $0x8] sm:$0xff] }
 0x332   : > { %v3260_v30 = vpop.eup %3259 }
 0x333   : > { %v1137_v32 = vsel %vm1076_vm7, %v3260_v30, 0.0 }
 0x334   : > { %1138 = vadd.xlane.f32.xlu1 %v1137_v32 }
 0x336   : > { %v3262_v33 = vpop.eup %3261 }
 0x337   : > { %v1158_v35 = vmul.f32 %v3262_v33, %v3246_v61 }
 0x339   : > { %v1166_v36 = vpack.c.bf16 %v1158_v35, %v1158_v35 }
 0x33b   : > { %v1176_v38 = vunpack.c.l.b16 %v1166_v36 }
 0x33d   : > { %v1177_v39 = vpack.c.b16 %v1176_v38, %v1175_v37 }
 0x33f   : > { %2735 = vmatmul.msk.bf16.vlgmr.msrb.gmra.mxu2 %vm1076_vm7, %v1177_v39 }
 0x390   : > { %v1145_v40 = vpop.xlane.xlu2 %1144 }
 0x391   : > { %3263 = vrcp.f32 %v1145_v40 }
 0x397   : > { %v1133_v41 = vpop.xlane.xlu0 %1132  ;;  %v3264_v45 = vpop.eup %3263 }
 0x398   : > { %3265 = vrcp.f32 %v1133_v41  ;;  %v1142_v42 = vpop.xlane.xlu2 %1141  ;;  %v1163_v47 = vmul.f32 %v3264_v45, %v3248_v9 }
 0x39a   : > { %v1171_v53 = vpack.c.bf16 %v1163_v47, %v1163_v47 }
 0x39c   : > { %v1244_v61 = vunpack.c.l.b16 %v1171_v53 }
 0x39e   : > { %v3266_v46 = vpop.eup %3265 }
 0x39f   : > { %v1148_v43 = vpop.xlane.xlu0 %1147  ;;  %v1136_v44 = vpop.xlane.xlu1 %1135  ;;  %v1159_v48 = vmul.f32 %v3266_v46, %v3250_v15  ;;  %v3237_v46 = vld [vmem:[%s4428_s2] ss:$0 sm:$0xff] }
 0x3a0   : > { %3267 = vrcp.f32 %v1148_v43 }
 0x3a1   : > { %3269 = vrcp.f32 %v1136_v44  ;;  %v1167_v58 = vpack.c.bf16 %v1159_v48, %v1159_v48 }
 0x3a2   : > { %3271 = vrcp.f32 %v1142_v42 }
 0x3a3   : > { %v1198_v0 = vunpack.c.l.b16 %v1167_v58  ;;  %v3086_v58 = vld [vmem:[%s3715_s22 + $0xe4] sm:$0xf] }
 0x3a6   : > { %v3268_v49 = vpop.eup %3267 }
 0x3a7   : > { %v3270_v52 = vpop.eup %3269  ;;  %v1164_v54 = vmul.f32 %v3268_v49, %v3254_v22  ;;  %v1139_v55 = vpop.xlane.xlu1 %1138  ;;  %v3057_v22 = vld [vmem:[%s3666_s10 + $0x38] sm:$0xff] }
 0x3a8   : > { %v3272_v56 = vpop.eup %3271  ;;  %3273 = vrcp.f32 %v1139_v55  ;;  %v1160_v57 = vmul.f32 %v3270_v52, %v3256_v24  ;;  %1366 = vmatpush.bf16.msrb.mxu3 %v3057_v22  ;;  %v3055_v24 = vld [vmem:[%s3666_s10 + $0x28] sm:$0xff] }
 0x3a9   : > { %v1172_v59 = vpack.c.bf16 %v1164_v54, %v1164_v54  ;;  %v1162_v62 = vmul.f32 %v3272_v56, %v3252_v17  ;;  %v2885_v56 = vld [vmem:[%s3715_s22 + $0xe0] sm:$0xf] }
 0x3aa   : > { %v1168_v60 = vpack.c.bf16 %v1160_v57, %v1160_v57  ;;  %v3088_v57 = vld [vmem:[%s3715_s22 + $0xec] sm:$0xf0] }
 0x3ab   : > { %v1245_v63 = vunpack.c.l.b16 %v1172_v59  ;;  %v1170_v5 = vpack.c.bf16 %v1162_v62, %v1162_v62  ;;  %v2886_v59 = vor.u32 %v3088_v57, %v2885_v56  ;;  %v3089_v62 = vld [vmem:[%s3715_s22 + $0xf4] sm:$0xf0]  ;;  %v3066_v56 = vld [vmem:[%s3715_s22 + $0x44] sm:$0xf] }
 0x3ac   : > { %v1199_v1 = vunpack.c.l.b16 %v1168_v60  ;;  %1367 = vmatpush.bf16.msrb.mxu3 %v3056_v23  ;;  %v2887_v60 = vld [vmem:[%s3715_s22 + $0xf0] sm:$0xf0] }
 0x3ad   : > { %v1246_v2 = vpack.c.b16 %v1245_v63, %v1244_v61  ;;  %v1222_v8 = vunpack.c.l.b16 %v1170_v5  ;;  %v2893_v61 = vld [vmem:[%s3715_s22 + $0xe8] sm:$0xf]  ;;  %1641 = vmatpush.bf16.msra.mxu0 %v2886_v59  ;;  %v3082_v5 = vld [vmem:[%s3715_s22 + $0xc4] sm:$0xf] }
 0x3ae   : > { %v3274_v3 = vpop.eup %3273  ;;  %v1200_v4 = vpack.c.b16 %v1199_v1, %v1198_v0  ;;  %v2894_v63 = vor.u32 %v3089_v62, %v2893_v61  ;;  %v3087_v0 = vld [vmem:[%s3715_s22 + $0xec] sm:$0xf]  ;;  %v2895_v1 = vld [vmem:[%s3715_s22 + $0xf8] sm:$0xf0]  ;;  %v2813_v59 = vld [vmem:[%s3715_s22 + $0x48] sm:$0xf] }
 0x3af   : > { %v1161_v6 = vmul.f32 %v3274_v3, %v3260_v30  ;;  %2738 = vmatmul.msk.bf16.vlgmr.msra.gmra.mxu2 %vm1076_vm7, %v1246_v2  ;;  %v2898_v2 = vor.u32 %v3087_v0, %v2895_v1  ;;  %v2869_v3 = vld [vmem:[%s3715_s22 + $0xc0] sm:$0xf]  ;;  %v2815_v0 = vld [vmem:[%s3715_s22 + $0x58] sm:$0xf0] }
 0x3b0   : > { %2736 = vmatmul.msk.bf16.vlgmr.msra.gmra.mxu3 %vm1076_vm7, %v1200_v4  ;;  %1669 = vmatpush.bf16.msrb.mxu2 %v2894_v63  ;;  %v3084_v4 = vld [vmem:[%s3715_s22 + $0xcc] sm:$0xf0]  ;;  %v3067_v63 = vld [vmem:[%s3715_s22 + $0x4c] sm:$0xf] }
 0x3b1   : > { %v1169_v7 = vpack.c.bf16 %v1161_v6, %v1161_v6  ;;  %1368 = vmatpush.bf16.msrb.mxu3 %v3055_v24  ;;  %v2870_v6 = vor.u32 %v3084_v4, %v2869_v3  ;;  %v3079_v24 = vld [vmem:[%s3715_s22 + $0xac] sm:$0xf]  ;;  %v2789_v4 = vld [vmem:[%s3715_s22 + $0x20] sm:$0xf] }
 0x3b3   : > { %v1221_v9 = vunpack.c.l.b16 %v1169_v7  ;;  %v2871_v7 = vld [vmem:[%s3715_s22 + $0xd0] sm:$0xf0]  ;;  %1642 = vmatpush.bf16.msra.mxu0 %v2870_v6  ;;  %v3062_v6 = vld [vmem:[%s3715_s22 + $0x24] sm:$0xf] }
 0x3b5   : > { %v1223_v10 = vpack.c.b16 %v1222_v8, %v1221_v9  ;;  %1369 = vmatpush.bf16.msrb.mxu3 %v3054_v25  ;;  %v2877_v8 = vld [vmem:[%s3715_s22 + $0xc8] sm:$0xf]  ;;  %v3085_v9 = vld [vmem:[%s3715_s22 + $0xd4] sm:$0xf0]  ;;  %v2863_v25 = vld [vmem:[%s3715_s22 + $0xb8] sm:$0xf0] }
 0x3b7   : > { %2737 = vmatmul.msk.bf16.vlgmr.msra.gmra.mxu1 %vm1076_vm7, %v1223_v10  ;;  %v2874_v10 = vor.u32 %v3082_v5, %v2871_v7  ;;  %v3064_v5 = vld [vmem:[%s3715_s22 + $0x2c] sm:$0xf0] }
 0x3b9   : > { %1370 = vmatpush.bf16.msrb.mxu3 %v3053_v26  ;;  %v2866_v26 = vor.u32 %v3079_v24, %v2863_v25  ;;  %v2781_v24 = vld [vmem:[%s3715_s22 + $0x8] sm:$0xf]  ;;  %v3061_v25 = vld [vmem:[%s3715_s22 + $0x14] sm:$0xf0] }
 0x3bd   : > { %1371 = vmatpush.bf16.msrb.mxu3 %v3052_v27  ;;  %v2837_v27 = vld [vmem:[%s3715_s22 + $0x80] sm:$0xf] }
 0x3c1   : > { %1372 = vmatpush.bf16.msrb.mxu3 %v3051_v28  ;;  %v3076_v28 = vld [vmem:[%s3715_s22 + $0x8c] sm:$0xf0] }
 0x3c2   : > { %v1191_v11 = vpop.f32.mrf.mxu2 }
 0x3c5   : > { %1373 = vmatpush.bf16.msrb.mxu3 %v3050_v29  ;;  %v3074_v29 = vld [vmem:[%s3715_s22 + $0x84] sm:$0xf] }
 0x3c9   : > { %1683 = vmatpush.bf16.msra.mxu3 %v2898_v2  ;;  %v2818_v2 = vor.u32 %v3067_v63, %v2815_v0 }
 0x3ca   : > { %v1193_v12 = vpop.f32.mrf.mxu2 }
 0x432   : > { %v1260_v13 = vpop.f32.mrf.mxu2 }
 0x433   : > { %v1214_v14 = vpop.f32.mrf.mxu3 }
 0x434   : > { %v1237_v15 = vpop.f32.mrf.mxu1 }
 0x43a   : > { %v1262_v16 = vpop.f32.mrf.mxu2 }
 0x43b   : > { %v1216_v17 = vpop.f32.mrf.mxu3  ;;  %v3230_v18 = vpack.i.bf16 %v1262_v16, %v1260_v13  ;;  %v2879_v13 = vld [vmem:[%s3715_s22 + $0xd8] sm:$0xf0]  ;;  %v3080_v16 = vld [vmem:[%s3715_s22 + $0xac] sm:$0xf0] }
 0x43c   : > { %v3220_v19 = vpack.i.bf16 %v1216_v17, %v1214_v14  ;;  %v1239_v20 = vpop.f32.mrf.mxu1  ;;  %v3078_v17 = vld [vmem:[%s3715_s22 + $0xa4] sm:$0xf] }
 0x43d   : > { %v3225_v21 = vpack.i.bf16 %v1239_v20, %v1237_v15  ;;  %3231 = vrot.lane.b32.xlu2 %v3230_v18, %s3467_s1  ;;  %v2853_v15 = vld [vmem:[%s3715_s22 + $0xa0] sm:$0xf]  ;;  %v2861_v20 = vld [vmem:[%s3715_s22 + $0xa8] sm:$0xf] }
 0x43e   : > { %3221 = vrot.lane.b32.xlu0 %v3220_v19, %s3466_s8  ;;  %v2854_v18 = vor.u32 %v3080_v16, %v2853_v15  ;;  %v2855_v19 = vld [vmem:[%s3715_s22 + $0xb0] sm:$0xf0]  ;;  %v2799_v15 = vld [vmem:[%s3715_s22 + $0x38] sm:$0xf0] }
 0x43f   : > { %3226 = vrot.lane.b32.xlu1 %v3225_v21, %s3465_s9  ;;  %v3081_v21 = vld [vmem:[%s3715_s22 + $0xb4] sm:$0xf0]  ;;  %v2858_v22 = vor.u32 %v3078_v17, %v2855_v19  ;;  %v2773_v19 = vld [vmem:[%s3715_s22] sm:$0xf] }
 0x440   : > { %v2862_v23 = vor.u32 %v3081_v21, %v2861_v20  ;;  %1643 = vmatpush.bf16.msra.mxu0 %v2854_v18  ;;  %v3060_v20 = vld [vmem:[%s3715_s22 + $0xc] sm:$0xf0]  ;;  %v3058_v21 = vld [vmem:[%s3715_s22 + $0x4] sm:$0xf] }
 0x497   : > { %v3232_v30 = vpop.permute.xlu2 %3231 }
 0x498   : > { %v3234_v37 = vunpack.i.h.bf16 %v3232_v30  ;;  %v3233_v38 = vunpack.i.l.bf16 %v3232_v30  ;;  %v2838_v30 = vor.u32 %v3076_v28, %v2837_v27  ;;  %v2782_v28 = vor.u32 %v3061_v25, %v2781_v24 }
 0x49a   : > { %1644 = vmatpush.bf16.msra.mxu0 %v2838_v30  ;;  %v2783_v30 = vld [vmem:[%s3715_s22 + $0x18] sm:$0xf0] }
 0x4b0   : > { %v3222_v31 = vpop.permute.xlu0 %3221 }
 0x4b1   : > { %v3224_v32 = vunpack.i.h.bf16 %v3222_v31  ;;  %v3223_v33 = vunpack.i.l.bf16 %v3222_v31  ;;  %v3227_v34 = vpop.permute.xlu1 %3226  ;;  %v2839_v31 = vld [vmem:[%s3715_s22 + $0x90] sm:$0xf0] }
 0x4b2   : > { %v3229_v35 = vunpack.i.h.bf16 %v3227_v34  ;;  %v3228_v36 = vunpack.i.l.bf16 %v3227_v34  ;;  %v2842_v34 = vor.u32 %v3074_v29, %v2839_v31  ;;  %v3059_v29 = vld [vmem:[%s3715_s22 + $0xc] sm:$0xf] }
 0x4b3   : > { %v1290_v39 = vsel %vm979_vm6, %v1193_v12, %v3224_v32  ;;  %v1289_v40 = vsel %vm979_vm6, %v1191_v11, %v3223_v33  ;;  %v2878_v11 = vor.u32 %v3085_v9, %v2877_v8  ;;  %v3083_v12 = vld [vmem:[%s3715_s22 + $0xcc] sm:$0xf]  ;;  %v2845_v32 = vld [vmem:[%s3715_s22 + $0x88] sm:$0xf]  ;;  %v3077_v33 = vld [vmem:[%s3715_s22 + $0x94] sm:$0xf0]  ;;  %v2790_v9 = vor.u32 %v3064_v5, %v2789_v4 }
 0x4b4   : > { %v1293_v41 = vsel %vm1291_vm8, %v1290_v39, %v3229_v35  ;;  %v1292_v42 = vsel %vm1291_vm8, %v1289_v40, %v3228_v36  ;;  %v2882_v14 = vor.u32 %v3083_v12, %v2879_v13  ;;  %v2846_v35 = vor.u32 %v3077_v33, %v2845_v32  ;;  %v3075_v36 = vld [vmem:[%s3715_s22 + $0x8c] sm:$0xf]  ;;  %v2821_v39 = vld [vmem:[%s3715_s22 + $0x60] sm:$0xf]  ;;  %v3072_v40 = vld [vmem:[%s3715_s22 + $0x6c] sm:$0xf0] }
 0x4b5   : > { %v1295_v43 = vsel %vm1294_vm9, %v1292_v42, %v3233_v38  ;;  %v1296_v44 = vsel %vm1294_vm9, %v1293_v41, %v3234_v37  ;;  %1670 = vmatpush.bf16.msrb.mxu2 %v2878_v11  ;;  %v2847_v37 = vld [vmem:[%s3715_s22 + $0x98] sm:$0xf0]  ;;  %v3070_v41 = vld [vmem:[%s3715_s22 + $0x64] sm:$0xf]  ;;  %v2822_v42 = vor.u32 %v3072_v40, %v2821_v39  ;;  %v2797_v11 = vld [vmem:[%s3715_s22 + $0x28] sm:$0xf]  ;;  %v2786_v32 = vor.u32 %v3059_v29, %v2783_v30 }
 0x4b6   : > { %v1297_v45 = vpack.c.bf16 %v1296_v44, %v1295_v43  ;;  %1684 = vmatpush.bf16.msra.mxu3 %v2882_v14  ;;  %v2850_v38 = vor.u32 %v3075_v36, %v2847_v37  ;;  %v2823_v43 = vld [vmem:[%s3715_s22 + $0x70] sm:$0xf0]  ;;  %v2829_v44 = vld [vmem:[%s3715_s22 + $0x68] sm:$0xf]  ;;  %v3065_v13 = vld [vmem:[%s3715_s22 + $0x34] sm:$0xf0] }
 0x4b7   : > { %1645 = vmatpush.bf16.msra.mxu0 %v2822_v42  ;;  %v3063_v14 = vld [vmem:[%s3715_s22 + $0x2c] sm:$0xf]  ;;  %v2798_v17 = vor.u32 %v3065_v13, %v2797_v11  ;;  %v3919_v5 = vld [vmem:[%s3720_s7] sm:$0xf] }
 0x4b8   : > { %1374 = vmatmul.bf16.vlgmr.msrb.gmra.mxu3 %v1297_v45  ;;  %v3073_v45 = vld [vmem:[%s3715_s22 + $0x74] sm:$0xf0]  ;;  %v2802_v18 = vor.u32 %v3063_v14, %v2799_v15 }
 0x4b9   : > { %1671 = vmatpush.bf16.msrb.mxu2 %v2862_v23  ;;  %v2775_v23 = vld [vmem:[%s3715_s22 + $0x10] sm:$0xf0] }
 0x4ba   : > { %1685 = vmatpush.bf16.msra.mxu3 %v2866_v26  ;;  %v2778_v27 = vor.u32 %v3058_v21, %v2775_v23  ;;  %v1476_v23 = vperm.slane %v3919_v5, 3 }
 0x4bd   : > { %1672 = vmatpush.bf16.msrb.mxu2 %v2846_v35 }
 0x4be   : > { %1686 = vmatpush.bf16.msra.mxu3 %v2850_v38 }
 0x53b   : > { %v1375_v47 = vpop.f32.mrf.mxu3 }
 0x53c   : > { %v1376_v48 = vadd.f32 %v3237_v46, %v1375_v47  ;;  %v2830_v47 = vor.u32 %v3073_v45, %v2829_v44 }
 0x53e   : > { %v3820_v49 = vadd.f32 %v1376_v48, %v3751_v50  ;;  %v3071_v48 = vld [vmem:[%s3715_s22 + $0x6c] sm:$0xf]  ;;  %1673 = vmatpush.bf16.msrb.mxu2 %v2830_v47 }
 0x540   : > { %1384 = vadd.xlane.f32.xlu0 %v3820_v49  ;;  %v1390_v52 = vmul.f32 %v3820_v49, %v3820_v49 }
 0x542   : > { %1392 = vadd.xlane.f32.xlu2 %v1390_v52  ;;  %v2831_v52 = vld [vmem:[%s3715_s22 + $0x78] sm:$0xf0] }
 0x543   : > { %v1377_v53 = vpop.f32.mrf.mxu3 }
 0x544   : > { %v1378_v54 = vadd.f32 %v3237_v46, %v1377_v53  ;;  %v2826_v46 = vor.u32 %v3070_v41, %v2823_v43  ;;  %v2834_v53 = vor.u32 %v3071_v48, %v2831_v52 }
 0x546   : > { %v3826_v55 = vadd.f32 %v1378_v54, %v3753_v51  ;;  %v2890_v51 = vor.u32 %v3086_v58, %v2887_v60  ;;  %v2805_v54 = vld [vmem:[%s3715_s22 + $0x40] sm:$0xf]  ;;  %1687 = vmatpush.bf16.msra.mxu3 %v2834_v53  ;;  %v2807_v58 = vld [vmem:[%s3715_s22 + $0x50] sm:$0xf0]  ;;  %v3069_v60 = vld [vmem:[%s3715_s22 + $0x54] sm:$0xf0] }
 0x547   : > { %v2810_v62 = vor.u32 %v3066_v56, %v2807_v58  ;;  %v3238_v56 = vld [vmem:[%s4430_s26] ss:$0 sm:$0xff] }
 0x548   : > { %1386 = vadd.xlane.f32.xlu1 %v3826_v55  ;;  %v1391_v50 = vmul.f32 %v3826_v55, %v3826_v55  ;;  %1655 = vmatpush.bf16.msrb.mxu1 %v2890_v51  ;;  %v2814_v51 = vor.u32 %v3069_v60, %v2813_v59 }
 0x54a   : > { %1394 = vadd.xlane.f32.xlu0 %v1391_v50  ;;  %v3068_v50 = vld [vmem:[%s3715_s22 + $0x4c] sm:$0xf0]  ;;  %1674 = vmatpush.bf16.msrb.mxu2 %v2814_v51 }
 0x54b   : > { %v2806_v57 = vor.u32 %v3068_v50, %v2805_v54  ;;  %1688 = vmatpush.bf16.msra.mxu3 %v2818_v2 }
 0x54c   : > { %1656 = vmatpush.bf16.msrb.mxu1 %v2874_v10  ;;  %v2791_v10 = vld [vmem:[%s3715_s22 + $0x30] sm:$0xf0] }
 0x54d   : > { %1646 = vmatpush.bf16.msra.mxu0 %v2806_v57  ;;  %v2794_v12 = vor.u32 %v3062_v6, %v2791_v10 }
 0x54e   : > { %1675 = vmatpush.bf16.msrb.mxu2 %v2798_v17 }
 0x54f   : > { %1689 = vmatpush.bf16.msra.mxu3 %v2802_v18 }
 0x550   : > { %1657 = vmatpush.bf16.msrb.mxu1 %v2858_v22  ;;  %v2774_v22 = vor.u32 %v3060_v20, %v2773_v19 }
 0x551   : > { %1647 = vmatpush.bf16.msra.mxu0 %v2790_v9 }
 0x552   : > { %1676 = vmatpush.bf16.msrb.mxu2 %v2782_v28 }
 0x553   : > { %1690 = vmatpush.bf16.msra.mxu3 %v2786_v32 }
 0x554   : > { %1658 = vmatpush.bf16.msrb.mxu1 %v2842_v34 }
 0x555   : > { %1648 = vmatpush.bf16.msra.mxu0 %v2774_v22 }
 0x558   : > { %1659 = vmatpush.bf16.msrb.mxu1 %v2826_v46 }
 0x55c   : > { %1660 = vmatpush.bf16.msrb.mxu1 %v2810_v62 }
 0x560   : > { %1661 = vmatpush.bf16.msrb.mxu1 %v2794_v12 }
 0x564   : > { %1662 = vmatpush.bf16.msrb.mxu1 %v2778_v27 }
 0x5b3   : > { %v1385_v61 = vpop.xlane.xlu0 %1384 }
 0x5b4   : > { %v3879_v1 = vmul.f32 0.0078125, %v1385_v61 }
 0x5b5   : > { %v1393_v3 = vpop.xlane.xlu2 %1392 }
 0x5b6   : > { %v1398_v7 = vmul.f32 %v3879_v1, %v3879_v1  ;;  %v1396_v8 = vmul.f32 0.0078125, %v1393_v3  ;;  %v1402_v53 = vsub.f32 %v3820_v49, %v3879_v1  ;;  %v3239_v49 = vld [vmem:[%s4432_s16] ss:$0 sm:$0xff] }
 0x5b8   : > { %v1400_v16 = vsub.f32 %v1396_v8, %v1398_v7  ;;  %v1473_v7 = vperm.slane %v3919_v5, 0  ;;  %v1474_v8 = vperm.slane %v3919_v5, 1 }
 0x5ba   : > { %v1404_v26 = vadd.f32 1e-12, %v1400_v16  ;;  %v1475_v16 = vperm.slane %v3919_v5, 2 }
 0x5bb   : > { %v1387_v31 = vpop.xlane.xlu1 %1386 }
 0x5bc   : > { %3275 = vrsqrt.f32 %v1404_v26  ;;  %v1389_v33 = vmul.f32 0.0078125, %v1387_v31  ;;  %vm1412_vm11 = vweird.f32 %v1404_v26 }
 0x5bd   : > { %v1395_v34 = vpop.xlane.xlu0 %1394 }
 0x5be   : > { %v1399_v35 = vmul.f32 %v1389_v33, %v1389_v33  ;;  %v1397_v36 = vmul.f32 0.0078125, %v1395_v34  ;;  %v1403_v58 = vsub.f32 %v3826_v55, %v1389_v33  ;;  %v3468_v55 = vmov 1.4142135  }
 0x5c0   : > { %v1401_v37 = vsub.f32 %v1397_v36, %v1399_v35 }
 0x5c2   : > { %v3276_v38 = vpop.eup %3275  ;;  %v1405_v39 = vadd.f32 1e-12, %v1401_v37 }
 0x5c3   : > { %v1407_v40 = vmul.f32 %v3276_v38, %v1404_v26  ;;  %vm1413_vm10 = vweird.f32 %v3276_v38 }
 0x5c4   : > { %3277 = vrsqrt.f32 %v1405_v39  ;;  %vm1414_vm12 = vmor %vm1412_vm11, %vm1413_vm10  ;;  %vm1422_vm14 = vweird.f32 %v1405_v39 }
 0x5c5   : > { %v1408_v41 = vmul.f32 %v3276_v38, %v1407_v40  ;;  %3279 = vrcp.f32 %v3468_v55 }
 0x5c7   : > { %v1409_v42 = vmul.f32 0.5, %v1408_v41 }
 0x5c9   : > { %v1410_v43 = vsub.f32 1.5, %v1409_v42 }
 0x5ca   : > { %v3278_v44 = vpop.eup %3277 }
 0x5cb   : > { %v1411_v45 = vmul.f32 %v3276_v38, %v1410_v43  ;;  %v1417_v46 = vmul.f32 %v3278_v44, %v1405_v39  ;;  %vm1423_vm13 = vweird.f32 %v3278_v44  ;;  %v3280_v1 = vpop.eup %3279 }
 0x5cc   : > { %vm1424_vm15 = vmor %vm1422_vm14, %vm1423_vm13  ;;  %v1706_v2 = vmul.f32 1.4142135, %v3280_v1  ;;  %vm1710_vm0 = vweird.f32 %v3280_v1 }
 0x5cd   : > { %v1418_v47 = vmul.f32 %v3278_v44, %v1417_v46  ;;  %v1415_v48 = vsel %vm1414_vm12, %v3276_v38, %v1411_v45 }
 0x5ce   : > { %v1426_v50 = vmul.f32 %v1415_v48, %v1402_v53  ;;  %v1707_v3 = vsub.f32 1.0, %v1706_v2 }
 0x5cf   : > { %v1419_v52 = vmul.f32 0.5, %v1418_v47 }
 0x5d0   : > { %v1431_v61 = vmul.f32 %v3238_v56, %v1426_v50  ;;  %v1708_v4 = vmul.f32 %v3280_v1, %v1707_v3 }
 0x5d1   : > { %v1420_v54 = vsub.f32 1.5, %v1419_v52 }
 0x5d2   : > { %v3912_v51 = vadd.f32 %v3239_v49, %v1431_v61  ;;  %v1709_v6 = vadd.f32 %v3280_v1, %v1708_v4 }
 0x5d3   : > { %v1421_v57 = vmul.f32 %v3278_v44, %v1420_v54 }
 0x5d4   : > { %v3923_v10 = vsel %vm1710_vm0, %v3280_v1, %v1709_v6 }
 0x5d5   : > { %v1425_v59 = vsel %vm1424_vm15, %v3278_v44, %v1421_v57 }
 0x5d6   : > { %v1427_v60 = vmul.f32 %v1425_v59, %v1403_v58 }
 0x5d8   : > { %v1432_v62 = vmul.f32 %v3238_v56, %v1427_v60 }
 0x5da   : > { %v3914_v63 = vadd.f32 %v3239_v49, %v1432_v62 }
 0x5dc   : > { %v1438_v0 = vpack.c.bf16 %v3914_v63, %v3912_v51 }
 0x5de   : > { %1649 = vmatmul.bf16.vlgmr.msra.gmra.mxu0 %v1438_v0  ;;  %1663 = vmatmul.bf16.vlgmr.msrb.gmra.mxu1 %v1438_v0 }
 0x5df   : > { %1677 = vmatmul.bf16.vlgmr.msrb.gmra.mxu2 %v1438_v0  ;;  %1691 = vmatmul.bf16.vlgmr.msra.gmra.mxu3 %v1438_v0 }
 0x65b   : > { %v1650_v9 = vpop.f32.mrf.mxu0  ;;  %v1664_v11 = vpop.f32.mrf.mxu1 }
 0x65c   : > { %v3925_v12 = vadd.f32 %v1650_v9, %v1473_v7  ;;  %v3929_v13 = vadd.f32 %v1664_v11, %v1474_v8 }
 0x65e   : > { %v3933_v14 = vmul.f32 %v3923_v10, %v3925_v12  ;;  %v3937_v15 = vmul.f32 %v3923_v10, %v3929_v13 }
 0x660   : > { %v1720_v17 = vmul.f32 %v3933_v14, %v3933_v14  ;;  %v1760_v18 = vmul.f32 %v3937_v15, %v3937_v15 }
 0x662   : > { %v3944_v19 = vmin.f32 %v1720_v17, 16.0  ;;  %v3946_v20 = vmin.f32 %v1760_v18, 16.0  ;;  %v1678_v21 = vpop.f32.mrf.mxu2  ;;  %v1692_v25 = vpop.f32.mrf.mxu3 }
 0x663   : > { %v3950_v22 = vadd.f32 %v1678_v21, %v1475_v16  ;;  %v3965_v33 = vadd.f32 %v1692_v25, %v1476_v23  ;;  %v1652_v44 = vpop.f32.mrf.mxu0  ;;  %v1666_v3 = vpop.f32.mrf.mxu1 }
 0x664   : > { %v1733_v24 = vmul.f32 3.8918573e-05, %v3944_v19  ;;  %v1722_v26 = vmul.f32 2.1237322e-06, %v3944_v19  ;;  %v1773_v27 = vmul.f32 3.8918573e-05, %v3946_v20  ;;  %v3982_v54 = vadd.f32 %v1652_v44, %v1473_v7 }
 0x665   : > { %v3958_v28 = vmul.f32 %v3923_v10, %v3950_v22  ;;  %v1762_v30 = vmul.f32 2.1237322e-06, %v3946_v20  ;;  %v3973_v41 = vmul.f32 %v3923_v10, %v3965_v33  ;;  %v4002_v17 = vadd.f32 %v1666_v3, %v1474_v8 }
 0x666   : > { %v1734_v29 = vadd.f32 0.001143296, %v1733_v24  ;;  %v1774_v31 = vadd.f32 0.001143296, %v1773_v27  ;;  %v1723_v35 = vadd.f32 0.00028619796, %v1722_v26  ;;  %v3990_v49 = vmul.f32 %v3923_v10, %v3982_v54 }
 0x667   : > { %v1800_v32 = vmul.f32 %v3958_v28, %v3958_v28  ;;  %v1763_v39 = vadd.f32 0.00028619796, %v1762_v30  ;;  %v1840_v53 = vmul.f32 %v3973_v41, %v3973_v41 }
 0x668   : > { %v1735_v34 = vmul.f32 %v1734_v29, %v3944_v19  ;;  %v1775_v36 = vmul.f32 %v1774_v31, %v3946_v20  ;;  %v1724_v45 = vmul.f32 %v1723_v35, %v3944_v19  ;;  %v1880_v7 = vmul.f32 %v3990_v49, %v3990_v49 }
 0x669   : > { %v3969_v37 = vmin.f32 %v1800_v32, 16.0  ;;  %v1764_v48 = vmul.f32 %v1763_v39, %v3946_v20  ;;  %v3986_v61 = vmin.f32 %v1840_v53, 16.0  ;;  %v4013_v31 = vmul.f32 %v3923_v10, %v4002_v17 }
 0x66a   : > { %v1736_v38 = vadd.f32 0.014752088, %v1735_v34  ;;  %v1776_v40 = vadd.f32 0.014752088, %v1775_v36  ;;  %v1725_v57 = vadd.f32 0.0036580483, %v1724_v45 }
 0x66b   : > { %v1813_v43 = vmul.f32 3.8918573e-05, %v3969_v37  ;;  %v1765_v60 = vadd.f32 0.0036580483, %v1764_v48  ;;  %v1802_v62 = vmul.f32 2.1237322e-06, %v3969_v37 }
 0x66c   : > { %v1737_v42 = vmul.f32 %v1736_v38, %v3944_v19  ;;  %v1777_v46 = vmul.f32 %v1776_v40, %v3946_v20  ;;  %v1726_v55 = vmul.f32 %v1725_v57, %v3944_v19  ;;  %v1853_v6 = vmul.f32 3.8918573e-05, %v3986_v61 }
 0x66d   : > { %v1814_v56 = vadd.f32 0.001143296, %v1813_v43  ;;  %v1766_v4 = vmul.f32 %v1765_v60, %v3946_v20  ;;  %v1803_v9 = vadd.f32 0.00028619796, %v1802_v62  ;;  %v4007_v27 = vmin.f32 %v1880_v7, 16.0 }
 0x66e   : > { %v1738_v47 = vadd.f32 0.112945676, %v1737_v42  ;;  %v1778_v52 = vadd.f32 0.112945676, %v1777_v46  ;;  %v1727_v18 = vadd.f32 0.05243302, %v1726_v55  ;;  %v1920_v43 = vmul.f32 %v4013_v31, %v4013_v31 }
 0x66f   : > { %v1815_v0 = vmul.f32 %v1814_v56, %v3969_v37  ;;  %v1767_v25 = vadd.f32 0.05243302, %v1766_v4  ;;  %v1854_v26 = vadd.f32 0.001143296, %v1853_v6  ;;  %v1804_v29 = vmul.f32 %v1803_v9, %v3969_v37  ;;  %v1680_v9 = vpop.f32.mrf.mxu2 }
 0x670   : > { %v1739_v50 = vmul.f32 %v1738_v47, %v3944_v19  ;;  %v1779_v58 = vmul.f32 %v1778_v52, %v3946_v20  ;;  %v1728_v8 = vmul.f32 %v1727_v18, %v3944_v19  ;;  %v1842_v34 = vmul.f32 2.1237322e-06, %v3986_v61 }
 0x671   : > { %v1816_v11 = vadd.f32 0.014752088, %v1815_v0  ;;  %v1768_v35 = vmul.f32 %v1767_v25, %v3946_v20  ;;  %v1855_v36 = vmul.f32 %v1854_v26, %v3986_v61  ;;  %v1882_v38 = vmul.f32 2.1237322e-06, %v4007_v27 }
 0x672   : > { %v1740_v59 = vadd.f32 0.4994258, %v1739_v50  ;;  %v1780_v2 = vadd.f32 0.4994258, %v1779_v58  ;;  %v1893_v39 = vmul.f32 3.8918573e-05, %v4007_v27 }
 0x673   : > { %v1817_v30 = vmul.f32 %v1816_v11, %v3969_v37  ;;  %v1805_v40 = vadd.f32 0.0036580483, %v1804_v29  ;;  %v1729_v44 = vadd.f32 0.18741608, %v1728_v8  ;;  %v1843_v45 = vadd.f32 0.00028619796, %v1842_v34 }
 0x674   : > { %v1741_v1 = vmul.f32 %v1740_v59, %v3944_v19  ;;  %v1781_v24 = vmul.f32 %v1780_v2, %v3946_v20  ;;  %v1769_v46 = vadd.f32 0.18741608, %v1768_v35  ;;  %v1856_v48 = vadd.f32 0.014752088, %v1855_v36 }
 0x675   : > { %v1818_v42 = vadd.f32 0.112945676, %v1817_v30  ;;  %v1883_v52 = vadd.f32 0.00028619796, %v1882_v38  ;;  %v1894_v53 = vadd.f32 0.001143296, %v1893_v39  ;;  %v1806_v50 = vmul.f32 %v1805_v40, %v3969_v37 }
 0x676   : > { %v4004_v21 = vadd.f32 1.0, %v1741_v1  ;;  %v4017_v32 = vadd.f32 1.0, %v1781_v24  ;;  %v4031_v57 = vmin.f32 %v1920_v43, 16.0  ;;  %v1730_v58 = vmul.f32 %v1729_v44, %v3944_v19  ;;  %v3097_v40 = vld [vmem:[%s3734_s15 + $0x38] sm:$0xff] }
 0x677   : > { %v1819_v56 = vmul.f32 %v1818_v42, %v3969_v37  ;;  %v1844_v59 = vmul.f32 %v1843_v45, %v3986_v61  ;;  %v1884_v60 = vmul.f32 %v1883_v52, %v4007_v27  ;;  %v1895_v62 = vmul.f32 %v1894_v53, %v4007_v27  ;;  %v3105_v42 = vld [vmem:[%s3734_s15 + $0x78] sm:$0xff]  ;;  %2320 = vmatpush.bf16.msrb.mxu0 %v3097_v40  ;;  %v3103_v40 = vld [vmem:[%s3734_s15 + $0x68] sm:$0xff] }
 0x678   : > { %3281 = vrcp.f32 %v4004_v21  ;;  %v1770_v1 = vmul.f32 %v1769_v46, %v3946_v20  ;;  %v1857_v2 = vmul.f32 %v1856_v48, %v3986_v61  ;;  %v1807_v6 = vadd.f32 0.05243302, %v1806_v50  ;;  %2334 = vmatpush.bf16.msra.mxu1 %v3105_v42 }
 0x679   : > { %3283 = vrcp.f32 %v4017_v32  ;;  %v1885_v3 = vadd.f32 0.0036580483, %v1884_v60  ;;  %v1896_v4 = vadd.f32 0.014752088, %v1895_v62  ;;  %v1820_v7 = vadd.f32 0.4994258, %v1819_v56 }
 0x67a   : > { %v1922_v19 = vmul.f32 2.1237322e-06, %v4031_v57  ;;  %v4045_v11 = vmul.f32 0.5, %v3925_v12  ;;  %v1731_v18 = vadd.f32 1.1283791, %v1730_v58  ;;  %v4048_v25 = vmul.f32 0.5, %v3982_v54 }
 0x67b   : > { %v1845_v24 = vadd.f32 0.0036580483, %v1844_v59  ;;  %v1886_v29 = vmul.f32 %v1885_v3, %v4007_v27  ;;  %v1897_v30 = vmul.f32 %v1896_v4, %v4007_v27  ;;  %v4054_v8 = vadd.f32 1.1283791, %v1770_v1  ;;  %v3096_v1 = vld [vmem:[%s3734_s15 + $0x30] sm:$0xff] }
 0x67c   : > { %v1858_v34 = vadd.f32 0.112945676, %v1857_v2  ;;  %v1933_v12 = vmul.f32 3.8918573e-05, %v4031_v57  ;;  %v4059_v35 = vadd.f32 %v1680_v9, %v1475_v16  ;;  %v1752_v54 = vand.u32 2147483647, %v4004_v21  ;;  %2321 = vmatpush.bf16.msrb.mxu0 %v3096_v1 }
 0x67d   : > { %v1808_v36 = vmul.f32 %v1807_v6, %v3969_v37  ;;  %v1821_v38 = vmul.f32 %v1820_v7, %v3969_v37  ;;  %v1923_v39 = vadd.f32 0.00028619796, %v1922_v19  ;;  %v4067_v43 = vmul.f32 %v1731_v18, %v3933_v14  ;;  %v3104_v2 = vld [vmem:[%s3734_s15 + $0x70] sm:$0xff]  ;;  %v3102_v1 = vld [vmem:[%s3734_s15 + $0x60] sm:$0xff] }
 0x67e   : > { %v4027_v47 = vpop.eup %3281  ;;  %vm1748_vm1 = vweird.f32 %v4004_v21  ;;  %v1846_v44 = vmul.f32 %v1845_v24, %v3986_v61  ;;  %v1898_v45 = vadd.f32 0.112945676, %v1897_v30  ;;  %v1754_v46 = vand.u32 2147483648, %v4004_v21  ;;  %2335 = vmatpush.bf16.msra.mxu1 %v3104_v2  ;;  %v3113_v24 = vld [vmem:[%s3734_s15 + $0xb8] sm:$0xff] }
 0x67f   : > { %v1744_v0 = vmul.f32 %v4027_v47, %v4004_v21  ;;  %v4039_v55 = vpop.eup %3283  ;;  %v1887_v52 = vadd.f32 0.05243302, %v1886_v29  ;;  %v1792_v53 = vand.u32 2147483647, %v4017_v32  ;;  %v1859_v14 = vmul.f32 %v1858_v34, %v3986_v61  ;;  %2348 = vmatpush.bf16.msra.mxu2 %v3113_v24  ;;  %v3111_v24 = vld [vmem:[%s3734_s15 + $0xa8] sm:$0xff] }
 0x680   : > { %v1784_v26 = vmul.f32 %v4039_v55, %v4017_v32  ;;  %v1899_v50 = vmul.f32 %v1898_v45, %v4007_v27  ;;  %v1934_v56 = vadd.f32 0.001143296, %v1933_v12  ;;  %vm4076_vm2 = vcmp.eq.f32.partialorder %v1752_v54, 8.507059e+37  ;;  %v1694_v12 = vpop.f32.mrf.mxu3 }
 0x681   : > { %v1745_v20 = vsub.f32 1.0, %v1744_v0  ;;  %v1809_v59 = vadd.f32 0.18741608, %v1808_v36  ;;  %v4080_v60 = vadd.f32 1.0, %v1821_v38  ;;  %v1924_v62 = vmul.f32 %v1923_v39, %v4031_v57  ;;  %v3095_v39 = vld [vmem:[%s3734_s15 + $0x28] sm:$0xff] }
 0x682   : > { %v1785_v48 = vsub.f32 1.0, %v1784_v26  ;;  %v4085_v0 = vmul.f32 %v3923_v10, %v4059_v35  ;;  %v1794_v3 = vand.u32 2147483648, %v4017_v32  ;;  %v1847_v4 = vadd.f32 0.05243302, %v1846_v44  ;;  %2322 = vmatpush.bf16.msrb.mxu0 %v3095_v39  ;;  %2336 = vmatpush.bf16.msra.mxu1 %v3103_v40 }
 0x683   : > { %v1746_v16 = vmul.f32 %v4027_v47, %v1745_v20  ;;  %v1900_v6 = vadd.f32 0.4994258, %v1899_v50  ;;  %v1935_v7 = vmul.f32 %v1934_v56, %v4031_v57  ;;  %vm1749_vm3 = vweird.f32 %v4027_v47  ;;  %v3121_v20 = vld [vmem:[%s3734_s15 + $0xf8] sm:$0xff]  ;;  %v3120_v50 = vld [vmem:[%s3734_s15 + $0xf0] sm:$0xff] }
 0x684   : > { %v1786_v9 = vmul.f32 %v4039_v55, %v1785_v48  ;;  %v1888_v18 = vmul.f32 %v1887_v52, %v4007_v27  ;;  %v1860_v26 = vadd.f32 0.4994258, %v1859_v14  ;;  %v1960_v34 = vmul.f32 %v4085_v0, %v4085_v0  ;;  %2362 = vmatpush.bf16.msrb.mxu3 %v3121_v20  ;;  %vm4108_vm4 = vmor %vm1748_vm1, %vm1749_vm3  ;;  %v3112_v14 = vld [vmem:[%s3734_s15 + $0xb0] sm:$0xff]  ;;  %v3119_v20 = vld [vmem:[%s3734_s15 + $0xe8] sm:$0xff] }
 0x685   : > { %v1747_v19 = vadd.f32 %v4027_v47, %v1746_v16  ;;  %v1901_v29 = vmul.f32 %v1900_v6, %v4007_v27  ;;  %v1936_v30 = vadd.f32 0.014752088, %v1935_v7  ;;  %v1755_v54 = vor.u32 1.1754944e-38, %v1754_v46  ;;  %2349 = vmatpush.bf16.msra.mxu2 %v3112_v14 }
 0x686   : > { %v1810_v36 = vmul.f32 %v1809_v59, %v3969_v37  ;;  %3285 = vrcp.f32 %v4080_v60  ;;  %v1925_v38 = vadd.f32 0.0036580483, %v1924_v62  ;;  %vm4112_vm5 = vcmp.eq.f32.partialorder %v1792_v53, 8.507059e+37  ;;  %v3094_v62 = vld [vmem:[%s3734_s15 + $0x20] sm:$0xff]  ;;  %2337 = vmatpush.bf16.msra.mxu1 %v3102_v1 }
 0x687   : > { %v1848_v37 = vmul.f32 %v1847_v4, %v3986_v61  ;;  %v4117_v45 = vadd.f32 1.0, %v1901_v29  ;;  %v1937_v16 = vmul.f32 %v1936_v30, %v4031_v57  ;;  %v4120_v46 = vmin.f32 %v1960_v34, 16.0  ;;  %2323 = vmatpush.bf16.msrb.mxu0 %v3094_v62  ;;  %v3100_v62 = vld [vmem:[%s3734_s15 + $0x50] sm:$0xff] }
 0x688   : > { %v1751_v21 = vsel %vm4108_vm4, %v4027_v47, %v1747_v19  ;;  %v1795_v48 = vor.u32 1.1754944e-38, %v1794_v3  ;;  %v1889_v52 = vadd.f32 0.18741608, %v1888_v18  ;;  %v4127_v53 = vadd.f32 %v1694_v12, %v1476_v23  ;;  %2363 = vmatpush.bf16.msrb.mxu3 %v3120_v50 }
 0x689   : > { %v1787_v56 = vadd.f32 %v4039_v55, %v1786_v9  ;;  %vm1789_vm6 = vweird.f32 %v4039_v55  ;;  %v1861_v59 = vmul.f32 %v1860_v26, %v3986_v61  ;;  %3287 = vrcp.f32 %v4117_v45  ;;  %2350 = vmatpush.bf16.msra.mxu2 %v3111_v24  ;;  %v3117_v24 = vld [vmem:[%s3734_s15 + $0xd8] sm:$0xff] }
 0x68a   : > { %vm1788_vm7 = vweird.f32 %v4017_v32  ;;  %v4136_v47 = vadd.f32 1.1283791, %v1810_v36  ;;  %v1926_v5 = vmul.f32 %v1925_v38, %v4031_v57  ;;  %v1938_v23 = vadd.f32 0.112945676, %v1937_v16  ;;  %v3093_v36 = vld [vmem:[%s3734_s15 + $0x18] sm:$0xff] }
 0x68b   : > { %v1756_v2 = vsel %vm4076_vm2, %v1755_v54, %v1751_v21  ;;  %v4143_v3 = vadd.f32 0.18741608, %v1848_v37  ;;  %v1962_v4 = vmul.f32 2.1237322e-06, %v4120_v46  ;;  %v1973_v32 = vmul.f32 3.8918573e-05, %v4120_v46  ;;  %vm4151_vm8 = vmor %vm1788_vm7, %vm1789_vm6  ;;  %2324 = vmatpush.bf16.msrb.mxu0 %v3093_v36 }
 0x68c   : > { %v4147_v6 = vpop.eup %3285  ;;  %v1832_v19 = vand.u32 2147483647, %v4080_v60  ;;  %v1890_v9 = vmul.f32 %v1889_v52, %v4007_v27  ;;  %v1939_v58 = vmul.f32 %v1938_v23, %v4031_v57  ;;  %v4160_v18 = vmul.f32 %v3923_v10, %v4127_v53  ;;  %2364 = vmatpush.bf16.msrb.mxu3 %v3119_v20  ;;  %v3101_v38 = vld [vmem:[%s3734_s15 + $0x58] sm:$0xff]  ;;  %v3118_v52 = vld [vmem:[%s3734_s15 + $0xe0] sm:$0xff]  ;;  %v3092_v23 = vld [vmem:[%s3734_s15 + $0x10] sm:$0xff] }
 0x68d   : > { %v1791_v26 = vsel %vm4151_vm8, %v4039_v55, %v1787_v56  ;;  %v4167_v29 = vadd.f32 1.0, %v1861_v59  ;;  %v1963_v30 = vadd.f32 0.00028619796, %v1962_v4  ;;  %v1974_v27 = vadd.f32 0.001143296, %v1973_v32  ;;  %2338 = vmatpush.bf16.msra.mxu1 %v3101_v38 }
 0x68e   : > { %v1772_v34 = vmul.f32 %v4054_v8, %v3937_v15  ;;  %v1927_v12 = vadd.f32 0.05243302, %v1926_v5  ;;  %v1940_v54 = vadd.f32 0.4994258, %v1939_v58  ;;  %v2000_v10 = vmul.f32 %v4160_v18, %v4160_v18  ;;  %v3109_v58 = vld [vmem:[%s3734_s15 + $0x98] sm:$0xff] }
 0x68f   : > { %v4175_v39 = vpop.eup %3287  ;;  %v4178_v55 = vmul.f32 %v1756_v2, %v4067_v43  ;;  %v1824_v40 = vmul.f32 %v4147_v6, %v4080_v60  ;;  %v1964_v15 = vmul.f32 %v1963_v30, %v4120_v46  ;;  %v1975_v8 = vmul.f32 %v1974_v27, %v4120_v46  ;;  %v3110_v43 = vld [vmem:[%s3734_s15 + $0xa0] sm:$0xff]  ;;  %2325 = vmatpush.bf16.msrb.mxu0 %v3092_v23 }
 0x690   : > { %v1796_v42 = vsel %vm4112_vm5, %v1795_v48, %v1791_v26  ;;  %v1891_v37 = vadd.f32 1.1283791, %v1890_v9  ;;  %v1904_v16 = vmul.f32 %v4175_v39, %v4117_v45  ;;  %v1941_v21 = vmul.f32 %v1940_v54, %v4031_v57  ;;  %2351 = vmatpush.bf16.msra.mxu2 %v3110_v43  ;;  %2365 = vmatpush.bf16.msrb.mxu3 %v3118_v52 }
 0x691   : > { %3289 = vrcp.f32 %v4167_v29  ;;  %v1965_v14 = vadd.f32 0.0036580483, %v1964_v15  ;;  %v1976_v50 = vadd.f32 0.014752088, %v1975_v8  ;;  %v4192_v56 = vmin.f32 %v2000_v10, 16.0  ;;  %2339 = vmatpush.bf16.msra.mxu1 %v3100_v62  ;;  %v3099_v15 = vld [vmem:[%s3734_s15 + $0x48] sm:$0xff] }
 0x692   : > { %v1905_v44 = vsub.f32 1.0, %v1904_v16  ;;  %v1912_v48 = vand.u32 2147483647, %v4117_v45  ;;  %v1928_v59 = vmul.f32 %v1927_v12, %v4031_v57  ;;  %v4196_v5 = vadd.f32 1.0, %v1941_v21  ;;  %v3116_v21 = vld [vmem:[%s3734_s15 + $0xd0] sm:$0xff] }
 0x693   : > { %v1914_v1 = vand.u32 2147483648, %v4117_v45  ;;  %v1977_v2 = vmul.f32 %v1976_v50, %v4120_v46  ;;  %v2002_v4 = vmul.f32 2.1237322e-06, %v4192_v56  ;;  %v2013_v32 = vmul.f32 3.8918573e-05, %v4192_v56 }
 0x694   : > { %v4204_v7 = vmul.f32 %v1796_v42, %v1772_v34  ;;  %v1906_v9 = vmul.f32 %v4175_v39, %v1905_v44  ;;  %vm1909_vm9 = vweird.f32 %v4175_v39  ;;  %3291 = vrcp.f32 %v4196_v5  ;;  %2352 = vmatpush.bf16.msra.mxu2 %v3109_v58  ;;  %2366 = vmatpush.bf16.msrb.mxu3 %v3117_v24 }
 0x695   : > { %v2899_v20 = vclamps-f32 %v4178_v55, 1.0  ;;  %v1825_v26 = vsub.f32 1.0, %v1824_v40  ;;  %vm1908_vm10 = vweird.f32 %v4117_v45  ;;  %v1966_v30 = vmul.f32 %v1965_v14, %v4120_v46  ;;  %v3091_v40 = vld [vmem:[%s3734_s15 + $0x8] sm:$0xff]  ;;  %2340 = vmatpush.bf16.msra.mxu1 %v3099_v15 }
 0x696   : > { %v1907_v27 = vadd.f32 %v4175_v39, %v1906_v9  ;;  %v1978_v34 = vadd.f32 0.112945676, %v1977_v2  ;;  %v2003_v12 = vadd.f32 0.00028619796, %v2002_v4  ;;  %v2014_v54 = vadd.f32 0.001143296, %v2013_v32  ;;  %vm4221_vm12 = vmor %vm1908_vm10, %vm1909_vm9  ;;  %2326 = vmatpush.bf16.msrb.mxu0 %v3091_v40 }
 0x697   : > { %v4215_v10 = vpop.eup %3289  ;;  %vm1828_vm11 = vweird.f32 %v4080_v60  ;;  %v1892_v36 = vmul.f32 %v1891_v37, %v3990_v49  ;;  %vm1913_vm13 = vcmp.eq.f32.partialorder %v1912_v48, 8.507059e+37  ;;  %v1915_v38 = vor.u32 1.1754944e-38, %v1914_v1  ;;  %v3108_v37 = vld [vmem:[%s3734_s15 + $0x90] sm:$0xff]  ;;  %v3090_v4 = vld [vmem:[%s3734_s15] sm:$0xff] }
 0x698   : > { %v1929_v55 = vadd.f32 0.18741608, %v1928_v59  ;;  %v1911_v8 = vsel %vm4221_vm12, %v4175_v39, %v1907_v27  ;;  %v1979_v42 = vmul.f32 %v1978_v34, %v4120_v46  ;;  %v2004_v16 = vmul.f32 %v2003_v12, %v4192_v56  ;;  %2353 = vmatpush.bf16.msra.mxu2 %v3108_v37  ;;  %2367 = vmatpush.bf16.msrb.mxu3 %v3116_v21  ;;  %v3098_v32 = vld [vmem:[%s3734_s15 + $0x40] sm:$0xff]  ;;  %v3115_v27 = vld [vmem:[%s3734_s15 + $0xc8] sm:$0xff] }
 0x699   : > { %v2015_v49 = vmul.f32 %v2014_v54, %v4192_v56  ;;  %v1826_v43 = vmul.f32 %v4147_v6, %v1825_v26  ;;  %vm1829_vm14 = vweird.f32 %v4147_v6  ;;  %v1834_v52 = vand.u32 2147483648, %v4080_v60  ;;  %2341 = vmatpush.bf16.msra.mxu1 %v3098_v32  ;;  %v3114_v37 = vld [vmem:[%s3734_s15 + $0xc0] sm:$0xff] }
 0x69a   : > { %v1916_v14 = vsel %vm1913_vm13, %v1915_v38, %v1911_v8  ;;  %v3292_v39 = vpop.eup %3291  ;;  %v1967_v44 = vadd.f32 0.05243302, %v1966_v30  ;;  %v1980_v48 = vadd.f32 0.4994258, %v1979_v42  ;;  %v2040_v23 = vadd.f32 1.0, %v2899_v20  ;;  %v3107_v30 = vld [vmem:[%s3734_s15 + $0x88] sm:$0xff]  ;;  %2327 = vmatpush.bf16.msrb.mxu0 %v3090_v4  ;;  %vm4260_vm0 = vmor %vm1828_vm11, %vm1829_vm14 }
 0x69b   : > { %v1917_v50 = vmul.f32 %v1916_v14, %v1892_v36  ;;  %v2016_v59 = vadd.f32 0.014752088, %v2015_v49  ;;  %v2900_v62 = vclamps-f32 %v4204_v7, 1.0  ;;  %v1930_v1 = vmul.f32 %v1929_v55, %v4031_v57  ;;  %v3106_v49 = vld [vmem:[%s3734_s15 + $0x80] sm:$0xff] }
 0x69c   : > { %v1944_v2 = vmul.f32 %v3292_v39, %v4196_v5  ;;  %v1981_v58 = vmul.f32 %v1980_v48, %v4120_v46  ;;  %v2005_v24 = vadd.f32 0.0036580483, %v2004_v16  ;;  %v1827_v34 = vadd.f32 %v4147_v6, %v1826_v43  ;;  %2354 = vmatpush.bf16.msra.mxu2 %v3107_v30  ;;  %2368 = vmatpush.bf16.msrb.mxu3 %v3115_v27 }
 0x69d   : > { %v2903_v9 = vclamps-f32 %v1917_v50, 1.0  ;;  %v2017_v26 = vmul.f32 %v2016_v59, %v4192_v56  ;;  %v1864_v20 = vmul.f32 %v4215_v10, %v4167_v29  ;;  %v1954_v57 = vand.u32 2147483648, %v4196_v5 }
 0x69e   : > { %v1945_v7 = vsub.f32 1.0, %v1944_v2  ;;  %v1968_v54 = vmul.f32 %v1967_v44, %v4120_v46  ;;  %v4252_v36 = vadd.f32 1.0, %v1981_v58  ;;  %v1931_v38 = vadd.f32 1.1283791, %v1930_v1 }
 0x69f   : > { %v2044_v12 = vadd.f32 1.0, %v2903_v9  ;;  %v2018_v45 = vadd.f32 0.112945676, %v2017_v26  ;;  %vm1949_vm15 = vweird.f32 %v3292_v39  ;;  %v1952_v40 = vand.u32 2147483647, %v4196_v5 }
 0x6a0   : > { %v1946_v55 = vmul.f32 %v3292_v39, %v1945_v7  ;;  %v2048_v15 = vmul.f32 %v2040_v23, %v4045_v11  ;;  %3293 = vrcp.f32 %v4252_v36  ;;  %v2006_v16 = vmul.f32 %v2005_v24, %v4192_v56  ;;  %2355 = vmatpush.bf16.msra.mxu2 %v3106_v49  ;;  %2369 = vmatpush.bf16.msrb.mxu3 %v3114_v37 }
 0x6a1   : > { %v2052_v42 = vmul.f32 %v2044_v12, %v4048_v25  ;;  %v1831_v11 = vsel %vm4260_vm0, %v4147_v6, %v1827_v34  ;;  %vm1948_vm1 = vweird.f32 %v4196_v5  ;;  %v2019_v43 = vmul.f32 %v2018_v45, %v4192_v56 }
 0x6a2   : > { %v1947_v21 = vadd.f32 %v3292_v39, %v1946_v55  ;;  %v1865_v14 = vsub.f32 1.0, %v1864_v20  ;;  %vm1950_vm2 = vmor %vm1948_vm1, %vm1949_vm15  ;;  %v1955_v25 = vor.u32 1.1754944e-38, %v1954_v57  ;;  %v1969_v44 = vadd.f32 0.18741608, %v1968_v54 }
 0x6a3   : > { %v2056_v50 = vpack.c.bf16 %v2052_v42, %v2048_v15  ;;  %v1932_v48 = vmul.f32 %v1931_v38, %v4013_v31  ;;  %vm1953_vm3 = vcmp.eq.f32.partialorder %v1952_v40, 8.507059e+37  ;;  %v2020_v23 = vadd.f32 0.4994258, %v2019_v43 }
 0x6a4   : > { %v1951_v59 = vsel %vm1950_vm2, %v3292_v39, %v1947_v21  ;;  %v2041_v1 = vadd.f32 1.0, %v2900_v62  ;;  %v1835_v6 = vor.u32 1.1754944e-38, %v1834_v52  ;;  %v2007_v4 = vadd.f32 0.05243302, %v2006_v16 }
 0x6a5   : > { %v1956_v2 = vsel %vm1953_vm3, %v1955_v25, %v1951_v59  ;;  %2328 = vmatmul.bf16.vlgmr.msrb.gmra.mxu0 %v2056_v50  ;;  %v1698_v5 = vmul.f32 0.5, %v3929_v13  ;;  %vm1833_vm4 = vcmp.eq.f32.partialorder %v1832_v19, 8.507059e+37  ;;  %v2021_v9 = vmul.f32 %v2020_v23, %v4192_v56 }
 0x6a6   : > { %v1957_v32 = vmul.f32 %v1956_v2, %v1932_v48  ;;  %v3294_v58 = vpop.eup %3293  ;;  %v1836_v24 = vsel %vm1833_vm4, %v1835_v6, %v1831_v11  ;;  %v1866_v31 = vmul.f32 %v4215_v10, %v1865_v14  ;;  %v1702_v39 = vmul.f32 0.5, %v4002_v17 }
 0x6a7   : > { %v1970_v62 = vmul.f32 %v1969_v44, %v4120_v46  ;;  %v1812_v52 = vmul.f32 %v4136_v47, %v3958_v28  ;;  %v1850_v13 = vmul.f32 %v4143_v3, %v3986_v61  ;;  %v1984_v60 = vmul.f32 %v3294_v58, %v4252_v36 }
 0x6a8   : > { %v2904_v26 = vclamps-f32 %v1957_v32, 1.0  ;;  %v2049_v19 = vmul.f32 %v2041_v1, %v1698_v5  ;;  %v1874_v30 = vand.u32 2147483648, %v4167_v29  ;;  %v2008_v27 = vmul.f32 %v2007_v4, %v4192_v56 }
 0x6a9   : > { %v2022_v34 = vadd.f32 1.0, %v2021_v9  ;;  %v1837_v20 = vmul.f32 %v1836_v24, %v1812_v52  ;;  %vm1869_vm5 = vweird.f32 %v4215_v10  ;;  %v1985_v46 = vsub.f32 1.0, %v1984_v60 }
 0x6aa   : > { %v2045_v17 = vadd.f32 1.0, %v2904_v26  ;;  %v1867_v7 = vadd.f32 %v4215_v10, %v1866_v31  ;;  %v1971_v28 = vadd.f32 1.1283791, %v1970_v62  ;;  %v1994_v47 = vand.u32 2147483648, %v4252_v36 }
 0x6ab   : > { %3295 = vrcp.f32 %v2022_v34  ;;  %v1986_v3 = vmul.f32 %v3294_v58, %v1985_v46  ;;  %vm1989_vm6 = vweird.f32 %v3294_v58  ;;  %v1992_v57 = vand.u32 2147483647, %v4252_v36 }
 0x6ac   : > { %v2053_v61 = vmul.f32 %v2045_v17, %v1702_v39  ;;  %vm1868_vm7 = vweird.f32 %v4167_v29  ;;  %v1872_v12 = vand.u32 2147483647, %v4167_v29  ;;  %v2009_v54 = vadd.f32 0.18741608, %v2008_v27 }
 0x6ad   : > { %vm4296_vm8 = vmor %vm1868_vm7, %vm1869_vm5  ;;  %v1987_v55 = vadd.f32 %v3294_v58, %v1986_v3  ;;  %vm1988_vm9 = vweird.f32 %v4252_v36  ;;  %v1851_v40 = vadd.f32 1.1283791, %v1850_v13  ;;  %v1875_v8 = vor.u32 1.1754944e-38, %v1874_v30 }
 0x6ae   : > { %v2057_v38 = vpack.c.bf16 %v2053_v61, %v2049_v19  ;;  %v1871_v15 = vsel %vm4296_vm8, %v4215_v10, %v1867_v7  ;;  %vm1990_vm10 = vmor %vm1988_vm9, %vm1989_vm6  ;;  %v1995_v42 = vor.u32 1.1754944e-38, %v1994_v47  ;;  %v2901_v16 = vclamps-f32 %v1837_v20, 1.0 }
 0x6af   : > { %v1972_v29 = vmul.f32 %v1971_v28, %v4085_v0  ;;  %v1991_v49 = vsel %vm1990_vm10, %v3294_v58, %v1987_v55  ;;  %vm1993_vm11 = vcmp.eq.f32.partialorder %v1992_v57, 8.507059e+37  ;;  %vm1873_vm12 = vcmp.eq.f32.partialorder %v1872_v12, 8.507059e+37 }
 0x6b0   : > { %2342 = vmatmul.bf16.vlgmr.msra.gmra.mxu1 %v2057_v38  ;;  %v1996_v11 = vsel %vm1993_vm11, %v1995_v42, %v1991_v49  ;;  %v2010_v21 = vmul.f32 %v2009_v54, %v4192_v56  ;;  %v1876_v36 = vsel %vm1873_vm12, %v1875_v8, %v1871_v15  ;;  %v1852_v50 = vmul.f32 %v1851_v40, %v3973_v41 }
 0x6b1   : > { %v3296_v37 = vpop.eup %3295  ;;  %v1997_v43 = vmul.f32 %v1996_v11, %v1972_v29  ;;  %v1699_v10 = vmul.f32 0.5, %v3950_v22  ;;  %v2042_v25 = vadd.f32 1.0, %v2901_v16  ;;  %v1703_v0 = vmul.f32 0.5, %v4059_v35 }
 0x6b2   : > { %v2024_v14 = vmul.f32 %v3296_v37, %v2022_v34  ;;  %v1877_v59 = vmul.f32 %v1876_v36, %v1852_v50  ;;  %v2011_v23 = vadd.f32 1.1283791, %v2010_v21  ;;  %v2034_v1 = vand.u32 2147483648, %v2022_v34 }
 0x6b3   : > { %v2905_v44 = vclamps-f32 %v1997_v43, 1.0  ;;  %vm2029_vm13 = vweird.f32 %v3296_v37  ;;  %v2032_v4 = vand.u32 2147483647, %v2022_v34  ;;  %v2050_v56 = vmul.f32 %v2042_v25, %v1699_v10 }
 0x6b4   : > { %v2025_v48 = vsub.f32 1.0, %v2024_v14  ;;  %vm2028_vm14 = vweird.f32 %v2022_v34  ;;  %v2902_v9 = vclamps-f32 %v1877_v59, 1.0  ;;  %v2035_v41 = vor.u32 1.1754944e-38, %v2034_v1 }
 0x6b5   : > { %v2046_v6 = vadd.f32 1.0, %v2905_v44  ;;  %vm2030_vm15 = vmor %vm2028_vm14, %vm2029_vm13  ;;  %v2012_v58 = vmul.f32 %v2011_v23, %v4160_v18  ;;  %vm2033_vm0 = vcmp.eq.f32.partialorder %v2032_v4, 8.507059e+37  ;;  %v1700_v52 = vmul.f32 0.5, %v3965_v33  ;;  %v3240_v18 = vld [vmem:[%s796_s20] ss:$0 sm:$0xff] }
 0x6b6   : > { %v2026_v2 = vmul.f32 %v3296_v37, %v2025_v48  ;;  %v2043_v39 = vadd.f32 1.0, %v2902_v9  ;;  %v1704_v13 = vmul.f32 0.5, %v4127_v53 }
 0x6b7   : > { %v2054_v5 = vmul.f32 %v2046_v6, %v1703_v0 }
 0x6b8   : > { %v2027_v32 = vadd.f32 %v3296_v37, %v2026_v2  ;;  %v2051_v60 = vmul.f32 %v2043_v39, %v1700_v52  ;;  %v3241_v2 = vld [vmem:[%s799_s17] ss:$0 sm:$0xff] }
 0x6b9   : > { %v2058_v22 = vpack.c.bf16 %v2054_v5, %v2050_v56  ;;  %v3242_v5 = vld [vmem:[%s802_s5] ss:$0 sm:$0xff] }
 0x6ba   : > { %v2031_v24 = vsel %vm2030_vm15, %v3296_v37, %v2027_v32 }
 0x6bb   : > { %v2036_v35 = vsel %vm2033_vm0, %v2035_v41, %v2031_v24  ;;  %2356 = vmatmul.bf16.vlgmr.msra.gmra.mxu2 %v2058_v22 }
 0x6bc   : > { %v2037_v31 = vmul.f32 %v2036_v35, %v2012_v58 }
 0x6be   : > { %v2906_v62 = vclamps-f32 %v2037_v31, 1.0 }
 0x6c0   : > { %v2047_v26 = vadd.f32 1.0, %v2906_v62 }
 0x6c2   : > { %v2055_v19 = vmul.f32 %v2047_v26, %v1704_v13 }
 0x6c4   : > { %v2059_v30 = vpack.c.bf16 %v2055_v19, %v2051_v60 }
 0x6c6   : > { %2370 = vmatmul.bf16.vlgmr.msrb.gmra.mxu3 %v2059_v30 }
 0x722   : > { %v2329_v27 = vpop.f32.mrf.mxu0 }
 0x723   : > { %v2330_v34 = vadd.f32 %v3240_v18, %v2329_v27 }
 0x72a   : > { %v2331_v7 = vpop.f32.mrf.mxu0 }
 0x72b   : > { %v2332_v33 = vadd.f32 %v3240_v18, %v2331_v7 }
 0x72d   : > { %v2343_v20 = vpop.f32.mrf.mxu1 }
 0x72e   : > { %v2344_v46 = vadd.f32 %v2343_v20, %v2330_v34 }
 0x735   : > { %v2345_v61 = vpop.f32.mrf.mxu1 }
 0x736   : > { %v2346_v57 = vadd.f32 %v2345_v61, %v2332_v33 }
 0x73e   : > { %v2357_v17 = vpop.f32.mrf.mxu2 }
 0x73f   : > { %v2358_v28 = vadd.f32 %v2357_v17, %v2344_v46 }
 0x746   : > { %v2359_v3 = vpop.f32.mrf.mxu2 }
 0x747   : > { %v2360_v54 = vadd.f32 %v2359_v3, %v2346_v57 }
 0x749   : > { %v2371_v47 = vpop.f32.mrf.mxu3 }
 0x74a   : > { %v2372_v53 = vadd.f32 %v2371_v47, %v2358_v28 }
 0x74c   : > { %v2376_v12 = vadd.f32 %v2372_v53, %v3912_v51 }
 0x74e   : > { %2380 = vadd.xlane.f32.xlu1 %v2376_v12  ;;  %v2386_v45 = vmul.f32 %v2376_v12, %v2376_v12 }
 0x750   : > { %2388 = vadd.xlane.f32.xlu2 %v2386_v45 }
 0x751   : > { %v2373_v38 = vpop.f32.mrf.mxu3 }
 0x752   : > { %v2374_v55 = vadd.f32 %v2373_v38, %v2360_v54 }
 0x754   : > { %v2377_v40 = vadd.f32 %v2374_v55, %v3914_v63 }
 0x756   : > { %2382 = vadd.xlane.f32.xlu0 %v2377_v40  ;;  %v2387_v15 = vmul.f32 %v2377_v40, %v2377_v40 }
 0x758   : > { %2390 = vadd.xlane.f32.xlu1 %v2387_v15 }
 0x7c1   : > { %v2381_v8 = vpop.xlane.xlu1 %2380 }
 0x7c2   : > { %v2384_v42 = vmul.f32 0.0078125, %v2381_v8 }
 0x7c3   : > { %v2389_v16 = vpop.xlane.xlu2 %2388 }
 0x7c4   : > { %v2394_v29 = vmul.f32 %v2384_v42, %v2384_v42  ;;  %v2392_v49 = vmul.f32 0.0078125, %v2389_v16  ;;  %v2398_v6 = vsub.f32 %v2376_v12, %v2384_v42 }
 0x7c6   : > { %v2396_v37 = vsub.f32 %v2392_v49, %v2394_v29 }
 0x7c8   : > { %v2400_v11 = vadd.f32 1e-12, %v2396_v37 }
 0x7c9   : > { %v2383_v21 = vpop.xlane.xlu0 %2382 }
 0x7ca   : > { %3297 = vrsqrt.f32 %v2400_v11  ;;  %v2385_v51 = vmul.f32 0.0078125, %v2383_v21  ;;  %vm2408_vm2 = vweird.f32 %v2400_v11 }
 0x7cb   : > { %v2391_v36 = vpop.xlane.xlu1 %2390 }
 0x7cc   : > { %v2395_v43 = vmul.f32 %v2385_v51, %v2385_v51  ;;  %v2393_v14 = vmul.f32 0.0078125, %v2391_v36  ;;  %v2399_v35 = vsub.f32 %v2377_v40, %v2385_v51 }
 0x7ce   : > { %v2397_v50 = vsub.f32 %v2393_v14, %v2395_v43 }
 0x7d0   : > { %v3298_v10 = vpop.eup %3297  ;;  %v2401_v63 = vadd.f32 1e-12, %v2397_v50 }
 0x7d1   : > { %v2403_v25 = vmul.f32 %v3298_v10, %v2400_v11  ;;  %vm2409_vm1 = vweird.f32 %v3298_v10 }
 0x7d2   : > { %3299 = vrsqrt.f32 %v2401_v63  ;;  %vm2410_vm3 = vmor %vm2408_vm2, %vm2409_vm1  ;;  %vm2418_vm5 = vweird.f32 %v2401_v63 }
 0x7d3   : > { %v2404_v44 = vmul.f32 %v3298_v10, %v2403_v25 }
 0x7d5   : > { %v2405_v48 = vmul.f32 0.5, %v2404_v44 }
 0x7d7   : > { %v2406_v59 = vsub.f32 1.5, %v2405_v48 }
 0x7d8   : > { %v3300_v0 = vpop.eup %3299 }
 0x7d9   : > { %v2407_v23 = vmul.f32 %v3298_v10, %v2406_v59  ;;  %v2413_v1 = vmul.f32 %v3300_v0, %v2401_v63  ;;  %vm2419_vm4 = vweird.f32 %v3300_v0 }
 0x7da   : > { %vm2420_vm6 = vmor %vm2418_vm5, %vm2419_vm4 }
 0x7db   : > { %v2411_v4 = vsel %vm2410_vm3, %v3298_v10, %v2407_v23  ;;  %v2414_v56 = vmul.f32 %v3300_v0, %v2413_v1 }
 0x7dc   : > { %v2422_v32 = vmul.f32 %v2411_v4, %v2398_v6 }
 0x7dd   : > { %v2415_v9 = vmul.f32 0.5, %v2414_v56 }
 0x7de   : > { %v2427_v41 = vmul.f32 %v3241_v2, %v2422_v32 }
 0x7df   : > { %v2416_v22 = vsub.f32 1.5, %v2415_v9 }
 0x7e0   : > { %v2432_v58 = vadd.f32 %v3242_v5, %v2427_v41 }
 0x7e1   : > { %v2417_v24 = vmul.f32 %v3300_v0, %v2416_v22 }
 0x7e2   : > { %2434 = vst [vmem:[#allocation2] sm:$0xff] %v2432_v58 }
 0x7e3   : > { %v2421_v31 = vsel %vm2420_vm6, %v3300_v0, %v2417_v24 }
 0x7e4   : > { %v2423_v39 = vmul.f32 %v2421_v31, %v2399_v35 }
 0x7e6   : > { %v2428_v62 = vmul.f32 %v3241_v2, %v2423_v39  ;;  %2439 = sbr.rel (%p3035_p4) target bundleno = 2030 (0x7ee), region = 104 }
 0x7e8   : > { %v2433_v52 = vadd.f32 %v3242_v5, %v2428_v62 }
 0x7ea   : > { %2435 = vst [vmem:[#allocation2 + $0x8] sm:$0xff] %v2433_v52 }
 0x7eb   : > { %v3125_v13 = vpack.c.bf16 %v2433_v52, %v2432_v58 }
 0x7ed   : > { %3126 = vst [vmem:[%s3692_s30] sm:$0xff] %v3125_v13  }
 0x7ee PF: > { %s32_s28 = sadd.s32 1, %s3461_s28   ;;  %s4450_s21 = sld [smem:[#allocation10_spill]] }
 0x7ef   : > { %p29_p5 = scmp.ge.s32.totalorder %s32_s28, 6   ;;  %s4451_s22 = sld [smem:[#allocation11_spill]] }
 0x7f0   : > { %s4452_s23 = sld [smem:[#allocation16_spill]] }
 0x7f1   : > { %s4453_s24 = sld [smem:[#allocation12_spill]]  ;;  %31 = sbr.rel (!%p29_p5) target bundleno = 25 (0x19), region = 189 }
 0x7f2   : > { %s4454_s25 = sld [smem:[#allocation13_spill]] }
 0x7f3   : > { %s4455_s26 = sld [smem:[#allocation14_spill]] }
 0x7f4   : > { %s4456_s27 = sld [smem:[#allocation15_spill]] }
 0x7f6   :  { %2466 = vsyncpa [#allocation4], 1 }
 0x7f7   :  { %2468 = vsyncpa [#allocation4 + $0x1], 1 }
 0x7f8   :  { %2469 = vsyncpa [#allocation6], 1 }
 0x7f9   :  { %2471 = vsyncpa [#allocation6 + $0x1], 1 }

</bundles_post_ra>
